<compile_context>
chip_gen: v6e
topology: v6e:2x2x1
jax: 0.10.0
libtpu: 0.0.40
codegen_flags: <defaults>
</compile_context>

<pallas_src>
import jax
import jax.numpy as jnp
from jax.experimental import pallas as pl
from jax.experimental.pallas import tpu as pltpu

H = 768          # BERT hidden size implied by the module (Linear(768, 768))
N_BRANCH = 6     # number of local branches
TN = 3 * H       # branch output-column tile (2304 = 18*128) -> grid=(2,)


def fused_pooler_branches_kernel(x_ref, wp_ref, bp_ref, wl_ref, bl_ref,
                                 pooled_ref, loc_ref):
    # x_ref:      (Bp, H)  bf16  — CLS token rows, resident across the grid
    # wp_ref:     (H, H)   bf16  — pooler weight, resident (loaded once)
    # bp_ref:     (1, H)   f32   — pooler bias, resident
    # wl_ref:     (H, TN)  bf16  — branch weight column tile
    # bl_ref:     (1, TN)  f32   — branch bias column tile
    # pooled_ref: (Bp, H)  f32   — constant block index -> resident output
    # loc_ref:    (Bp, TN) f32   — lane-dense branch output tile

    # BERT pooler: computed once on the first grid step; the resident pooled
    # output block doubles as the persistent VMEM home for the branch LHS.
    @pl.when(pl.program_id(0) == 0)
    def _():
        acc = jnp.dot(x_ref[...], wp_ref[...],
                      preferred_element_type=jnp.float32)
        pooled_ref[...] = jnp.tanh(acc + bp_ref[...])

    # Local branches: bf16 x bf16 -> f32 MXU matmul on this column tile.
    lhs = pooled_ref[...].astype(jnp.bfloat16)
    acc = jnp.dot(lhs, wl_ref[...], preferred_element_type=jnp.float32)
    loc_ref[...] = jnp.tanh(acc + bl_ref[...])


def fused_pooler_branches(x_bf16, w_pool, b_pool, w_local, b_local, *, tn=TN):
    """pooled = tanh(x @ w_pool + b_pool); locals = tanh(pooled @ w_local + b_local).

    x_bf16: [Bp, H] bf16 (Bp multiple of 8), weights bf16, biases f32.
    Returns (pooled [Bp, H] f32, locals_flat [Bp, N_BRANCH*H] f32).
    """
    Bp, K = x_bf16.shape
    Kw, N = w_local.shape
    assert K == H and Kw == K and N % tn == 0 and Bp % 8 == 0
    assert w_pool.shape == (K, K) and b_pool.shape == (1, K)
    assert b_local.shape == (1, N)
    grid = (N // tn,)

    cost = pl.CostEstimate(
        flops=2 * Bp * K * K + 2 * Bp * K * N,
        transcendentals=Bp * (K + N),
        bytes_accessed=(x_bf16.size * 2 + w_pool.size * 2 + w_local.size * 2
                        + b_pool.size * 4 + b_local.size * 4
                        + Bp * K * 4 + Bp * N * 4),
    )

    pooled, locals_flat = pl.pallas_call(
        fused_pooler_branches_kernel,
        out_shape=(jax.ShapeDtypeStruct((Bp, K), jnp.float32),
                   jax.ShapeDtypeStruct((Bp, N), jnp.float32)),
        grid=grid,
        in_specs=[
            pl.BlockSpec((Bp, K), lambda j: (0, 0)),   # x resident
            pl.BlockSpec((K, K), lambda j: (0, 0)),    # w_pool resident
            pl.BlockSpec((1, K), lambda j: (0, 0)),    # b_pool resident
            pl.BlockSpec((K, tn), lambda j: (0, j)),   # w_local column tile
            pl.BlockSpec((1, tn), lambda j: (0, j)),   # b_local column tile
        ],
        out_specs=(
            pl.BlockSpec((Bp, K), lambda j: (0, 0)),   # pooled: resident block
            pl.BlockSpec((Bp, tn), lambda j: (0, j)),  # lane-dense branch tile
        ),
        compiler_params=pltpu.CompilerParams(
            # pooled output block is revisited across this axis -> arbitrary.
            dimension_semantics=("arbitrary",),
        ),
        cost_estimate=cost,
    )(x_bf16, w_pool, b_pool, w_local, b_local)
    return pooled, locals_flat


def bert_linear_txt_forward(txt, mask, params):
    """Mirrors Bert_Linear_txt.forward: returns (pooled_output, local_outputs)."""
    # TODO(synk): pretrained BERT encoder replaced by a deterministic
    # embedding lookup (the attention `mask` is unused by the stand-in).
    hidden = params["emb_table"][txt]                   # [B, L, H]
    cls_tok = hidden[:, 0, :]                           # [B, H] (pooler input)

    B = cls_tok.shape[0]
    Bp = max(8, ((B + 7) // 8) * 8)                     # full-sublane rows
    cls_pad = jnp.zeros((Bp, H), cls_tok.dtype).at[:B].set(cls_tok)
    cls_bf16 = cls_pad.astype(jnp.bfloat16)             # native MXU LHS dtype

    pooled_pad, locals_pad = fused_pooler_branches(
        cls_bf16, params["w_pool"], params["b_pool"],
        params["w_local"], params["b_local"])

    pooled = pooled_pad[:B]
    local_outputs = [locals_pad[:B, i * H:(i + 1) * H] for i in range(N_BRANCH)]
    return pooled, local_outputs


def init_params(key, vocab_size=100):
    ks = jax.random.split(key, 5)
    scale = 0.02
    emb_table = scale * jax.random.normal(ks[0], (vocab_size, H), jnp.float32)
    # Weights stored in bf16 (memory-bound kernel); biases stay f32.
    w_pool = (scale * jax.random.normal(ks[1], (H, H), jnp.float32)
              ).astype(jnp.bfloat16)
    b_pool = scale * jax.random.normal(ks[2], (1, H), jnp.float32)
    w_local = (scale * jax.random.normal(ks[3], (H, N_BRANCH * H), jnp.float32)
               ).astype(jnp.bfloat16)
    b_local = scale * jax.random.normal(ks[4], (1, N_BRANCH * H), jnp.float32)
    return {
        "emb_table": emb_table,
        "w_pool": w_pool,
        "b_pool": b_pool,
        "w_local": w_local,
        "b_local": b_local,
    }


if __name__ == "__main__":
    key = jax.random.PRNGKey(0)
    k_param, k_tok = jax.random.split(key)

    B, L = 2, 8
    params = init_params(k_param)
    txt = jax.random.randint(k_tok, (B, L), 0, 100, dtype=jnp.int32)
    mask = jnp.ones((B, L), dtype=jnp.int32)

    fwd = jax.jit(bert_linear_txt_forward)
    pooled, local_outputs = fwd(txt, mask, params)
    pooled = jax.block_until_ready(pooled)
    local_outputs = [jax.block_until_ready(o) for o in local_outputs]

    assert pooled.shape == (B, H)
    assert len(local_outputs) == N_BRANCH
    assert all(o.shape == (B, H) for o in local_outputs)

    # Sanity-check the Pallas path against plain JAX using the same bf16
    # weights / bf16 LHS (MXU bf16 path -> atol loosened to 2e-3).
    hp = jax.lax.Precision.HIGHEST
    cls_ref = params["emb_table"][txt][:, 0, :]
    cls_bf = cls_ref.astype(jnp.bfloat16).astype(jnp.float32)
    pooled_ref = jnp.tanh(
        jnp.dot(cls_bf, params["w_pool"].astype(jnp.float32), precision=hp)
        + params["b_pool"]
    )
    assert jnp.allclose(pooled, pooled_ref, atol=2e-3), "pooler mismatch"

    pooled_bf = pooled_ref.astype(jnp.bfloat16).astype(jnp.float32)
    locals_ref = jnp.tanh(
        jnp.dot(pooled_bf, params["w_local"].astype(jnp.float32), precision=hp)
        + params["b_local"]
    )
    for i in range(N_BRANCH):
        ref_i = locals_ref[:, i * H:(i + 1) * H]
        assert jnp.allclose(local_outputs[i], ref_i, atol=2e-3), f"branch {i} mismatch"

    print("KERNEL_OK")
</pallas_src>

<mosaic_0001>
module attributes {stable_mosaic.version = 11 : i64} {
  func.func @fused_pooler_branches_kernel(%arg0: i32, %arg1: memref<8x768xbf16, #tpu.memory_space<vmem>>, %arg2: memref<768x768xbf16, #tpu.memory_space<vmem>>, %arg3: memref<1x768xf32, #tpu.memory_space<vmem>>, %arg4: memref<768x2304xbf16, #tpu.memory_space<vmem>>, %arg5: memref<1x2304xf32, #tpu.memory_space<vmem>>, %arg6: memref<8x768xf32, #tpu.memory_space<vmem>>, %arg7: memref<8x2304xf32, #tpu.memory_space<vmem>>) attributes {dimension_semantics = [#tpu.dimension_semantics<arbitrary>], iteration_bounds = array<i64: 2>, scalar_prefetch = 0 : i64, scratch_operands = 0 : i64, tpu.core_type = #tpu.core_type<tc>, window_params = [{pipeline_mode = #tpu.pipeline_mode<synchronous>, transform_indices = @transform_0, window_bounds = array<i64: 8, 768>}, {pipeline_mode = #tpu.pipeline_mode<synchronous>, transform_indices = @transform_1, window_bounds = array<i64: 768, 768>}, {pipeline_mode = #tpu.pipeline_mode<synchronous>, transform_indices = @transform_2, window_bounds = array<i64: 1, 768>}, {transform_indices = @transform_3, window_bounds = array<i64: 768, 2304>}, {transform_indices = @transform_4, window_bounds = array<i64: 1, 2304>}, {pipeline_mode = #tpu.pipeline_mode<synchronous>, transform_indices = @transform_5, window_bounds = array<i64: 8, 768>}, {transform_indices = @transform_6, window_bounds = array<i64: 8, 2304>}]} {
    %c0_i32 = arith.constant 0 : i32
    %0 = arith.cmpi eq, %arg0, %c0_i32 : i32
    %1 = arith.extui %0 : i1 to i32
    %c0_i32_0 = arith.constant 0 : i32
    %2 = arith.cmpi ne, %1, %c0_i32_0 : i32
    scf.if %2 {
      %c0_8 = arith.constant 0 : index
      %c0_9 = arith.constant 0 : index
      %12 = vector.load %arg1[%c0_8, %c0_9] : memref<8x768xbf16, #tpu.memory_space<vmem>>, vector<8x768xbf16>
      %c0_10 = arith.constant 0 : index
      %c0_11 = arith.constant 0 : index
      %13 = vector.load %arg2[%c0_10, %c0_11] : memref<768x768xbf16, #tpu.memory_space<vmem>>, vector<768x768xbf16>
      %cst_12 = arith.constant dense<0.000000e+00> : vector<8x768xf32>
      %14 = tpu.matmul %12, %13, %cst_12 {dimension_numbers = #tpu.dot_dimension_numbers<[1], [0], [0], [1], [0, 0, 1, 1], [], []>} : vector<8x768xbf16>, vector<768x768xbf16>, vector<8x768xf32> -> vector<8x768xf32>
      %c0_13 = arith.constant 0 : index
      %c0_14 = arith.constant 0 : index
      %15 = vector.load %arg3[%c0_13, %c0_14] : memref<1x768xf32, #tpu.memory_space<vmem>>, vector<1x768xf32>
      %16 = vector.broadcast %15 : vector<1x768xf32> to vector<8x768xf32>
      %17 = arith.addf %14, %16 : vector<8x768xf32>
      %18 = math.tanh %17 : vector<8x768xf32>
      %c0_15 = arith.constant 0 : index
      %c0_16 = arith.constant 0 : index
      %19 = vector.load %arg6[%c0_15, %c0_16] : memref<8x768xf32, #tpu.memory_space<vmem>>, vector<8x768xf32>
      tpu.vector_store %arg6[%c0_15, %c0_16], %18 {strides = array<i32>} : memref<8x768xf32, #tpu.memory_space<vmem>>, vector<8x768xf32>,
    } else {
    }
    %c0 = arith.constant 0 : index
    %c0_1 = arith.constant 0 : index
    %3 = vector.load %arg6[%c0, %c0_1] : memref<8x768xf32, #tpu.memory_space<vmem>>, vector<8x768xf32>
    %4 = arith.truncf %3 : vector<8x768xf32> to vector<8x768xbf16>
    %c0_2 = arith.constant 0 : index
    %c0_3 = arith.constant 0 : index
    %5 = vector.load %arg4[%c0_2, %c0_3] : memref<768x2304xbf16, #tpu.memory_space<vmem>>, vector<768x2304xbf16>
    %cst = arith.constant dense<0.000000e+00> : vector<8x2304xf32>
    %6 = tpu.matmul %4, %5, %cst {dimension_numbers = #tpu.dot_dimension_numbers<[1], [0], [0], [1], [0, 0, 1, 1], [], []>} : vector<8x768xbf16>, vector<768x2304xbf16>, vector<8x2304xf32> -> vector<8x2304xf32>
    %c0_4 = arith.constant 0 : index
    %c0_5 = arith.constant 0 : index
    %7 = vector.load %arg5[%c0_4, %c0_5] : memref<1x2304xf32, #tpu.memory_space<vmem>>, vector<1x2304xf32>
    %8 = vector.broadcast %7 : vector<1x2304xf32> to vector<8x2304xf32>
    %9 = arith.addf %6, %8 : vector<8x2304xf32>
    %10 = math.tanh %9 : vector<8x2304xf32>
    %c0_6 = arith.constant 0 : index
    %c0_7 = arith.constant 0 : index
    %11 = vector.load %arg7[%c0_6, %c0_7] : memref<8x2304xf32, #tpu.memory_space<vmem>>, vector<8x2304xf32>
    tpu.vector_store %arg7[%c0_6, %c0_7], %10 {strides = array<i32>} : memref<8x2304xf32, #tpu.memory_space<vmem>>, vector<8x2304xf32>,
    return
  }
  func.func @transform_0(%arg0: i32) -> (i32, i32) {
    %c0_i32 = arith.constant 0 : i32
    %c0_i32_0 = arith.constant 0 : i32
    %c0_i32_1 = arith.constant 0 : i32
    return %c0_i32, %c0_i32_0 : i32, i32
  }
  func.func @transform_1(%arg0: i32) -> (i32, i32) {
    %c0_i32 = arith.constant 0 : i32
    %c0_i32_0 = arith.constant 0 : i32
    %c0_i32_1 = arith.constant 0 : i32
    return %c0_i32, %c0_i32_0 : i32, i32
  }
  func.func @transform_2(%arg0: i32) -> (i32, i32) {
    %c0_i32 = arith.constant 0 : i32
    %c0_i32_0 = arith.constant 0 : i32
    %c0_i32_1 = arith.constant 0 : i32
    return %c0_i32, %c0_i32_0 : i32, i32
  }
  func.func @transform_3(%arg0: i32) -> (i32, i32) {
    %c0_i32 = arith.constant 0 : i32
    %c0_i32_0 = arith.constant 0 : i32
    return %c0_i32, %arg0 : i32, i32
  }
  func.func @transform_4(%arg0: i32) -> (i32, i32) {
    %c0_i32 = arith.constant 0 : i32
    %c0_i32_0 = arith.constant 0 : i32
    return %c0_i32, %arg0 : i32, i32
  }
  func.func @transform_5(%arg0: i32) -> (i32, i32) {
    %c0_i32 = arith.constant 0 : i32
    %c0_i32_0 = arith.constant 0 : i32
    %c0_i32_1 = arith.constant 0 : i32
    return %c0_i32, %c0_i32_0 : i32, i32
  }
  func.func @transform_6(%arg0: i32) -> (i32, i32) {
    %c0_i32 = arith.constant 0 : i32
    %c0_i32_0 = arith.constant 0 : i32
    return %c0_i32, %arg0 : i32, i32
  }
}

</mosaic_0001>

<bundles_post_ra>
// kernel: bert_linear_txt_forward.1
= control target key start
LH: loop header
LB: loop body
LE: loop exit
PB: predicated region body
PF: predicated region fallthrough
CT: control target
= control target key end

     0   :  { %12 = vsyncpa [#allocation3], 0  ;;  %s13656_s0 = inlined_call_operand.vmem [shape: bf16[8,768], index: 0, kind: input, shape index: {}]   ;;  %s13657_s1 = inlined_call_operand.hbm [shape: bf16[768,768], index: 1, kind: input, shape index: {}]   ;;  %s13658_s2 = inlined_call_operand.hbm [shape: f32[1,768], index: 2, kind: input, shape index: {}]   ;;  %s13659_s3 = inlined_call_operand.hbm [shape: bf16[768,4608], index: 3, kind: input, shape index: {}]   ;;  %s13660_s4 = inlined_call_operand.hbm [shape: f32[1,4608], index: 4, kind: input, shape index: {}]   ;;  %s13661_s5 = inlined_call_operand.vmem [shape: f32[8,768], index: 5, kind: output, shape index: {0}]   ;;  %s13662_s6 = inlined_call_operand.vmem [shape: f32[8,4608], index: 6, kind: output, shape index: {1}]  }
   0x1   :  { %13 = vsyncpa [#allocation5], 0  ;;  %s12277_s21 = smov 0   ;;  %s12279_s22 = smov 0  }
   0x2   :  { %s12281_s23 = smov 0   ;;  %s12283_s24 = smov 0  }
   0x3 LB: > { %s12296_s25 = sadd.s32 4294967295, %s12231_s24   ;;  %s12299_s26 = sadd.s32 1, %s12231_s24   ;;  %s12231_s24 = sphi %s12283_s24, %s13684_s24   ;;  %s12227_s23 = sphi %s12281_s23, %s13688_s23   ;;  %s12223_s22 = sphi %s12279_s22, %s13687_s22   ;;  %s12219_s21 = sphi %s12277_s21, %s13686_s21  }
   0x4   : > { %13669 = sst [smem:[#allocation11_spill]] %s12299_s26  ;;  %s86_s27 = ssub.s32 %s12231_s24, %s12299_s26 }
   0x5   : > { %s89_s28 = sadd.s32 1, %s12227_s23  ;;  %p87_p0 = scmp.eq.s32.totalorder %s86_s27, 0 }
   0x6   : > { %p96_p1 = scmp.ne.s32.totalorder %s12227_s23, %s12223_s22  ;;  %p97_p2 = scmp.eq.s32.totalorder %s12231_s24, 0 }
   0x7   : > { %p102_p3 = scmp.ne.s32.totalorder %s12223_s22, %s12219_s21  ;;  %p13663_p5 = scmp.eq.s32.totalorder %s12296_s25, 0 }
   0x8   : > { %s12309_s29 = scalar_select %p87_p0, %s12227_s23, %s89_s28  }
   0x9   : > { %p12311_p4 = por %p97_p2, %p96_p1  ;;  %p9051_p6 = scmp.ge.s32.totalorder %s12231_s24, 1 }
   0xa   : > { %13670 = sst [smem:[#allocation12_spill]] %s12309_s29  ;;  %p186_p7 = scmp.lt.s32.totalorder %s12231_s24, 3 }
   0xb   : > { %p12320_p8 = por %p13663_p5, %p102_p3  ;;  %s12233_s9 = smov [#allocation2]  }
   0xc   : > { %p12325_p10 = pnand %p9051_p6, %p186_p7  ;;  %s201_s10 = sshll.u32 %s12233_s9, 4  ;;  %s202_s10 = int_to_ptr.vmem [resolvable:$true] %s201_s10 }
   0xd   : > { %s13672_s7 = scalar_select %p12320_p8, 1, 0 }
   0xe   : > { %s13673_s8 = scalar_select %p12325_p10, 1, 0 }
   0xf   : > { %p10240_p11 = pneg %p12325_p10  ;;  %p10256_p13 = scmp.lt.s32.totalorder %s12231_s24, 2 }
  0x10   : > { %s226_s12 = sand.u32 1, %s12231_s24   ;;  %s228_s13 = sand.u32 1, %s12227_s23  }
  0x11   : > { %p12333_p12 = pnand %p10240_p11, %p13663_p5  ;;  %p12342_p0 = pnand %p10256_p13, %p12311_p4 }
  0x12   : > { %s12092_s15 = scalar_lea.vmem %s202_s10, 36864  ;;  %p12100_p7 = scmp.lt.s32.totalorder %s202_s10, %s202_s10 }
  0x13   : > { %p13666_p1 = pneg %p12333_p12  ;;  %p12093_p2 = scmp.ne.s32.totalorder %s202_s10, %s12092_s15 }
  0x14   : > { %p12101_p11 = scmp.lt.s32.totalorder %s12092_s15, %s12092_s15 }
  0x15   : > { %p12095_p3 = pnand %p12093_p2, %p13666_p1 }
  0x16   : > { %p12102_p9 = por %p12101_p11, %p12100_p7 }
  0x17   : > { %p12096_p6 = pneg %p12095_p3 }
  0x19   : > { %p12103_p5 = pnand %p12102_p9, %p12096_p6 }
  0x1b   : > { %12106 = shalt.err (!%p12103_p5)
}
  0x1c   : > { %s12234_s16 = smov 384   ;;  %s12235_s17 = smov 24  }
  0x1d   : > { %10243 = dma.hbm_to_vmem [thread:$0]  (!%p12333_p12), %s13657_s1, 36864, %s202_s10, [#allocation3], %s12234_s16, %s12234_s16, %s12235_s17  }
  0x1e   : > { %s10224_s20 = smul.u32 6912, %s228_s13  ;;  %s12366_s29 = scalar_lea.sflag [#allocation3], %s226_s12 }
  0x1f   : > { %s10222_s21 = smul.u32 1152, %s12231_s24  ;;  %p12109_p5 = pneg %p12342_p0 }
  0x20   : > { %s230_s9 = scalar_lea.vmem [#allocation6], %s10224_s20  ;;  %s12112_s17 = scalar_lea.hbm %s13659_s3, 221184 }
  0x21   : > { %s12362_s30 = scalar_lea.hbm %s13659_s3, %s10222_s21  ;;  %s237_s15 = sshll.u32 %s230_s9, 4  ;;  %s12364_s15 = int_to_ptr.vmem [resolvable:$true] %s237_s15 }
  0x22   : > { %s12107_s26 = scalar_lea.hbm %s12362_s30, 110592  ;;  %p12113_p2 = scmp.lt.s32.totalorder %s12362_s30, %s13659_s3 }
  0x23   : > { %p12108_p4 = scmp.ne.s32.totalorder %s12362_s30, %s12107_s26  ;;  %p12114_p3 = scmp.lt.s32.totalorder %s12112_s17, %s12107_s26 }
  0x25   : > { %p12110_p9 = pnand %p12109_p5, %p12108_p4  ;;  %p12115_p6 = por %p12114_p3, %p12113_p2 }
  0x27   : > { %p12111_p13 = pneg %p12110_p9 }
  0x29   : > { %p12116_p7 = pnand %p12115_p6, %p12111_p13 }
  0x2b   : > { %12119 = shalt.err (!%p12116_p7)
}
  0x2c   : > { %s12120_s12 = scalar_lea.vmem %s12364_s15, 110592  ;;  %s12236_s20 = smov [#allocation6]  }
  0x2d   : > { %p12121_p11 = scmp.ne.s32.totalorder %s12364_s15, %s12120_s12  ;;  %s12125_s21 = sshll.u32 %s12236_s20, 4  ;;  %s12126_s21 = int_to_ptr.vmem [resolvable:$false] %s12125_s21 }
  0x2e   : > { %s12127_s27 = scalar_lea.vmem %s12126_s21, 221184  ;;  %p12128_p1 = scmp.lt.s32.totalorder %s12364_s15, %s12126_s21 }
  0x2f   : > { %p12123_p4 = pnand %p12121_p11, %p12109_p5  ;;  %p12129_p8 = scmp.lt.s32.totalorder %s12127_s27, %s12120_s12 }
  0x31   : > { %p12124_p9 = pneg %p12123_p4  ;;  %p12130_p10 = por %p12129_p8, %p12128_p1 }
  0x33   : > { %p12131_p2 = pnand %p12130_p10, %p12124_p9 }
  0x35   : > { %12134 = shalt.err (!%p12131_p2)
}
  0x36   : > { %s12237_s26 = smov 2304   ;;  %s12238_s28 = smov 1152  }
  0x37   : > { %s12239_s9 = smov 72   ;;  %s12240_s10 = smov [#allocation4]  }
  0x38   : > { %10250 = dma.hbm_to_vmem [thread:$0]  (!%p12342_p0), %s12362_s30, 110592, %s12364_s15, %s12366_s29, %s12237_s26, %s12238_s28, %s12239_s9  }
  0x39   : > { %s215_s16 = sshll.u32 %s12240_s10, 4  ;;  %s10225_s17 = smul.u32 18, %s228_s13  ;;  %s216_s16 = int_to_ptr.vmem [resolvable:$true] %s215_s16 }
  0x3a   : > { %s10223_s18 = smul.u32 288, %s12231_s24  ;;  %s12146_s19 = scalar_lea.vmem %s216_s16, 96 }
  0x3b   : > { %p12147_p8 = scmp.ne.s32.totalorder %s216_s16, %s12146_s19  ;;  %p13676_p10 = pneg %p12333_p12 }
  0x3c   : > { %p12154_p3 = scmp.lt.s32.totalorder %s216_s16, %s216_s16  ;;  %p12155_p6 = scmp.lt.s32.totalorder %s12146_s19, %s12146_s19 }
  0x3d   : > { %p12149_p1 = pnand %p12147_p8, %p13676_p10 }
  0x3e   : > { %p12156_p7 = por %p12155_p6, %p12154_p3 }
  0x3f   : > { %p12150_p13 = pneg %p12149_p1 }
  0x41   : > { %p12157_p11 = pnand %p12156_p7, %p12150_p13 }
  0x43   : > { %12160 = shalt.err (!%p12157_p11)
}
  0x44   : > { %10246 = dma.hbm_to_vmem [thread:$0]  (!%p12333_p12), %s13658_s2, 96, %s216_s16, [#allocation5]  }
  0x45   : > { %s257_s12 = scalar_lea.hbm %s13660_s4, %s10223_s18  ;;  %s251_s20 = scalar_lea.vmem [#allocation7], %s10225_s17 }
  0x46   : > { %s259_s21 = sshll.u32 %s251_s20, 4  ;;  %s12161_s27 = scalar_lea.hbm %s257_s12, 288  ;;  %s260_s21 = int_to_ptr.vmem [resolvable:$true] %s259_s21 }
  0x47   : > { %p12162_p4 = scmp.ne.s32.totalorder %s257_s12, %s12161_s27  ;;  %s12166_s28 = scalar_lea.hbm %s13660_s4, 576 }
  0x48   : > { %p12167_p12 = scmp.lt.s32.totalorder %s257_s12, %s13660_s4  ;;  %p12168_p8 = scmp.lt.s32.totalorder %s12166_s28, %s12161_s27 }
  0x49   : > { %p12164_p9 = pnand %p12162_p4, %p12109_p5 }
  0x4a   : > { %p12169_p10 = por %p12168_p8, %p12167_p12 }
  0x4b   : > { %p12165_p2 = pneg %p12164_p9 }
  0x4d   : > { %p12170_p1 = pnand %p12169_p10, %p12165_p2 }
  0x4f   : > { %12173 = shalt.err (!%p12170_p1)
}
  0x50   : > { %s12174_s16 = scalar_lea.vmem %s260_s21, 288  ;;  %s12241_s17 = smov [#allocation7]  }
  0x51   : > { %p12175_p13 = scmp.ne.s32.totalorder %s260_s21, %s12174_s16  ;;  %s12179_s18 = sshll.u32 %s12241_s17, 4  ;;  %s12180_s18 = int_to_ptr.vmem [resolvable:$false] %s12179_s18 }
  0x52   : > { %s12181_s19 = scalar_lea.vmem %s12180_s18, 576  ;;  %p12182_p7 = scmp.lt.s32.totalorder %s260_s21, %s12180_s18 }
  0x53   : > { %p12177_p3 = pnand %p12175_p13, %p12109_p5  ;;  %p12183_p11 = scmp.lt.s32.totalorder %s12181_s19, %s12174_s16 }
  0x55   : > { %p12178_p6 = pneg %p12177_p3  ;;  %p12184_p4 = por %p12183_p11, %p12182_p7 }
  0x57   : > { %p12185_p9 = pnand %p12184_p4, %p12178_p6 }
  0x59   : > { %12188 = shalt.err (!%p12185_p9)
}
  0x5a   : > { %10253 = dma.hbm_to_vmem [thread:$0]  (!%p12342_p0), %s257_s12, 288, %s260_s21, %s12366_s29  }
  0x5b   : > { %p13677_p2 = scmp.ne.s32.totalorder %s13673_s8, 0 }
  0x5c   : > { %p13678_p12 = scmp.eq.s32.totalorder (!%p13677_p2), %s12296_s25, 0 }
  0x5d   : > { %268 = sbr.rel (%p13677_p2) target bundleno = 1758 (0x6de), region = 40 }
  0x62   : > { %12206 = dma.done.wait (%p13678_p12), [#allocation3], 36864   ;;  %p13679_p5 = pmov %p13678_p12 }
  0x64   : > { %12208 = vsyncadd (%p13679_p5), [#allocation3], 4294930432  ;;  %p13680_p8 = pmov %p13679_p5 }
  0x65   : > { %p13681_p10 = pmov %p13679_p5 }
  0x66   : > { %12210 = dma.done.wait (%p13680_p8), [#allocation5], 96  }
  0x67   : > { %12212 = vsyncadd (%p13681_p10), [#allocation5], 4294967200  ;;  %s278_s14 = sand.u32 1, %s12296_s25   ;;  %s280_s29 = sand.u32 1, %s12223_s22  }
  0x68   : > { %s10226_s30 = smul.u32 6912, %s280_s29  ;;  %s279_s8 = scalar_lea.sflag [#allocation3], %s278_s14 }
  0x69   : > { %p13682_p0 = scmp.ne.s32.totalorder %s13672_s7, 0 }
  0x6a   : > { %s12434_s15 = scalar_lea.vmem [#allocation6], %s10226_s30 }
  0x6b   : > { %12214 = dma.done.wait (%p13682_p0), %s279_s8, 110880  }
  0x6c   : > { %12216 = vsyncadd (%p13682_p0), %s279_s8, 4294856416  ;;  %s10227_s13 = smul.u32 18, %s280_s29  ;;  %p13683_p13 = scmp.ne.s32.totalorder %s12296_s25, 0 }
  0x6d   : > { %s327_s24 = smul.u32 18, %s12296_s25 }
  0x6e   : > { %s12446_s26 = scalar_lea.vmem [#allocation7], %s10227_s13 }
  0x6f   : > { %p328_p1 = scmp.lt.s32.totalorder %s327_s24, 35  ;;  %336 = sbr.rel (%p13683_p13) target bundleno = 649 (0x289), region = 60 }
  0x71   : > { %s13690_s24 = smov (!%p328_p1, %s327_s24), 35 }
  0x72   : > { %s9060_s12 = sshll.u32 %s13690_s24, 3 }
  0x73   : > { %s12444_s27 = scalar_lea.vmem %s13662_s6, %s9060_s12 }
  0x74   : > { %v10298_v0 = vld [vmem:[#allocation2 + $0x154] ss:$24 sps:$4 sm:$0xff]   ;;  %v10300_v1 = vld [vmem:[#allocation2 + $0x150] ss:$24 sps:$4 sm:$0xff]   ;;  %v10304_v4 = vld [vmem:[#allocation2 + $0x124] ss:$24 sps:$4 sm:$0xff]  }
  0x75   : > { %2121 = vmatprep.subr.bf16.mxu0 %v10298_v0  ;;  %v10301_v2 = vld [vmem:[#allocation2 + $0x454] ss:$24 sps:$4 sm:$0xff]   ;;  %v10303_v3 = vld [vmem:[#allocation2 + $0x450] ss:$24 sps:$4 sm:$0xff]   ;;  %v10306_v5 = vld [vmem:[#allocation2 + $0x120] ss:$24 sps:$4 sm:$0xff]  }
  0x76   : > { %2122 = vmatpush1.bf16.msra.mxu0 %v10300_v1  ;;  %2162 = vmatprep.subr.bf16.mxu1 %v10301_v2  ;;  %v10307_v6 = vld [vmem:[#allocation2 + $0x424] ss:$24 sps:$4 sm:$0xff]   ;;  %v10309_v7 = vld [vmem:[#allocation2 + $0x420] ss:$24 sps:$4 sm:$0xff]   ;;  %v10310_v8 = vld [vmem:[#allocation2 + $0xf4] ss:$24 sps:$4 sm:$0xff]  }
  0x77   : > { %2163 = vmatpush1.bf16.msra.mxu1 %v10303_v3  ;;  %2123 = vmatprep.subr.bf16.mxu0 %v10304_v4  ;;  %v10312_v9 = vld [vmem:[#allocation2 + $0xf0] ss:$24 sps:$4 sm:$0xff]   ;;  %v10313_v10 = vld [vmem:[#allocation2 + $0x3f4] ss:$24 sps:$4 sm:$0xff]   ;;  %v10316_v11 = vld [vmem:[#allocation2 + $0xc4] ss:$24 sps:$4 sm:$0xff]  }
  0x78   : > { %2164 = vmatprep.subr.bf16.mxu1 %v10307_v6  ;;  %v10315_v12 = vld [vmem:[#allocation2 + $0x3f0] ss:$24 sps:$4 sm:$0xff]   ;;  %v10319_v13 = vld [vmem:[#allocation2 + $0x3c4] ss:$24 sps:$4 sm:$0xff]   ;;  %v10318_v14 = vld [vmem:[#allocation2 + $0xc0] ss:$24 sps:$4 sm:$0xff]  }
  0x79   : > { %v10322_v15 = vld [vmem:[#allocation2 + $0x94] ss:$24 sps:$4 sm:$0xff]   ;;  %v10321_v16 = vld [vmem:[#allocation2 + $0x3c0] ss:$24 sps:$4 sm:$0xff]   ;;  %v10324_v18 = vld [vmem:[#allocation2 + $0x90] ss:$24 sps:$4 sm:$0xff]  }
  0x7a   : > { %2124 = vmatpush1.bf16.msra.mxu0 %v10306_v5  ;;  %v10325_v17 = vld [vmem:[#allocation2 + $0x394] ss:$24 sps:$4 sm:$0xff]   ;;  %v10328_v19 = vld [vmem:[#allocation2 + $0x64] ss:$24 sps:$4 sm:$0xff]   ;;  %v10327_v20 = vld [vmem:[#allocation2 + $0x390] ss:$24 sps:$4 sm:$0xff]  }
  0x7b   : > { %2125 = vmatprep.subr.bf16.mxu0 %v10310_v8  ;;  %2165 = vmatpush1.bf16.msra.mxu1 %v10309_v7  ;;  %v10331_v21 = vld [vmem:[#allocation2 + $0x364] ss:$24 sps:$4 sm:$0xff]   ;;  %v10330_v22 = vld [vmem:[#allocation2 + $0x60] ss:$24 sps:$4 sm:$0xff]   ;;  %v10334_v23 = vld [vmem:[#allocation2 + $0x34] ss:$24 sps:$4 sm:$0xff]  }
  0x7c   : > { %2166 = vmatprep.subr.bf16.mxu1 %v10313_v10  ;;  %v10333_v24 = vld [vmem:[#allocation2 + $0x360] ss:$24 sps:$4 sm:$0xff]   ;;  %v10337_v25 = vld [vmem:[#allocation2 + $0x334] ss:$24 sps:$4 sm:$0xff]   ;;  %v10336_v26 = vld [vmem:[#allocation2 + $0x30] ss:$24 sps:$4 sm:$0xff]  }
  0x7d   : > { %v10340_v27 = vld [vmem:[#allocation2 + $0x4] ss:$24 sps:$4 sm:$0xff]   ;;  %v10339_v28 = vld [vmem:[#allocation2 + $0x330] ss:$24 sps:$4 sm:$0xff]   ;;  %v10342_v30 = vld [vmem:[#allocation2] ss:$24 sps:$4 sm:$0xff]  }
  0x7e   : > { %2126 = vmatpush1.bf16.msra.mxu0 %v10312_v9  ;;  %v10343_v29 = vld [vmem:[#allocation2 + $0x304] ss:$24 sps:$4 sm:$0xff]   ;;  %v10346_v31 = vld [vmem:[#allocation2 + $0x2d4] ss:$24 sps:$4 sm:$0xff]   ;;  %v10345_v32 = vld [vmem:[#allocation2 + $0x300] ss:$24 sps:$4 sm:$0xff]  }
  0x7f   : > { %2127 = vmatprep.subr.bf16.mxu0 %v10316_v11  ;;  %2167 = vmatpush1.bf16.msra.mxu1 %v10315_v12  ;;  %v10349_v33 = vld [vmem:[#allocation2 + $0x5d4] ss:$24 sps:$4 sm:$0xff]   ;;  %v10348_v34 = vld [vmem:[#allocation2 + $0x2d0] ss:$24 sps:$4 sm:$0xff]   ;;  %v10352_v35 = vld [vmem:[#allocation2 + $0x2a4] ss:$24 sps:$4 sm:$0xff]  }
  0x80   : > { %2168 = vmatprep.subr.bf16.mxu1 %v10319_v13  ;;  %v10351_v36 = vld [vmem:[#allocation2 + $0x5d0] ss:$24 sps:$4 sm:$0xff]   ;;  %v10355_v37 = vld [vmem:[#allocation2 + $0x5a4] ss:$24 sps:$4 sm:$0xff]   ;;  %v10354_v38 = vld [vmem:[#allocation2 + $0x2a0] ss:$24 sps:$4 sm:$0xff]  }
  0x81   : > { %v10358_v39 = vld [vmem:[#allocation2 + $0x274] ss:$24 sps:$4 sm:$0xff]   ;;  %v10357_v40 = vld [vmem:[#allocation2 + $0x5a0] ss:$24 sps:$4 sm:$0xff]   ;;  %v10360_v42 = vld [vmem:[#allocation2 + $0x270] ss:$24 sps:$4 sm:$0xff]  }
  0x82   : > { %2128 = vmatpush1.bf16.msra.mxu0 %v10318_v14  ;;  %v10361_v41 = vld [vmem:[#allocation2 + $0x574] ss:$24 sps:$4 sm:$0xff]   ;;  %v10364_v43 = vld [vmem:[#allocation2 + $0x244] ss:$24 sps:$4 sm:$0xff]   ;;  %v10363_v44 = vld [vmem:[#allocation2 + $0x570] ss:$24 sps:$4 sm:$0xff]  }
  0x83   : > { %2129 = vmatprep.subr.bf16.mxu0 %v10322_v15  ;;  %2169 = vmatpush1.bf16.msra.mxu1 %v10321_v16  ;;  %v10367_v45 = vld [vmem:[#allocation2 + $0x544] ss:$24 sps:$4 sm:$0xff]   ;;  %v10366_v47 = vld [vmem:[#allocation2 + $0x240] ss:$24 sps:$4 sm:$0xff]   ;;  %v10370_v49 = vld [vmem:[#allocation2 + $0x214] ss:$24 sps:$4 sm:$0xff]  }
  0x84   : > { %2170 = vmatprep.subr.bf16.mxu1 %v10325_v17  ;;  %v337_v46 = vld [vmem:[%s13656_s0] sm:$0xff]  ;;  %v338_v50 = vld [vmem:[%s13656_s0 + $0x8] sm:$0xff]  ;;  %v10403_v6 = vld [vmem:[#allocation2 + $0x15c] ss:$24 sps:$4 sm:$0xff]  }
  0x85   : > { %v12453_v48 = vcombine.high %v337_v46, %v337_v46  ;;  %v10369_v51 = vld [vmem:[#allocation2 + $0x540] ss:$24 sps:$4 sm:$0xff]   ;;  %v12459_v52 = vcombine.high %v338_v50, %v338_v50  ;;  %v10373_v53 = vld [vmem:[#allocation2 + $0x514] ss:$24 sps:$4 sm:$0xff]   ;;  %v10372_v54 = vld [vmem:[#allocation2 + $0x210] ss:$24 sps:$4 sm:$0xff]   ;;  %v12462_v5 = vcombine.low %v337_v46, %v337_v46  ;;  %v12464_v8 = vcombine.low %v338_v50, %v338_v50 }
  0x86   : > { %2130 = vmatpush1.bf16.msra.mxu0 %v10324_v18  ;;  %v10376_v55 = vld [vmem:[#allocation2 + $0x1e4] ss:$24 sps:$4 sm:$0xff]   ;;  %v10375_v56 = vld [vmem:[#allocation2 + $0x510] ss:$24 sps:$4 sm:$0xff]   ;;  %v10378_v58 = vld [vmem:[#allocation2 + $0x1e0] ss:$24 sps:$4 sm:$0xff]  }
  0x87   : > { %2131 = vmatprep.subr.bf16.mxu0 %v10328_v19  ;;  %2171 = vmatpush1.bf16.msra.mxu1 %v10327_v20  ;;  %v10379_v57 = vld [vmem:[#allocation2 + $0x4e4] ss:$24 sps:$4 sm:$0xff]   ;;  %v10382_v59 = vld [vmem:[#allocation2 + $0x1b4] ss:$24 sps:$4 sm:$0xff]   ;;  %v10381_v60 = vld [vmem:[#allocation2 + $0x4e0] ss:$24 sps:$4 sm:$0xff]  }
  0x88   : > { %2172 = vmatprep.subr.bf16.mxu1 %v10331_v21  ;;  %2153 = vmatprep.mubr.bf16.mxu0 %v12453_v48  ;;  %v10385_v61 = vld [vmem:[#allocation2 + $0x4b4] ss:$24 sps:$4 sm:$0xff]   ;;  %v10384_v62 = vld [vmem:[#allocation2 + $0x1b0] ss:$24 sps:$4 sm:$0xff]   ;;  %v10388_v63 = vld [vmem:[#allocation2 + $0x184] ss:$24 sps:$4 sm:$0xff]  }
  0x89   : > { %2194 = vmatprep.mubr.bf16.mxu1 %v12459_v52  ;;  %v10387_v0 = vld [vmem:[#allocation2 + $0x4b0] ss:$24 sps:$4 sm:$0xff]   ;;  %v10391_v1 = vld [vmem:[#allocation2 + $0x484] ss:$24 sps:$4 sm:$0xff]   ;;  %v10390_v2 = vld [vmem:[#allocation2 + $0x180] ss:$24 sps:$4 sm:$0xff]  }
  0x8a   : > { %2132 = vmatpush1.bf16.msra.mxu0 %v10330_v22  ;;  %v10398_v3 = vld [vmem:[#allocation2 + $0x754] ss:$24 sps:$4 sm:$0xff]   ;;  %v10394_v4 = vld [vmem:[#allocation2 + $0x480] ss:$24 sps:$4 sm:$0xff]   ;;  %v10396_v7 = vld [vmem:[#allocation2 + $0x750] ss:$24 sps:$4 sm:$0xff]  }
  0x8b   : > { %2133 = vmatprep.subr.bf16.mxu0 %v10334_v23  ;;  %2173 = vmatpush1.bf16.msra.mxu1 %v10333_v24  ;;  %v10406_v9 = vld [vmem:[#allocation2 + $0x724] ss:$24 sps:$4 sm:$0xff]   ;;  %v10401_v10 = vld [vmem:[#allocation2 + $0x158] ss:$24 sps:$4 sm:$0xff]   ;;  %v10412_v13 = vld [vmem:[#allocation2 + $0x6f4] ss:$24 sps:$4 sm:$0xff]  }
  0x8c   : > { %2174 = vmatprep.subr.bf16.mxu1 %v10337_v25  ;;  %v10409_v11 = vld [vmem:[#allocation2 + $0x12c] ss:$24 sps:$4 sm:$0xff]   ;;  %v10404_v12 = vld [vmem:[#allocation2 + $0x720] ss:$24 sps:$4 sm:$0xff]   ;;  %v10415_v15 = vld [vmem:[#allocation2 + $0xfc] ss:$24 sps:$4 sm:$0xff]  }
  0x8d   : > { %v10407_v14 = vld [vmem:[#allocation2 + $0x128] ss:$24 sps:$4 sm:$0xff]   ;;  %v10418_v17 = vld [vmem:[#allocation2 + $0x6c4] ss:$24 sps:$4 sm:$0xff]   ;;  %v10413_v18 = vld [vmem:[#allocation2 + $0xf8] ss:$24 sps:$4 sm:$0xff]  }
  0x8e   : > { %2134 = vmatpush1.bf16.msra.mxu0 %v10336_v26  ;;  %v10410_v16 = vld [vmem:[#allocation2 + $0x6f0] ss:$24 sps:$4 sm:$0xff]   ;;  %v10421_v19 = vld [vmem:[#allocation2 + $0xcc] ss:$24 sps:$4 sm:$0xff]   ;;  %v10416_v20 = vld [vmem:[#allocation2 + $0x6c0] ss:$24 sps:$4 sm:$0xff]  }
  0x8f   : > { %2135 = vmatprep.subr.bf16.mxu0 %v10340_v27  ;;  %2175 = vmatpush1.bf16.msra.mxu1 %v10339_v28  ;;  %v10424_v21 = vld [vmem:[#allocation2 + $0x694] ss:$24 sps:$4 sm:$0xff]   ;;  %v10419_v22 = vld [vmem:[#allocation2 + $0xc8] ss:$24 sps:$4 sm:$0xff]   ;;  %v10430_v25 = vld [vmem:[#allocation2 + $0x664] ss:$24 sps:$4 sm:$0xff]  }
  0x90   : > { %2176 = vmatprep.subr.bf16.mxu1 %v10343_v29  ;;  %v10427_v23 = vld [vmem:[#allocation2 + $0x9c] ss:$24 sps:$4 sm:$0xff]   ;;  %v10422_v24 = vld [vmem:[#allocation2 + $0x690] ss:$24 sps:$4 sm:$0xff]   ;;  %v10433_v27 = vld [vmem:[#allocation2 + $0x6c] ss:$24 sps:$4 sm:$0xff]  }
  0x91   : > { %v10425_v26 = vld [vmem:[#allocation2 + $0x98] ss:$24 sps:$4 sm:$0xff]   ;;  %v10436_v29 = vld [vmem:[#allocation2 + $0x634] ss:$24 sps:$4 sm:$0xff]  }
  0x92   : > { %2136 = vmatpush1.bf16.msra.mxu0 %v10342_v30  ;;  %v10428_v28 = vld [vmem:[#allocation2 + $0x660] ss:$24 sps:$4 sm:$0xff]   ;;  %v10463_v50 = vld [vmem:[#allocation2 + $0x27c] ss:$24 sps:$4 sm:$0xff]  }
  0x93   : > { %2137 = vmatprep.subr.bf16.mxu0 %v10346_v31  ;;  %2177 = vmatpush1.bf16.msra.mxu1 %v10345_v32  ;;  %v10431_v30 = vld [vmem:[#allocation2 + $0x68] ss:$24 sps:$4 sm:$0xff]   ;;  %v10439_v31 = vld [vmem:[#allocation2 + $0x3c] ss:$24 sps:$4 sm:$0xff]  }
  0x94   : > { %2178 = vmatprep.subr.bf16.mxu1 %v10349_v33  ;;  %v12472_v32 = vld [vmem:[%s13656_s0 + $0x10] sm:$0xff]  ;;  %v10452_v46 = vld [vmem:[#allocation2 + $0x8a0] ss:$24 sps:$4 sm:$0xff]  }
  0x95   : > { %v10434_v33 = vld [vmem:[#allocation2 + $0x630] ss:$24 sps:$4 sm:$0xff]  }
  0x96   : > { %2138 = vmatpush2.bf16.msra.mxu0 %v10348_v34  ;;  %v12476_v34 = vcombine.high %v12472_v32, %v12472_v32 }
  0x97   : > { %2139 = vmatprep.subr.bf16.mxu0 %v10352_v35  ;;  %2179 = vmatpush2.bf16.msra.mxu1 %v10351_v36  ;;  %v10442_v35 = vld [vmem:[#allocation2 + $0x604] ss:$24 sps:$4 sm:$0xff]   ;;  %v10437_v36 = vld [vmem:[#allocation2 + $0x38] ss:$24 sps:$4 sm:$0xff]  }
  0x98   : > { %2180 = vmatprep.subr.bf16.mxu1 %v10355_v37  ;;  %v10445_v37 = vld [vmem:[#allocation2 + $0xc] ss:$24 sps:$4 sm:$0xff]  }
  0x9a   : > { %2140 = vmatpush2.bf16.msra.mxu0 %v10354_v38  ;;  %v10440_v38 = vld [vmem:[#allocation2 + $0x600] ss:$24 sps:$4 sm:$0xff]  }
  0x9b   : > { %2141 = vmatprep.subr.bf16.mxu0 %v10358_v39  ;;  %2181 = vmatpush2.bf16.msra.mxu1 %v10357_v40  ;;  %v10448_v39 = vld [vmem:[#allocation2 + $0x8d4] ss:$24 sps:$4 sm:$0xff]   ;;  %v10443_v40 = vld [vmem:[#allocation2 + $0x8] ss:$24 sps:$4 sm:$0xff]  }
  0x9c   : > { %2182 = vmatprep.subr.bf16.mxu1 %v10361_v41  ;;  %v10451_v41 = vld [vmem:[#allocation2 + $0x2dc] ss:$24 sps:$4 sm:$0xff]  }
  0x9e   : > { %2142 = vmatpush2.bf16.msra.mxu0 %v10360_v42  ;;  %v10446_v42 = vld [vmem:[#allocation2 + $0x8d0] ss:$24 sps:$4 sm:$0xff]  }
  0x9f   : > { %2143 = vmatprep.subr.bf16.mxu0 %v10364_v43  ;;  %2183 = vmatpush2.bf16.msra.mxu1 %v10363_v44  ;;  %v10454_v43 = vld [vmem:[#allocation2 + $0x8a4] ss:$24 sps:$4 sm:$0xff]   ;;  %v10449_v44 = vld [vmem:[#allocation2 + $0x2d8] ss:$24 sps:$4 sm:$0xff]  }
  0xa0   : > { %2184 = vmatprep.subr.bf16.mxu1 %v10367_v45  ;;  %v10457_v45 = vld [vmem:[#allocation2 + $0x2ac] ss:$24 sps:$4 sm:$0xff]  }
  0xa2   : > { %2144 = vmatpush2.bf16.msra.mxu0 %v10366_v47  ;;  %v10460_v47 = vld [vmem:[#allocation2 + $0x874] ss:$24 sps:$4 sm:$0xff]  }
  0xa3   : > { %2145 = vmatprep.subr.bf16.mxu0 %v10370_v49  ;;  %2185 = vmatpush2.bf16.msra.mxu1 %v10369_v51  ;;  %v10455_v49 = vld [vmem:[#allocation2 + $0x2a8] ss:$24 sps:$4 sm:$0xff]  }
  0xa4   : > { %2186 = vmatprep.subr.bf16.mxu1 %v10373_v53  ;;  %v10458_v51 = vld [vmem:[#allocation2 + $0x870] ss:$24 sps:$4 sm:$0xff]   ;;  %v10466_v53 = vld [vmem:[#allocation2 + $0x844] ss:$24 sps:$4 sm:$0xff]  }
  0xa6   : > { %2146 = vmatpush2.bf16.msra.mxu0 %v10372_v54  ;;  %v10461_v54 = vld [vmem:[#allocation2 + $0x278] ss:$24 sps:$4 sm:$0xff]  }
  0xa7   : > { %2147 = vmatprep.subr.bf16.mxu0 %v10376_v55  ;;  %2187 = vmatpush2.bf16.msra.mxu1 %v10375_v56  ;;  %v10469_v55 = vld [vmem:[#allocation2 + $0x24c] ss:$24 sps:$4 sm:$0xff]   ;;  %v10464_v56 = vld [vmem:[#allocation2 + $0x840] ss:$24 sps:$4 sm:$0xff]  }
  0xa8   : > { %2188 = vmatprep.subr.bf16.mxu1 %v10379_v57  ;;  %v10472_v57 = vld [vmem:[#allocation2 + $0x814] ss:$24 sps:$4 sm:$0xff]  }
  0xaa   : > { %2148 = vmatpush2.bf16.msra.mxu0 %v10378_v58  ;;  %v10467_v58 = vld [vmem:[#allocation2 + $0x248] ss:$24 sps:$4 sm:$0xff]  }
  0xab   : > { %2149 = vmatprep.subr.bf16.mxu0 %v10382_v59  ;;  %2189 = vmatpush2.bf16.msra.mxu1 %v10381_v60  ;;  %v10475_v59 = vld [vmem:[#allocation2 + $0x21c] ss:$24 sps:$4 sm:$0xff]   ;;  %v10470_v60 = vld [vmem:[#allocation2 + $0x810] ss:$24 sps:$4 sm:$0xff]  }
  0xac   : > { %2190 = vmatprep.subr.bf16.mxu1 %v10385_v61  ;;  %v10478_v61 = vld [vmem:[#allocation2 + $0x7e4] ss:$24 sps:$4 sm:$0xff]  }
  0xae   : > { %2150 = vmatpush2.bf16.msra.mxu0 %v10384_v62  ;;  %v10473_v62 = vld [vmem:[#allocation2 + $0x218] ss:$24 sps:$4 sm:$0xff]  }
  0xaf   : > { %2151 = vmatprep.subr.bf16.mxu0 %v10388_v63  ;;  %2191 = vmatpush2.bf16.msra.mxu1 %v10387_v0  ;;  %v10481_v63 = vld [vmem:[#allocation2 + $0x1ec] ss:$24 sps:$4 sm:$0xff]   ;;  %v10476_v0 = vld [vmem:[#allocation2 + $0x7e0] ss:$24 sps:$4 sm:$0xff]  }
  0xb0   : > { %2192 = vmatprep.subr.bf16.mxu1 %v10391_v1  ;;  %v10484_v1 = vld [vmem:[#allocation2 + $0x7b4] ss:$24 sps:$4 sm:$0xff]  }
  0xb2   : > { %2152 = vmatpush2.bf16.msra.mxu0 %v10390_v2  ;;  %v10479_v2 = vld [vmem:[#allocation2 + $0x1e8] ss:$24 sps:$4 sm:$0xff]  }
  0xb3   : > { %2203 = vmatprep.subr.bf16.mxu0 %v10398_v3  ;;  %2193 = vmatpush2.bf16.msra.mxu1 %v10394_v4  ;;  %v10487_v3 = vld [vmem:[#allocation2 + $0x1bc] ss:$24 sps:$4 sm:$0xff]   ;;  %v10482_v4 = vld [vmem:[#allocation2 + $0x7b0] ss:$24 sps:$4 sm:$0xff]  }
  0xb4   : > { %2244 = vmatprep.subr.bf16.mxu1 %v10403_v6  ;;  %v10490_v6 = vld [vmem:[#allocation2 + $0x784] ss:$24 sps:$4 sm:$0xff]  }
  0xb5   : > { %2154 = vmatmul.mubr.bf16.vlgmr.msra.gmra.mxu0 %v12462_v5 }
  0xb6   : > { %2204 = vmatpush1.bf16.msra.mxu0 %v10396_v7  ;;  %2195 = vmatmul.mubr.bf16.vlgmr.msra.gmra.mxu1 %v12464_v8  ;;  %v10485_v7 = vld [vmem:[#allocation2 + $0x1b8] ss:$24 sps:$4 sm:$0xff]  }
  0xb7   : > { %2205 = vmatprep.subr.bf16.mxu0 %v10406_v9  ;;  %2245 = vmatpush1.bf16.msra.mxu1 %v10401_v10  ;;  %v10493_v9 = vld [vmem:[#allocation2 + $0x18c] ss:$24 sps:$4 sm:$0xff]   ;;  %v10488_v10 = vld [vmem:[#allocation2 + $0x780] ss:$24 sps:$4 sm:$0xff]  }
  0xb8   : > { %2276 = vmatprep.mubr.bf16.mxu1 %v12453_v48  ;;  %2246 = vmatprep.subr.bf16.mxu1 %v10409_v11  ;;  %v10498_v11 = vld [vmem:[#allocation2 + $0x45c] ss:$24 sps:$4 sm:$0xff]  }
  0xb9   : > { %2235 = vmatprep.mubr.bf16.mxu0 %v12476_v34 }
  0xba   : > { %2206 = vmatpush1.bf16.msra.mxu0 %v10404_v12  ;;  %v10491_v12 = vld [vmem:[#allocation2 + $0x188] ss:$24 sps:$4 sm:$0xff]  }
  0xbb   : > { %2207 = vmatprep.subr.bf16.mxu0 %v10412_v13  ;;  %2247 = vmatpush1.bf16.msra.mxu1 %v10407_v14  ;;  %v12481_v13 = vcombine.low %v12472_v32, %v12472_v32  ;;  %v10501_v14 = vld [vmem:[#allocation2 + $0x75c] ss:$24 sps:$4 sm:$0xff]   ;;  %v10528_v32 = vld [vmem:[#allocation2 + $0x36c] ss:$24 sps:$4 sm:$0xff]  }
  0xbc   : > { %2248 = vmatprep.subr.bf16.mxu1 %v10415_v15  ;;  %v10496_v15 = vld [vmem:[#allocation2 + $0x458] ss:$24 sps:$4 sm:$0xff]  }
  0xbe   : > { %2208 = vmatpush1.bf16.msra.mxu0 %v10410_v16  ;;  %v10504_v16 = vld [vmem:[#allocation2 + $0x42c] ss:$24 sps:$4 sm:$0xff]  }
  0xbf   : > { %2209 = vmatprep.subr.bf16.mxu0 %v10418_v17  ;;  %2249 = vmatpush1.bf16.msra.mxu1 %v10413_v18  ;;  %v10499_v17 = vld [vmem:[#allocation2 + $0x758] ss:$24 sps:$4 sm:$0xff]   ;;  %v10507_v18 = vld [vmem:[#allocation2 + $0x72c] ss:$24 sps:$4 sm:$0xff]  }
  0xc0   : > { %2250 = vmatprep.subr.bf16.mxu1 %v10421_v19  ;;  %v10502_v19 = vld [vmem:[#allocation2 + $0x428] ss:$24 sps:$4 sm:$0xff]  }
  0xc2   : > { %2210 = vmatpush1.bf16.msra.mxu0 %v10416_v20  ;;  %v10510_v20 = vld [vmem:[#allocation2 + $0x3fc] ss:$24 sps:$4 sm:$0xff]  }
  0xc3   : > { %2211 = vmatprep.subr.bf16.mxu0 %v10424_v21  ;;  %2251 = vmatpush1.bf16.msra.mxu1 %v10419_v22  ;;  %v10505_v21 = vld [vmem:[#allocation2 + $0x728] ss:$24 sps:$4 sm:$0xff]   ;;  %v10513_v22 = vld [vmem:[#allocation2 + $0x6fc] ss:$24 sps:$4 sm:$0xff]  }
  0xc4   : > { %2252 = vmatprep.subr.bf16.mxu1 %v10427_v23  ;;  %v10508_v23 = vld [vmem:[#allocation2 + $0x3f8] ss:$24 sps:$4 sm:$0xff]  }
  0xc6   : > { %2212 = vmatpush1.bf16.msra.mxu0 %v10422_v24  ;;  %v10516_v24 = vld [vmem:[#allocation2 + $0x3cc] ss:$24 sps:$4 sm:$0xff]  }
  0xc7   : > { %2213 = vmatprep.subr.bf16.mxu0 %v10430_v25  ;;  %2253 = vmatpush1.bf16.msra.mxu1 %v10425_v26  ;;  %v10511_v25 = vld [vmem:[#allocation2 + $0x6f8] ss:$24 sps:$4 sm:$0xff]   ;;  %v10519_v26 = vld [vmem:[#allocation2 + $0x6cc] ss:$24 sps:$4 sm:$0xff]  }
  0xc8   : > { %2254 = vmatprep.subr.bf16.mxu1 %v10433_v27  ;;  %v10514_v27 = vld [vmem:[#allocation2 + $0x3c8] ss:$24 sps:$4 sm:$0xff]  }
  0xca   : > { %2214 = vmatpush1.bf16.msra.mxu0 %v10428_v28  ;;  %v10522_v28 = vld [vmem:[#allocation2 + $0x39c] ss:$24 sps:$4 sm:$0xff]  }
  0xcb   : > { %2215 = vmatprep.subr.bf16.mxu0 %v10436_v29  ;;  %2255 = vmatpush1.bf16.msra.mxu1 %v10431_v30  ;;  %v10517_v29 = vld [vmem:[#allocation2 + $0x6c8] ss:$24 sps:$4 sm:$0xff]   ;;  %v10525_v30 = vld [vmem:[#allocation2 + $0x69c] ss:$24 sps:$4 sm:$0xff]  }
  0xcc   : > { %2256 = vmatprep.subr.bf16.mxu1 %v10439_v31  ;;  %v10520_v31 = vld [vmem:[#allocation2 + $0x398] ss:$24 sps:$4 sm:$0xff]  }
  0xce   : > { %2216 = vmatpush1.bf16.msra.mxu0 %v10434_v33  ;;  %v10523_v33 = vld [vmem:[#allocation2 + $0x698] ss:$24 sps:$4 sm:$0xff]  }
  0xcf   : > { %2217 = vmatprep.subr.bf16.mxu0 %v10442_v35  ;;  %2257 = vmatpush1.bf16.msra.mxu1 %v10437_v36  ;;  %v10531_v35 = vld [vmem:[#allocation2 + $0x66c] ss:$24 sps:$4 sm:$0xff]   ;;  %v10526_v36 = vld [vmem:[#allocation2 + $0x368] ss:$24 sps:$4 sm:$0xff]  }
  0xd0   : > { %2258 = vmatprep.subr.bf16.mxu1 %v10445_v37  ;;  %v10534_v37 = vld [vmem:[#allocation2 + $0x33c] ss:$24 sps:$4 sm:$0xff]  }
  0xd2   : > { %2218 = vmatpush1.bf16.msra.mxu0 %v10440_v38  ;;  %v10529_v38 = vld [vmem:[#allocation2 + $0x668] ss:$24 sps:$4 sm:$0xff]  }
  0xd3   : > { %2219 = vmatprep.subr.bf16.mxu0 %v10448_v39  ;;  %2259 = vmatpush1.bf16.msra.mxu1 %v10443_v40  ;;  %v10537_v39 = vld [vmem:[#allocation2 + $0x63c] ss:$24 sps:$4 sm:$0xff]   ;;  %v10532_v40 = vld [vmem:[#allocation2 + $0x338] ss:$24 sps:$4 sm:$0xff]  }
  0xd4   : > { %2260 = vmatprep.subr.bf16.mxu1 %v10451_v41  ;;  %v10540_v41 = vld [vmem:[#allocation2 + $0x30c] ss:$24 sps:$4 sm:$0xff]  }
  0xd6   : > { %2220 = vmatpush2.bf16.msra.mxu0 %v10446_v42  ;;  %v10535_v42 = vld [vmem:[#allocation2 + $0x638] ss:$24 sps:$4 sm:$0xff]  }
  0xd7   : > { %2221 = vmatprep.subr.bf16.mxu0 %v10454_v43  ;;  %2261 = vmatpush2.bf16.msra.mxu1 %v10449_v44  ;;  %v10543_v43 = vld [vmem:[#allocation2 + $0x60c] ss:$24 sps:$4 sm:$0xff]   ;;  %v10538_v44 = vld [vmem:[#allocation2 + $0x308] ss:$24 sps:$4 sm:$0xff]  }
  0xd8   : > { %2262 = vmatprep.subr.bf16.mxu1 %v10457_v45  ;;  %v10546_v45 = vld [vmem:[#allocation2 + $0x5dc] ss:$24 sps:$4 sm:$0xff]  }
  0xda   : > { %2222 = vmatpush2.bf16.msra.mxu0 %v10452_v46  ;;  %v10541_v46 = vld [vmem:[#allocation2 + $0x608] ss:$24 sps:$4 sm:$0xff]  }
  0xdb   : > { %2223 = vmatprep.subr.bf16.mxu0 %v10460_v47  ;;  %2263 = vmatpush2.bf16.msra.mxu1 %v10455_v49  ;;  %v10549_v47 = vld [vmem:[#allocation2 + $0x8dc] ss:$24 sps:$4 sm:$0xff]   ;;  %v10544_v49 = vld [vmem:[#allocation2 + $0x5d8] ss:$24 sps:$4 sm:$0xff]  }
  0xdc   : > { %2264 = vmatprep.subr.bf16.mxu1 %v10463_v50  ;;  %v10552_v50 = vld [vmem:[#allocation2 + $0x5ac] ss:$24 sps:$4 sm:$0xff]  }
  0xde   : > { %2224 = vmatpush2.bf16.msra.mxu0 %v10458_v51  ;;  %v10547_v51 = vld [vmem:[#allocation2 + $0x8d8] ss:$24 sps:$4 sm:$0xff]  }
  0xdf   : > { %2225 = vmatprep.subr.bf16.mxu0 %v10466_v53  ;;  %2265 = vmatpush2.bf16.msra.mxu1 %v10461_v54  ;;  %v10555_v53 = vld [vmem:[#allocation2 + $0x8ac] ss:$24 sps:$4 sm:$0xff]   ;;  %v10550_v54 = vld [vmem:[#allocation2 + $0x5a8] ss:$24 sps:$4 sm:$0xff]  }
  0xe0   : > { %2266 = vmatprep.subr.bf16.mxu1 %v10469_v55  ;;  %v10558_v55 = vld [vmem:[#allocation2 + $0x57c] ss:$24 sps:$4 sm:$0xff]  }
  0xe2   : > { %2226 = vmatpush2.bf16.msra.mxu0 %v10464_v56  ;;  %v10553_v56 = vld [vmem:[#allocation2 + $0x8a8] ss:$24 sps:$4 sm:$0xff]  }
  0xe3   : > { %2227 = vmatprep.subr.bf16.mxu0 %v10472_v57  ;;  %2267 = vmatpush2.bf16.msra.mxu1 %v10467_v58  ;;  %v10561_v57 = vld [vmem:[#allocation2 + $0x87c] ss:$24 sps:$4 sm:$0xff]   ;;  %v10556_v58 = vld [vmem:[#allocation2 + $0x578] ss:$24 sps:$4 sm:$0xff]  }
  0xe4   : > { %2268 = vmatprep.subr.bf16.mxu1 %v10475_v59  ;;  %v10564_v59 = vld [vmem:[#allocation2 + $0x54c] ss:$24 sps:$4 sm:$0xff]  }
  0xe6   : > { %2228 = vmatpush2.bf16.msra.mxu0 %v10470_v60  ;;  %v10559_v60 = vld [vmem:[#allocation2 + $0x878] ss:$24 sps:$4 sm:$0xff]  }
  0xe7   : > { %2229 = vmatprep.subr.bf16.mxu0 %v10478_v61  ;;  %2269 = vmatpush2.bf16.msra.mxu1 %v10473_v62  ;;  %v10567_v61 = vld [vmem:[#allocation2 + $0x84c] ss:$24 sps:$4 sm:$0xff]   ;;  %v10562_v62 = vld [vmem:[#allocation2 + $0x548] ss:$24 sps:$4 sm:$0xff]  }
  0xe8   : > { %2270 = vmatprep.subr.bf16.mxu1 %v10481_v63  ;;  %v10570_v63 = vld [vmem:[#allocation2 + $0x51c] ss:$24 sps:$4 sm:$0xff]  }
  0xea   : > { %2230 = vmatpush2.bf16.msra.mxu0 %v10476_v0  ;;  %v10565_v0 = vld [vmem:[#allocation2 + $0x848] ss:$24 sps:$4 sm:$0xff]  }
  0xeb   : > { %2231 = vmatprep.subr.bf16.mxu0 %v10484_v1  ;;  %2271 = vmatpush2.bf16.msra.mxu1 %v10479_v2  ;;  %v10573_v1 = vld [vmem:[#allocation2 + $0x81c] ss:$24 sps:$4 sm:$0xff]   ;;  %v10568_v2 = vld [vmem:[#allocation2 + $0x518] ss:$24 sps:$4 sm:$0xff]  }
  0xec   : > { %2272 = vmatprep.subr.bf16.mxu1 %v10487_v3  ;;  %v10576_v3 = vld [vmem:[#allocation2 + $0x4ec] ss:$24 sps:$4 sm:$0xff]  }
  0xee   : > { %2232 = vmatpush2.bf16.msra.mxu0 %v10482_v4  ;;  %v10571_v4 = vld [vmem:[#allocation2 + $0x818] ss:$24 sps:$4 sm:$0xff]  }
  0xef   : > { %2233 = vmatprep.subr.bf16.mxu0 %v10490_v6  ;;  %2273 = vmatpush2.bf16.msra.mxu1 %v10485_v7  ;;  %v10579_v6 = vld [vmem:[#allocation2 + $0x7ec] ss:$24 sps:$4 sm:$0xff]   ;;  %v10574_v7 = vld [vmem:[#allocation2 + $0x4e8] ss:$24 sps:$4 sm:$0xff]  }
  0xf0   : > { %2274 = vmatprep.subr.bf16.mxu1 %v10493_v9  ;;  %v10582_v9 = vld [vmem:[#allocation2 + $0x4bc] ss:$24 sps:$4 sm:$0xff]  }
  0xf2   : > { %2234 = vmatpush2.bf16.msra.mxu0 %v10488_v10  ;;  %v10577_v10 = vld [vmem:[#allocation2 + $0x7e8] ss:$24 sps:$4 sm:$0xff]  }
  0xf3   : > { %2285 = vmatprep.subr.bf16.mxu0 %v10498_v11  ;;  %2275 = vmatpush2.bf16.msra.mxu1 %v10491_v12  ;;  %v10585_v11 = vld [vmem:[#allocation2 + $0x7bc] ss:$24 sps:$4 sm:$0xff]   ;;  %v10580_v12 = vld [vmem:[#allocation2 + $0x4b8] ss:$24 sps:$4 sm:$0xff]  }
  0xf4   : > { %2326 = vmatprep.subr.bf16.mxu1 %v10501_v14  ;;  %v10588_v14 = vld [vmem:[#allocation2 + $0x48c] ss:$24 sps:$4 sm:$0xff]  }
  0xf5   : > { %2236 = vmatmul.mubr.bf16.vlgmr.msra.gmra.mxu0 %v12481_v13 }
  0xf6   : > { %2286 = vmatpush1.bf16.msra.mxu0 %v10496_v15  ;;  %2317 = vmatprep.mubr.bf16.mxu0 %v12459_v52  ;;  %v10583_v15 = vld [vmem:[#allocation2 + $0x7b8] ss:$24 sps:$4 sm:$0xff]  }
  0xf7   : > { %2277 = vmatmul.mubr.bf16.vlgmr.msra.gmra.mxu1 %v12462_v5  ;;  %2287 = vmatprep.subr.bf16.mxu0 %v10504_v16  ;;  %v10591_v16 = vld [vmem:[#allocation2 + $0x78c] ss:$24 sps:$4 sm:$0xff]  }
  0xf8   : > { %2327 = vmatpush1.bf16.msra.mxu1 %v10499_v17  ;;  %2358 = vmatprep.mubr.bf16.mxu1 %v12476_v34  ;;  %v10586_v17 = vld [vmem:[#allocation2 + $0x488] ss:$24 sps:$4 sm:$0xff]  }
  0xf9   : > { %2328 = vmatprep.subr.bf16.mxu1 %v10507_v18  ;;  %v10594_v18 = vld [vmem:[#allocation2 + $0x164] ss:$24 sps:$4 sm:$0xff]  }
  0xfa   : > { %2288 = vmatpush1.bf16.msra.mxu0 %v10502_v19  ;;  %v10589_v19 = vld [vmem:[#allocation2 + $0x788] ss:$24 sps:$4 sm:$0xff]  }
  0xfb   : > { %2289 = vmatprep.subr.bf16.mxu0 %v10510_v20  ;;  %v10597_v20 = vld [vmem:[#allocation2 + $0x464] ss:$24 sps:$4 sm:$0xff]  }
  0xfc   : > { %2329 = vmatpush1.bf16.msra.mxu1 %v10505_v21  ;;  %v10592_v21 = vld [vmem:[#allocation2 + $0x160] ss:$24 sps:$4 sm:$0xff]  }
  0xfd   : > { %2330 = vmatprep.subr.bf16.mxu1 %v10513_v22  ;;  %v10600_v22 = vld [vmem:[#allocation2 + $0x134] ss:$24 sps:$4 sm:$0xff]  }
  0xfe   : > { %2290 = vmatpush1.bf16.msra.mxu0 %v10508_v23  ;;  %v10595_v23 = vld [vmem:[#allocation2 + $0x460] ss:$24 sps:$4 sm:$0xff]  }
  0xff   : > { %2291 = vmatprep.subr.bf16.mxu0 %v10516_v24  ;;  %v10603_v24 = vld [vmem:[#allocation2 + $0x434] ss:$24 sps:$4 sm:$0xff]  }
 0x100   : > { %2331 = vmatpush1.bf16.msra.mxu1 %v10511_v25  ;;  %v10598_v25 = vld [vmem:[#allocation2 + $0x130] ss:$24 sps:$4 sm:$0xff]  }
 0x101   : > { %2332 = vmatprep.subr.bf16.mxu1 %v10519_v26  ;;  %v10606_v26 = vld [vmem:[#allocation2 + $0x104] ss:$24 sps:$4 sm:$0xff]  }
 0x102   : > { %2292 = vmatpush1.bf16.msra.mxu0 %v10514_v27  ;;  %v10601_v27 = vld [vmem:[#allocation2 + $0x430] ss:$24 sps:$4 sm:$0xff]  }
 0x103   : > { %2293 = vmatprep.subr.bf16.mxu0 %v10522_v28  ;;  %v10609_v28 = vld [vmem:[#allocation2 + $0x404] ss:$24 sps:$4 sm:$0xff]  }
 0x104   : > { %2333 = vmatpush1.bf16.msra.mxu1 %v10517_v29  ;;  %v10604_v29 = vld [vmem:[#allocation2 + $0x100] ss:$24 sps:$4 sm:$0xff]  }
 0x105   : > { %2334 = vmatprep.subr.bf16.mxu1 %v10525_v30  ;;  %v10612_v30 = vld [vmem:[#allocation2 + $0xd4] ss:$24 sps:$4 sm:$0xff]  }
 0x106   : > { %2294 = vmatpush1.bf16.msra.mxu0 %v10520_v31  ;;  %v10607_v31 = vld [vmem:[#allocation2 + $0x400] ss:$24 sps:$4 sm:$0xff]  }
 0x107   : > { %2295 = vmatprep.subr.bf16.mxu0 %v10528_v32  ;;  %v10615_v32 = vld [vmem:[#allocation2 + $0x3d4] ss:$24 sps:$4 sm:$0xff]  }
 0x108   : > { %2335 = vmatpush1.bf16.msra.mxu1 %v10523_v33  ;;  %v10618_v33 = vld [vmem:[#allocation2 + $0xa4] ss:$24 sps:$4 sm:$0xff]  }
 0x109   : > { %2336 = vmatprep.subr.bf16.mxu1 %v10531_v35  ;;  %v10613_v35 = vld [vmem:[#allocation2 + $0x3d0] ss:$24 sps:$4 sm:$0xff]  }
 0x10a   : > { %2296 = vmatpush1.bf16.msra.mxu0 %v10526_v36  ;;  %v10621_v36 = vld [vmem:[#allocation2 + $0x3a4] ss:$24 sps:$4 sm:$0xff]  }
 0x10b   : > { %2297 = vmatprep.subr.bf16.mxu0 %v10534_v37  ;;  %v10624_v37 = vld [vmem:[#allocation2 + $0x74] ss:$24 sps:$4 sm:$0xff]  }
 0x10c   : > { %2337 = vmatpush1.bf16.msra.mxu1 %v10529_v38  ;;  %v10619_v38 = vld [vmem:[#allocation2 + $0x3a0] ss:$24 sps:$4 sm:$0xff]  }
 0x10d   : > { %2338 = vmatprep.subr.bf16.mxu1 %v10537_v39  ;;  %v10627_v39 = vld [vmem:[#allocation2 + $0x374] ss:$24 sps:$4 sm:$0xff]  }
 0x10e   : > { %2298 = vmatpush1.bf16.msra.mxu0 %v10532_v40  ;;  %v10622_v40 = vld [vmem:[#allocation2 + $0x70] ss:$24 sps:$4 sm:$0xff]  }
 0x10f   : > { %2299 = vmatprep.subr.bf16.mxu0 %v10540_v41  ;;  %v10630_v41 = vld [vmem:[#allocation2 + $0x44] ss:$24 sps:$4 sm:$0xff]  }
 0x110   : > { %2339 = vmatpush1.bf16.msra.mxu1 %v10535_v42  ;;  %v10625_v42 = vld [vmem:[#allocation2 + $0x370] ss:$24 sps:$4 sm:$0xff]  }
 0x111   : > { %2340 = vmatprep.subr.bf16.mxu1 %v10543_v43  ;;  %v10633_v43 = vld [vmem:[#allocation2 + $0x344] ss:$24 sps:$4 sm:$0xff]  }
 0x112   : > { %2300 = vmatpush1.bf16.msra.mxu0 %v10538_v44  ;;  %v10628_v44 = vld [vmem:[#allocation2 + $0x40] ss:$24 sps:$4 sm:$0xff]  }
 0x113   : > { %2301 = vmatprep.subr.bf16.mxu0 %v10546_v45  ;;  %v10636_v45 = vld [vmem:[#allocation2 + $0x14] ss:$24 sps:$4 sm:$0xff]  }
 0x114   : > { %2341 = vmatpush1.bf16.msra.mxu1 %v10541_v46  ;;  %v10631_v46 = vld [vmem:[#allocation2 + $0x340] ss:$24 sps:$4 sm:$0xff]  }
 0x115   : > { %2342 = vmatprep.subr.bf16.mxu1 %v10549_v47  ;;  %v10639_v47 = vld [vmem:[#allocation2 + $0x314] ss:$24 sps:$4 sm:$0xff]  }
 0x116   : > { %2302 = vmatpush2.bf16.msra.mxu0 %v10544_v49  ;;  %v10634_v49 = vld [vmem:[#allocation2 + $0x10] ss:$24 sps:$4 sm:$0xff]  }
 0x117   : > { %2303 = vmatprep.subr.bf16.mxu0 %v10552_v50  ;;  %v10642_v50 = vld [vmem:[#allocation2 + $0x2e4] ss:$24 sps:$4 sm:$0xff]  }
 0x118   : > { %2343 = vmatpush2.bf16.msra.mxu1 %v10547_v51  ;;  %v10637_v51 = vld [vmem:[#allocation2 + $0x310] ss:$24 sps:$4 sm:$0xff]  }
 0x119   : > { %2344 = vmatprep.subr.bf16.mxu1 %v10555_v53  ;;  %v10645_v53 = vld [vmem:[#allocation2 + $0x5e4] ss:$24 sps:$4 sm:$0xff]  }
 0x11a   : > { %2304 = vmatpush2.bf16.msra.mxu0 %v10550_v54  ;;  %v10640_v54 = vld [vmem:[#allocation2 + $0x2e0] ss:$24 sps:$4 sm:$0xff]  }
 0x11b   : > { %2305 = vmatprep.subr.bf16.mxu0 %v10558_v55  ;;  %v10648_v55 = vld [vmem:[#allocation2 + $0x2b4] ss:$24 sps:$4 sm:$0xff]  }
 0x11c   : > { %2345 = vmatpush2.bf16.msra.mxu1 %v10553_v56  ;;  %v10643_v56 = vld [vmem:[#allocation2 + $0x5e0] ss:$24 sps:$4 sm:$0xff]  }
 0x11d   : > { %2346 = vmatprep.subr.bf16.mxu1 %v10561_v57  ;;  %v10651_v57 = vld [vmem:[#allocation2 + $0x5b4] ss:$24 sps:$4 sm:$0xff]  }
 0x11e   : > { %2306 = vmatpush2.bf16.msra.mxu0 %v10556_v58  ;;  %v10646_v58 = vld [vmem:[#allocation2 + $0x2b0] ss:$24 sps:$4 sm:$0xff]  }
 0x11f   : > { %2307 = vmatprep.subr.bf16.mxu0 %v10564_v59  ;;  %v10654_v59 = vld [vmem:[#allocation2 + $0x284] ss:$24 sps:$4 sm:$0xff]  }
 0x120   : > { %2347 = vmatpush2.bf16.msra.mxu1 %v10559_v60  ;;  %v10649_v60 = vld [vmem:[#allocation2 + $0x5b0] ss:$24 sps:$4 sm:$0xff]  }
 0x121   : > { %2348 = vmatprep.subr.bf16.mxu1 %v10567_v61  ;;  %v10657_v61 = vld [vmem:[#allocation2 + $0x584] ss:$24 sps:$4 sm:$0xff]  }
 0x122   : > { %2308 = vmatpush2.bf16.msra.mxu0 %v10562_v62  ;;  %v10652_v62 = vld [vmem:[#allocation2 + $0x280] ss:$24 sps:$4 sm:$0xff]  }
 0x123   : > { %2309 = vmatprep.subr.bf16.mxu0 %v10570_v63  ;;  %v10660_v63 = vld [vmem:[#allocation2 + $0x254] ss:$24 sps:$4 sm:$0xff]  }
 0x124   : > { %2349 = vmatpush2.bf16.msra.mxu1 %v10565_v0  ;;  %v10655_v0 = vld [vmem:[#allocation2 + $0x580] ss:$24 sps:$4 sm:$0xff]  }
 0x125   : > { %2350 = vmatprep.subr.bf16.mxu1 %v10573_v1  ;;  %v10663_v1 = vld [vmem:[#allocation2 + $0x554] ss:$24 sps:$4 sm:$0xff]  }
 0x126   : > { %2310 = vmatpush2.bf16.msra.mxu0 %v10568_v2  ;;  %v10658_v2 = vld [vmem:[#allocation2 + $0x250] ss:$24 sps:$4 sm:$0xff]  }
 0x127   : > { %2311 = vmatprep.subr.bf16.mxu0 %v10576_v3  ;;  %v10666_v3 = vld [vmem:[#allocation2 + $0x224] ss:$24 sps:$4 sm:$0xff]  }
 0x128   : > { %2351 = vmatpush2.bf16.msra.mxu1 %v10571_v4  ;;  %v10661_v4 = vld [vmem:[#allocation2 + $0x550] ss:$24 sps:$4 sm:$0xff]  }
 0x129   : > { %2352 = vmatprep.subr.bf16.mxu1 %v10579_v6  ;;  %v10669_v6 = vld [vmem:[#allocation2 + $0x524] ss:$24 sps:$4 sm:$0xff]  }
 0x12a   : > { %2312 = vmatpush2.bf16.msra.mxu0 %v10574_v7  ;;  %v10664_v7 = vld [vmem:[#allocation2 + $0x220] ss:$24 sps:$4 sm:$0xff]  }
 0x12b   : > { %2313 = vmatprep.subr.bf16.mxu0 %v10582_v9  ;;  %v10672_v9 = vld [vmem:[#allocation2 + $0x1f4] ss:$24 sps:$4 sm:$0xff]  }
 0x12c   : > { %2353 = vmatpush2.bf16.msra.mxu1 %v10577_v10  ;;  %v10667_v10 = vld [vmem:[#allocation2 + $0x520] ss:$24 sps:$4 sm:$0xff]  }
 0x12d   : > { %2354 = vmatprep.subr.bf16.mxu1 %v10585_v11  ;;  %v10675_v11 = vld [vmem:[#allocation2 + $0x4f4] ss:$24 sps:$4 sm:$0xff]  }
 0x12e   : > { %2314 = vmatpush2.bf16.msra.mxu0 %v10580_v12  ;;  %v10670_v12 = vld [vmem:[#allocation2 + $0x1f0] ss:$24 sps:$4 sm:$0xff]  }
 0x12f   : > { %2315 = vmatprep.subr.bf16.mxu0 %v10588_v14  ;;  %v10678_v14 = vld [vmem:[#allocation2 + $0x1c4] ss:$24 sps:$4 sm:$0xff]  }
 0x130   : > { %2355 = vmatpush2.bf16.msra.mxu1 %v10583_v15  ;;  %v10673_v15 = vld [vmem:[#allocation2 + $0x4f0] ss:$24 sps:$4 sm:$0xff]  }
 0x131   : > { %2356 = vmatprep.subr.bf16.mxu1 %v10591_v16  ;;  %v10681_v16 = vld [vmem:[#allocation2 + $0x4c4] ss:$24 sps:$4 sm:$0xff]  }
 0x132   : > { %2316 = vmatpush2.bf16.msra.mxu0 %v10586_v17  ;;  %v10676_v17 = vld [vmem:[#allocation2 + $0x1c0] ss:$24 sps:$4 sm:$0xff]  }
 0x133   : > { %2367 = vmatprep.subr.bf16.mxu0 %v10594_v18  ;;  %v10684_v18 = vld [vmem:[#allocation2 + $0x194] ss:$24 sps:$4 sm:$0xff]  }
 0x134   : > { %2357 = vmatpush2.bf16.msra.mxu1 %v10589_v19  ;;  %v10679_v19 = vld [vmem:[#allocation2 + $0x4c0] ss:$24 sps:$4 sm:$0xff]  }
 0x135   : > { %2318 = vmatmul.mubr.bf16.vlgmr.msra.gmra.mxu0 %v12464_v8  ;;  %2408 = vmatprep.subr.bf16.mxu1 %v10597_v20  ;;  %v10687_v20 = vld [vmem:[#allocation2 + $0x494] ss:$24 sps:$4 sm:$0xff]  }
 0x136   : > { %2368 = vmatpush1.bf16.msra.mxu0 %v10592_v21  ;;  %2399 = vmatprep.mubr.bf16.mxu0 %v12453_v48  ;;  %v10610_v48 = vld [vmem:[#allocation2 + $0xd0] ss:$24 sps:$4 sm:$0xff]  }
 0x137   : > { %2359 = vmatmul.mubr.bf16.vlgmr.msra.gmra.mxu1 %v12481_v13  ;;  %2369 = vmatprep.subr.bf16.mxu0 %v10600_v22  ;;  %v10682_v21 = vld [vmem:[#allocation2 + $0x190] ss:$24 sps:$4 sm:$0xff]   ;;  %v10690_v22 = vld [vmem:[#allocation2 + $0x764] ss:$24 sps:$4 sm:$0xff]  }
 0x138   : > { %2409 = vmatpush1.bf16.msra.mxu1 %v10595_v23  ;;  %2440 = vmatprep.mubr.bf16.mxu1 %v12459_v52  ;;  %v10616_v52 = vld [vmem:[#allocation2 + $0xa0] ss:$24 sps:$4 sm:$0xff]   ;;  %v10685_v23 = vld [vmem:[#allocation2 + $0x490] ss:$24 sps:$4 sm:$0xff]  }
 0x139   : > { %2410 = vmatprep.subr.bf16.mxu1 %v10603_v24  ;;  %v10688_v24 = vld [vmem:[#allocation2 + $0x760] ss:$24 sps:$4 sm:$0xff]  }
 0x13a   : > { %2370 = vmatpush1.bf16.msra.mxu0 %v10598_v25  ;;  %v10693_v25 = vld [vmem:[#allocation2 + $0x734] ss:$24 sps:$4 sm:$0xff]  }
 0x13b   : > { %2371 = vmatprep.subr.bf16.mxu0 %v10606_v26 }
 0x13c   : > { %2411 = vmatpush1.bf16.msra.mxu1 %v10601_v27  ;;  %v10691_v27 = vld [vmem:[#allocation2 + $0x730] ss:$24 sps:$4 sm:$0xff]  }
 0x13d   : > { %2412 = vmatprep.subr.bf16.mxu1 %v10609_v28 }
 0x13e   : > { %2372 = vmatpush1.bf16.msra.mxu0 %v10604_v29 }
 0x13f   : > { %2373 = vmatprep.subr.bf16.mxu0 %v10612_v30  ;;  %v10696_v30 = vld [vmem:[#allocation2 + $0x704] ss:$24 sps:$4 sm:$0xff]  }
 0x140   : > { %2413 = vmatpush1.bf16.msra.mxu1 %v10607_v31 }
 0x141   : > { %2414 = vmatprep.subr.bf16.mxu1 %v10615_v32 }
 0x142   : > { %2374 = vmatpush1.bf16.msra.mxu0 %v10610_v48  ;;  %v10694_v48 = vld [vmem:[#allocation2 + $0x700] ss:$24 sps:$4 sm:$0xff]  }
 0x143   : > { %2375 = vmatprep.subr.bf16.mxu0 %v10618_v33 }
 0x144   : > { %2415 = vmatpush1.bf16.msra.mxu1 %v10613_v35 }
 0x145   : > { %2416 = vmatprep.subr.bf16.mxu1 %v10621_v36 }
 0x146   : > { %2376 = vmatpush1.bf16.msra.mxu0 %v10616_v52  ;;  %v10702_v52 = vld [vmem:[#allocation2 + $0x6a4] ss:$24 sps:$4 sm:$0xff]  }
 0x147   : > { %2377 = vmatprep.subr.bf16.mxu0 %v10624_v37  ;;  %v10700_v37 = vld [vmem:[#allocation2 + $0x6a0] ss:$24 sps:$4 sm:$0xff]  }
 0x148   : > { %2417 = vmatpush1.bf16.msra.mxu1 %v10619_v38  ;;  %v10703_v38 = vld [vmem:[#allocation2 + $0x670] ss:$24 sps:$4 sm:$0xff]  }
 0x149   : > { %2418 = vmatprep.subr.bf16.mxu1 %v10627_v39  ;;  %v10708_v39 = vld [vmem:[#allocation2 + $0x644] ss:$24 sps:$4 sm:$0xff]  }
 0x14a   : > { %2378 = vmatpush1.bf16.msra.mxu0 %v10622_v40  ;;  %v10706_v40 = vld [vmem:[#allocation2 + $0x640] ss:$24 sps:$4 sm:$0xff]  }
 0x14b   : > { %2379 = vmatprep.subr.bf16.mxu0 %v10630_v41  ;;  %v10711_v41 = vld [vmem:[#allocation2 + $0x614] ss:$24 sps:$4 sm:$0xff]  }
 0x14c   : > { %2419 = vmatpush1.bf16.msra.mxu1 %v10625_v42  ;;  %v10709_v42 = vld [vmem:[#allocation2 + $0x610] ss:$24 sps:$4 sm:$0xff]  }
 0x14d   : > { %2420 = vmatprep.subr.bf16.mxu1 %v10633_v43  ;;  %v10714_v43 = vld [vmem:[#allocation2 + $0x8e4] ss:$24 sps:$4 sm:$0xff]  }
 0x14e   : > { %2380 = vmatpush1.bf16.msra.mxu0 %v10628_v44  ;;  %v10712_v44 = vld [vmem:[#allocation2 + $0x8e0] ss:$24 sps:$4 sm:$0xff]  }
 0x14f   : > { %2381 = vmatprep.subr.bf16.mxu0 %v10636_v45  ;;  %v10717_v45 = vld [vmem:[#allocation2 + $0x8b4] ss:$24 sps:$4 sm:$0xff]  }
 0x150   : > { %2421 = vmatpush1.bf16.msra.mxu1 %v10631_v46  ;;  %v10715_v46 = vld [vmem:[#allocation2 + $0x8b0] ss:$24 sps:$4 sm:$0xff]  }
 0x151   : > { %2422 = vmatprep.subr.bf16.mxu1 %v10639_v47  ;;  %v10720_v47 = vld [vmem:[#allocation2 + $0x884] ss:$24 sps:$4 sm:$0xff]  }
 0x152   : > { %2382 = vmatpush1.bf16.msra.mxu0 %v10634_v49  ;;  %v10718_v49 = vld [vmem:[#allocation2 + $0x880] ss:$24 sps:$4 sm:$0xff]  }
 0x153   : > { %2383 = vmatprep.subr.bf16.mxu0 %v10642_v50  ;;  %v10723_v50 = vld [vmem:[#allocation2 + $0x854] ss:$24 sps:$4 sm:$0xff]  }
 0x154   : > { %2423 = vmatpush1.bf16.msra.mxu1 %v10637_v51  ;;  %v10721_v51 = vld [vmem:[#allocation2 + $0x850] ss:$24 sps:$4 sm:$0xff]  }
 0x155   : > { %2424 = vmatprep.subr.bf16.mxu1 %v10645_v53  ;;  %v10726_v53 = vld [vmem:[#allocation2 + $0x824] ss:$24 sps:$4 sm:$0xff]  }
 0x156   : > { %2384 = vmatpush2.bf16.msra.mxu0 %v10640_v54  ;;  %v630_v54 = vlaneseq }
 0x157   : > { %2385 = vmatprep.subr.bf16.mxu0 %v10648_v55  ;;  %v10724_v55 = vld [vmem:[#allocation2 + $0x820] ss:$24 sps:$4 sm:$0xff]  }
 0x158   : > { %2425 = vmatpush2.bf16.msra.mxu1 %v10643_v56  ;;  %v10729_v56 = vld [vmem:[#allocation2 + $0x7f4] ss:$24 sps:$4 sm:$0xff]  }
 0x159   : > { %2426 = vmatprep.subr.bf16.mxu1 %v10651_v57  ;;  %v12502_v57 = vshrl.u32 %v630_v54, 7 }
 0x15a   : > { %2386 = vmatpush2.bf16.msra.mxu0 %v10646_v58  ;;  %v10727_v58 = vld [vmem:[#allocation2 + $0x7f0] ss:$24 sps:$4 sm:$0xff]  }
 0x15b   : > { %2387 = vmatprep.subr.bf16.mxu0 %v10654_v59  ;;  %v10732_v59 = vld [vmem:[#allocation2 + $0x7c4] ss:$24 sps:$4 sm:$0xff]  }
 0x15c   : > { %2427 = vmatpush2.bf16.msra.mxu1 %v10649_v60  ;;  %v632_v60 = vsub.s32 0, %v12502_v57 }
 0x15d   : > { %2428 = vmatprep.subr.bf16.mxu1 %v10657_v61  ;;  %v12505_v61 = vld [vmem:[#allocation4] sm:$0x3f] }
 0x15e   : > { %2388 = vmatpush2.bf16.msra.mxu0 %v10652_v62  ;;  %v636_v62 = vsub.s32 1, %v12502_v57 }
 0x15f   : > { %2389 = vmatprep.subr.bf16.mxu0 %v10660_v63  ;;  %v10730_v63 = vld [vmem:[#allocation2 + $0x7c0] ss:$24 sps:$4 sm:$0xff]  }
 0x160   : > { %2429 = vmatpush2.bf16.msra.mxu1 %v10655_v0  ;;  %v10735_v0 = vld [vmem:[#allocation2 + $0x794] ss:$24 sps:$4 sm:$0xff]  }
 0x161   : > { %2430 = vmatprep.subr.bf16.mxu1 %v10663_v1  ;;  %v633_v1 = vrot.slane %v12505_v61, %v632_v60 }
 0x162   : > { %2390 = vmatpush2.bf16.msra.mxu0 %v10658_v2  ;;  %v637_v2 = vrot.slane %v12505_v61, %v636_v62 }
 0x163   : > { %2391 = vmatprep.subr.bf16.mxu0 %v10666_v3  ;;  %v10733_v3 = vld [vmem:[#allocation2 + $0x790] ss:$24 sps:$4 sm:$0xff]  }
 0x164   : > { %2431 = vmatpush2.bf16.msra.mxu1 %v10661_v4 }
 0x165   : > { %2432 = vmatprep.subr.bf16.mxu1 %v10669_v6 }
 0x166   : > { %2392 = vmatpush2.bf16.msra.mxu0 %v10664_v7 }
 0x167   : > { %2393 = vmatprep.subr.bf16.mxu0 %v10672_v9 }
 0x168   : > { %2433 = vmatpush2.bf16.msra.mxu1 %v10667_v10 }
 0x169   : > { %2434 = vmatprep.subr.bf16.mxu1 %v10675_v11 }
 0x16a   : > { %2394 = vmatpush2.bf16.msra.mxu0 %v10670_v12 }
 0x16b   : > { %2395 = vmatprep.subr.bf16.mxu0 %v10678_v14 }
 0x16c   : > { %2435 = vmatpush2.bf16.msra.mxu1 %v10673_v15 }
 0x16d   : > { %2436 = vmatprep.subr.bf16.mxu1 %v10681_v16 }
 0x16e   : > { %2396 = vmatpush2.bf16.msra.mxu0 %v10676_v17 }
 0x16f   : > { %2397 = vmatprep.subr.bf16.mxu0 %v10684_v18 }
 0x170   : > { %2437 = vmatpush2.bf16.msra.mxu1 %v10679_v19 }
 0x171   : > { %2438 = vmatprep.subr.bf16.mxu1 %v10687_v20 }
 0x172   : > { %2398 = vmatpush2.bf16.msra.mxu0 %v10682_v21 }
 0x173   : > { %2449 = vmatprep.subr.bf16.mxu0 %v10690_v22 }
 0x174   : > { %2439 = vmatpush2.bf16.msra.mxu1 %v10685_v23  ;;  %v644_v23 = vsub.s32 3, %v12502_v57 }
 0x175   : > { %v12491_v26 = vpop.f32.mrf.mxu0  ;;  %2400 = vmatmul.mubr.bf16.vlgmr.msra.gmra.mxu0 %v12462_v5  ;;  %v10699_v5 = vld [vmem:[#allocation2 + $0x6d4] ss:$24 sps:$4 sm:$0xff]  }
 0x176   : > { %2450 = vmatpush1.bf16.msra.mxu0 %v10688_v24  ;;  %2481 = vmatprep.mubr.bf16.mxu0 %v12476_v34  ;;  %v12497_v29 = vpop.f32.mrf.mxu1  ;;  %v10697_v34 = vld [vmem:[#allocation2 + $0x6d0] ss:$24 sps:$4 sm:$0xff]   ;;  %v2156_v4 = vadd.f32 %v12491_v26, %v633_v1 }
 0x177   : > { %v12495_v28 = vpop.f32.mrf.mxu0  ;;  %2441 = vmatmul.mubr.bf16.vlgmr.msra.gmra.mxu1 %v12464_v8  ;;  %2451 = vmatprep.subr.bf16.mxu0 %v10693_v25  ;;  %v10705_v8 = vld [vmem:[#allocation2 + $0x674] ss:$24 sps:$4 sm:$0xff]   ;;  %v645_v25 = vrot.slane %v12505_v61, %v644_v23 }
 0x178   : > { %v12500_v32 = vpop.f32.mrf.mxu1  ;;  %v2158_v6 = vadd.f32 %v12495_v28, %v637_v2  ;;  %v2197_v7 = vadd.f32 %v12497_v29, %v2156_v4 }
 0x179   : > { %v2159_v31 = vpop.f32.mrf.mxu0 }
 0x17a   : > { %2452 = vmatpush1.bf16.msra.mxu0 %v10691_v27  ;;  %v2200_v35 = vpop.f32.mrf.mxu1  ;;  %v2199_v10 = vadd.f32 %v12500_v32, %v2158_v6 }
 0x17b   : > { %v2160_v33 = vpop.f32.mrf.mxu0  ;;  %2453 = vmatprep.subr.bf16.mxu0 %v10696_v30 }
 0x17c   : > { %v2201_v36 = vpop.f32.mrf.mxu1 }
 0x17e   : > { %2454 = vmatpush1.bf16.msra.mxu0 %v10694_v48 }
 0x17f   : > { %2455 = vmatprep.subr.bf16.mxu0 %v10699_v5 }
 0x182   : > { %2456 = vmatpush1.bf16.msra.mxu0 %v10697_v34 }
 0x183   : > { %2457 = vmatprep.subr.bf16.mxu0 %v10702_v52 }
 0x186   : > { %2458 = vmatpush1.bf16.msra.mxu0 %v10700_v37 }
 0x187   : > { %2459 = vmatprep.subr.bf16.mxu0 %v10705_v8 }
 0x18a   : > { %2460 = vmatpush1.bf16.msra.mxu0 %v10703_v38 }
 0x18b   : > { %2461 = vmatprep.subr.bf16.mxu0 %v10708_v39 }
 0x18e   : > { %2462 = vmatpush1.bf16.msra.mxu0 %v10706_v40 }
 0x18f   : > { %2463 = vmatprep.subr.bf16.mxu0 %v10711_v41 }
 0x192   : > { %2464 = vmatpush1.bf16.msra.mxu0 %v10709_v42 }
 0x193   : > { %2465 = vmatprep.subr.bf16.mxu0 %v10714_v43 }
 0x196   : > { %2466 = vmatpush2.bf16.msra.mxu0 %v10712_v44 }
 0x197   : > { %2467 = vmatprep.subr.bf16.mxu0 %v10717_v45 }
 0x19a   : > { %2468 = vmatpush2.bf16.msra.mxu0 %v10715_v46  ;;  %v648_v46 = vsub.s32 4, %v12502_v57 }
 0x19b   : > { %2469 = vmatprep.subr.bf16.mxu0 %v10720_v47  ;;  %v652_v47 = vsub.s32 5, %v12502_v57 }
 0x19e   : > { %2470 = vmatpush2.bf16.msra.mxu0 %v10718_v49  ;;  %v649_v49 = vrot.slane %v12505_v61, %v648_v46 }
 0x19f   : > { %2471 = vmatprep.subr.bf16.mxu0 %v10723_v50  ;;  %v653_v50 = vrot.slane %v12505_v61, %v652_v47 }
 0x1a2   : > { %2472 = vmatpush2.bf16.msra.mxu0 %v10721_v51 }
 0x1a3   : > { %2473 = vmatprep.subr.bf16.mxu0 %v10726_v53 }
 0x1a6   : > { %2474 = vmatpush2.bf16.msra.mxu0 %v10724_v55 }
 0x1a7   : > { %2475 = vmatprep.subr.bf16.mxu0 %v10729_v56 }
 0x1aa   : > { %2476 = vmatpush2.bf16.msra.mxu0 %v10727_v58 }
 0x1ab   : > { %2477 = vmatprep.subr.bf16.mxu0 %v10732_v59 }
 0x1ae   : > { %2478 = vmatpush2.bf16.msra.mxu0 %v10730_v63 }
 0x1af   : > { %2479 = vmatprep.subr.bf16.mxu0 %v10735_v0 }
 0x1b2   : > { %2480 = vmatpush2.bf16.msra.mxu0 %v10733_v3 }
 0x1b5   : > { %v2237_v9 = vpop.f32.mrf.mxu0  ;;  %2482 = vmatmul.mubr.bf16.vlgmr.msra.gmra.mxu0 %v12481_v13  ;;  %v640_v13 = vsub.s32 2, %v12502_v57 }
 0x1b6   : > { %v2238_v11 = vadd.f32 %v2237_v9, %v2197_v7 }
 0x1b7   : > { %v2239_v12 = vpop.f32.mrf.mxu0  ;;  %v2278_v14 = vpop.f32.mrf.mxu1  ;;  %v641_v24 = vrot.slane %v12505_v61, %v640_v13 }
 0x1b8   : > { %10736 = vtanh.f32 %v2238_v11  ;;  %v2240_v15 = vadd.f32 %v2239_v12, %v2199_v10 }
 0x1b9   : > { %v2241_v16 = vpop.f32.mrf.mxu0  ;;  %v2280_v17 = vpop.f32.mrf.mxu1  ;;  %v2279_v26 = vadd.f32 %v2278_v14, %v641_v24 }
 0x1ba   : > { %10738 = vtanh.f32 %v2240_v15  ;;  %v2281_v27 = vadd.f32 %v2280_v17, %v645_v25 }
 0x1bb   : > { %v2242_v18 = vpop.f32.mrf.mxu0  ;;  %v2282_v19 = vpop.f32.mrf.mxu1 }
 0x1bd   : > { %v2283_v20 = vpop.f32.mrf.mxu1 }
 0x1c5   : > { %v10737_v21 = vpop.eup %10736 }
 0x1c6   : > { %2496 = vst [vmem:[%s13661_s5] sm:$0xff] %v10737_v21 }
 0x1c7   : > { %v10739_v22 = vpop.eup %10738 }
 0x1c8   : > { %2497 = vst [vmem:[%s13661_s5 + $0x8] sm:$0xff] %v10739_v22 }
 0x1f5   : > { %v2319_v28 = vpop.f32.mrf.mxu0 }
 0x1f6   : > { %v2320_v29 = vadd.f32 %v2319_v28, %v2279_v26 }
 0x1f7   : > { %v2321_v30 = vpop.f32.mrf.mxu0  ;;  %v2360_v31 = vpop.f32.mrf.mxu1 }
 0x1f8   : > { %v2322_v32 = vadd.f32 %v2321_v30, %v2281_v27  ;;  %v2361_v48 = vadd.f32 %v2360_v31, %v2320_v29 }
 0x1f9   : > { %v2323_v33 = vpop.f32.mrf.mxu0  ;;  %v2362_v5 = vpop.f32.mrf.mxu1 }
 0x1fa   : > { %10740 = vtanh.f32 %v2361_v48  ;;  %v2363_v35 = vadd.f32 %v2362_v5, %v2322_v32 }
 0x1fb   : > { %v2324_v36 = vpop.f32.mrf.mxu0  ;;  %v2364_v34 = vpop.f32.mrf.mxu1 }
 0x1fc   : > { %10742 = vtanh.f32 %v2363_v35 }
 0x1fd   : > { %v2365_v52 = vpop.f32.mrf.mxu1 }
 0x207   : > { %v10741_v37 = vpop.eup %10740 }
 0x208   : > { %2498 = vst [vmem:[%s13661_s5 + $0x10] sm:$0xff] %v10741_v37 }
 0x209   : > { %v10743_v8 = vpop.eup %10742 }
 0x20a   : > { %2499 = vst [vmem:[%s13661_s5 + $0x18] sm:$0xff] %v10743_v8 }
 0x235   : > { %v2401_v38 = vpop.f32.mrf.mxu0 }
 0x236   : > { %v2402_v51 = vadd.f32 %v2401_v38, %v649_v49 }
 0x237   : > { %v2403_v39 = vpop.f32.mrf.mxu0  ;;  %v2442_v40 = vpop.f32.mrf.mxu1 }
 0x238   : > { %v2404_v53 = vadd.f32 %v2403_v39, %v653_v50  ;;  %v2443_v54 = vadd.f32 %v2442_v40, %v2402_v51 }
 0x239   : > { %v2405_v41 = vpop.f32.mrf.mxu0  ;;  %v2444_v42 = vpop.f32.mrf.mxu1 }
 0x23a   : > { %v2445_v56 = vadd.f32 %v2444_v42, %v2404_v53 }
 0x23b   : > { %v2406_v43 = vpop.f32.mrf.mxu0  ;;  %v2446_v44 = vpop.f32.mrf.mxu1 }
 0x23d   : > { %v2447_v45 = vpop.f32.mrf.mxu1 }
 0x275   : > { %v2483_v55 = vpop.f32.mrf.mxu0 }
 0x276   : > { %v2484_v58 = vadd.f32 %v2483_v55, %v2443_v54 }
 0x277   : > { %v2485_v59 = vpop.f32.mrf.mxu0 }
 0x278   : > { %10744 = vtanh.f32 %v2484_v58  ;;  %v2486_v60 = vadd.f32 %v2485_v59, %v2445_v56 }
 0x279   : > { %v2487_v62 = vpop.f32.mrf.mxu0 }
 0x27a   : > { %10746 = vtanh.f32 %v2486_v60 }
 0x27b   : > { %v2488_v63 = vpop.f32.mrf.mxu0 }
 0x285   : > { %v10745_v0 = vpop.eup %10744 }
 0x286   : > { %2500 = vst [vmem:[%s13661_s5 + $0x20] sm:$0xff] %v10745_v0 }
 0x287   : > { %v10747_v57 = vpop.eup %10746 }
 0x288   : > { %2501 = vst [vmem:[%s13661_s5 + $0x28] sm:$0xff] %v10747_v57 }
 0x289 PF: > { %v10748_v61 = vld [vmem:[%s12434_s15 + $0x3f4] ss:$72 sps:$4 sm:$0xff]   ;;  %v10750_v1 = vld [vmem:[%s12434_s15 + $0x3f0] ss:$72 sps:$4 sm:$0xff]   ;;  %v10754_v4 = vld [vmem:[%s12434_s15 + $0x364] ss:$72 sps:$4 sm:$0xff]  }
 0x28a   : > { %7794 = vmatprep.subr.bf16.mxu0 %v10748_v61  ;;  %v10751_v2 = vld [vmem:[%s12434_s15 + $0xcf4] ss:$72 sps:$4 sm:$0xff]   ;;  %v10753_v3 = vld [vmem:[%s12434_s15 + $0xcf0] ss:$72 sps:$4 sm:$0xff]   ;;  %v10756_v6 = vld [vmem:[%s12434_s15 + $0x360] ss:$72 sps:$4 sm:$0xff]  }
 0x28b   : > { %7795 = vmatpush1.bf16.msra.mxu0 %v10750_v1  ;;  %7835 = vmatprep.subr.bf16.mxu1 %v10751_v2  ;;  %v10757_v7 = vld [vmem:[%s12434_s15 + $0xc64] ss:$72 sps:$4 sm:$0xff]   ;;  %v10759_v9 = vld [vmem:[%s12434_s15 + $0xc60] ss:$72 sps:$4 sm:$0xff]   ;;  %v10760_v10 = vld [vmem:[%s12434_s15 + $0x2d4] ss:$72 sps:$4 sm:$0xff]  }
 0x28c   : > { %7836 = vmatpush1.bf16.msra.mxu1 %v10753_v3  ;;  %7796 = vmatprep.subr.bf16.mxu0 %v10754_v4  ;;  %v10762_v11 = vld [vmem:[%s12434_s15 + $0x2d0] ss:$72 sps:$4 sm:$0xff]   ;;  %v10763_v12 = vld [vmem:[%s12434_s15 + $0xbd4] ss:$72 sps:$4 sm:$0xff]   ;;  %v10766_v14 = vld [vmem:[%s12434_s15 + $0x244] ss:$72 sps:$4 sm:$0xff]  }
 0x28d   : > { %7837 = vmatprep.subr.bf16.mxu1 %v10757_v7  ;;  %v10765_v15 = vld [vmem:[%s12434_s15 + $0xbd0] ss:$72 sps:$4 sm:$0xff]   ;;  %v10769_v16 = vld [vmem:[%s12434_s15 + $0xb44] ss:$72 sps:$4 sm:$0xff]   ;;  %v10768_v17 = vld [vmem:[%s12434_s15 + $0x240] ss:$72 sps:$4 sm:$0xff]  }
 0x28e   : > { %v10772_v18 = vld [vmem:[%s12434_s15 + $0x1b4] ss:$72 sps:$4 sm:$0xff]   ;;  %v10771_v19 = vld [vmem:[%s12434_s15 + $0xb40] ss:$72 sps:$4 sm:$0xff]   ;;  %v10774_v21 = vld [vmem:[%s12434_s15 + $0x1b0] ss:$72 sps:$4 sm:$0xff]  }
 0x28f   : > { %7797 = vmatpush1.bf16.msra.mxu0 %v10756_v6  ;;  %v10775_v20 = vld [vmem:[%s12434_s15 + $0xab4] ss:$72 sps:$4 sm:$0xff]   ;;  %v10778_v22 = vld [vmem:[%s12434_s15 + $0x124] ss:$72 sps:$4 sm:$0xff]   ;;  %v10777_v13 = vld [vmem:[%s12434_s15 + $0xab0] ss:$72 sps:$4 sm:$0xff]  }
 0x290   : > { %7798 = vmatprep.subr.bf16.mxu0 %v10760_v10  ;;  %7838 = vmatpush1.bf16.msra.mxu1 %v10759_v9  ;;  %v10781_v23 = vld [vmem:[%s12434_s15 + $0xa24] ss:$72 sps:$4 sm:$0xff]   ;;  %v10780_v24 = vld [vmem:[%s12434_s15 + $0x120] ss:$72 sps:$4 sm:$0xff]   ;;  %v10784_v25 = vld [vmem:[%s12434_s15 + $0x94] ss:$72 sps:$4 sm:$0xff]  }
 0x291   : > { %7839 = vmatprep.subr.bf16.mxu1 %v10763_v12  ;;  %v10783_v26 = vld [vmem:[%s12434_s15 + $0xa20] ss:$72 sps:$4 sm:$0xff]   ;;  %v10787_v27 = vld [vmem:[%s12434_s15 + $0x994] ss:$72 sps:$4 sm:$0xff]   ;;  %v10786_v28 = vld [vmem:[%s12434_s15 + $0x90] ss:$72 sps:$4 sm:$0xff]  }
 0x292   : > { %v10790_v29 = vld [vmem:[%s12434_s15 + $0x4] ss:$72 sps:$4 sm:$0xff]   ;;  %v10789_v30 = vld [vmem:[%s12434_s15 + $0x990] ss:$72 sps:$4 sm:$0xff]   ;;  %v10792_v32 = vld [vmem:[%s12434_s15] ss:$72 sps:$4 sm:$0xff]  }
 0x293   : > { %7799 = vmatpush1.bf16.msra.mxu0 %v10762_v11  ;;  %v10793_v31 = vld [vmem:[%s12434_s15 + $0x904] ss:$72 sps:$4 sm:$0xff]   ;;  %v10796_v48 = vld [vmem:[%s12434_s15 + $0x874] ss:$72 sps:$4 sm:$0xff]   ;;  %v10795_v33 = vld [vmem:[%s12434_s15 + $0x900] ss:$72 sps:$4 sm:$0xff]  }
 0x294   : > { %7800 = vmatprep.subr.bf16.mxu0 %v10766_v14  ;;  %7840 = vmatpush1.bf16.msra.mxu1 %v10765_v15  ;;  %v10799_v5 = vld [vmem:[%s12434_s15 + $0x1174] ss:$72 sps:$4 sm:$0xff]   ;;  %v10798_v35 = vld [vmem:[%s12434_s15 + $0x870] ss:$72 sps:$4 sm:$0xff]   ;;  %v10802_v36 = vld [vmem:[%s12434_s15 + $0x7e4] ss:$72 sps:$4 sm:$0xff]  }
 0x295   : > { %7841 = vmatprep.subr.bf16.mxu1 %v10769_v16  ;;  %v10801_v34 = vld [vmem:[%s12434_s15 + $0x1170] ss:$72 sps:$4 sm:$0xff]   ;;  %v10805_v52 = vld [vmem:[%s12434_s15 + $0x10e4] ss:$72 sps:$4 sm:$0xff]   ;;  %v10804_v37 = vld [vmem:[%s12434_s15 + $0x7e0] ss:$72 sps:$4 sm:$0xff]  }
 0x296   : > { %v10808_v8 = vld [vmem:[%s12434_s15 + $0x754] ss:$72 sps:$4 sm:$0xff]   ;;  %v10807_v38 = vld [vmem:[%s12434_s15 + $0x10e0] ss:$72 sps:$4 sm:$0xff]   ;;  %v10810_v40 = vld [vmem:[%s12434_s15 + $0x750] ss:$72 sps:$4 sm:$0xff]  }
 0x297   : > { %7801 = vmatpush1.bf16.msra.mxu0 %v10768_v17  ;;  %v10811_v39 = vld [vmem:[%s12434_s15 + $0x1054] ss:$72 sps:$4 sm:$0xff]   ;;  %v10814_v41 = vld [vmem:[%s12434_s15 + $0x6c4] ss:$72 sps:$4 sm:$0xff]   ;;  %v10813_v42 = vld [vmem:[%s12434_s15 + $0x1050] ss:$72 sps:$4 sm:$0xff]  }
 0x298   : > { %7802 = vmatprep.subr.bf16.mxu0 %v10772_v18  ;;  %7842 = vmatpush1.bf16.msra.mxu1 %v10771_v19  ;;  %v10817_v43 = vld [vmem:[%s12434_s15 + $0xfc4] ss:$72 sps:$4 sm:$0xff]   ;;  %v10816_v45 = vld [vmem:[%s12434_s15 + $0x6c0] ss:$72 sps:$4 sm:$0xff]   ;;  %v10820_v47 = vld [vmem:[%s12434_s15 + $0x634] ss:$72 sps:$4 sm:$0xff]  }
 0x299   : > { %7843 = vmatprep.subr.bf16.mxu1 %v10775_v20  ;;  %v2503_v44 = vld [vmem:[%s13661_s5 + $0x8] sm:$0xff]  ;;  %v2505_v49 = vld [vmem:[%s13661_s5 + $0x18] sm:$0xff]  ;;  %v2502_v4 = vld [vmem:[%s13661_s5] sm:$0xff] }
 0x29a   : > { %v12591_v46 = vpack.c.bf16 %v2503_v44, %v2503_v44  ;;  %v10819_v50 = vld [vmem:[%s12434_s15 + $0xfc0] ss:$72 sps:$4 sm:$0xff]   ;;  %v12599_v51 = vpack.c.bf16 %v2505_v49, %v2505_v49  ;;  %v10823_v53 = vld [vmem:[%s12434_s15 + $0xf34] ss:$72 sps:$4 sm:$0xff]   ;;  %v10822_v54 = vld [vmem:[%s12434_s15 + $0x630] ss:$72 sps:$4 sm:$0xff]   ;;  %v12624_v9 = vpack.c.bf16 %v2502_v4, %v2502_v4 }
 0x29b   : > { %7803 = vmatpush1.bf16.msra.mxu0 %v10774_v21  ;;  %v10826_v55 = vld [vmem:[%s12434_s15 + $0x5a4] ss:$72 sps:$4 sm:$0xff]   ;;  %v10825_v56 = vld [vmem:[%s12434_s15 + $0xf30] ss:$72 sps:$4 sm:$0xff]   ;;  %v10828_v59 = vld [vmem:[%s12434_s15 + $0x5a0] ss:$72 sps:$4 sm:$0xff]  }
 0x29c   : > { %7804 = vmatprep.subr.bf16.mxu0 %v10778_v22  ;;  %7844 = vmatpush1.bf16.msra.mxu1 %v10777_v13  ;;  %v10829_v58 = vld [vmem:[%s12434_s15 + $0xea4] ss:$72 sps:$4 sm:$0xff]   ;;  %v10832_v60 = vld [vmem:[%s12434_s15 + $0x514] ss:$72 sps:$4 sm:$0xff]   ;;  %v10831_v62 = vld [vmem:[%s12434_s15 + $0xea0] ss:$72 sps:$4 sm:$0xff]  }
 0x29d   : > { %7845 = vmatprep.subr.bf16.mxu1 %v10781_v23  ;;  %7826 = vmatprep.mubr.bf16.mxu0 %v12591_v46  ;;  %v10835_v63 = vld [vmem:[%s12434_s15 + $0xe14] ss:$72 sps:$4 sm:$0xff]   ;;  %v10834_v0 = vld [vmem:[%s12434_s15 + $0x510] ss:$72 sps:$4 sm:$0xff]   ;;  %v10838_v57 = vld [vmem:[%s12434_s15 + $0x484] ss:$72 sps:$4 sm:$0xff]  }
 0x29e   : > { %7867 = vmatprep.mubr.bf16.mxu1 %v12599_v51  ;;  %v10837_v61 = vld [vmem:[%s12434_s15 + $0xe10] ss:$72 sps:$4 sm:$0xff]   ;;  %v10840_v1 = vld [vmem:[%s12434_s15 + $0x480] ss:$72 sps:$4 sm:$0xff]   ;;  %v10841_v2 = vld [vmem:[%s12434_s15 + $0xd84] ss:$72 sps:$4 sm:$0xff]  }
 0x29f   : > { %7805 = vmatpush1.bf16.msra.mxu0 %v10780_v24  ;;  %v10843_v3 = vld [vmem:[%s12434_s15 + $0xd80] ss:$72 sps:$4 sm:$0xff]   ;;  %v10846_v6 = vld [vmem:[%s12434_s15 + $0x15f4] ss:$72 sps:$4 sm:$0xff]   ;;  %v10844_v11 = vld [vmem:[%s12434_s15 + $0x15f0] ss:$72 sps:$4 sm:$0xff]  }
 0x2a0   : > { %7806 = vmatprep.subr.bf16.mxu0 %v10784_v25  ;;  %7846 = vmatpush1.bf16.msra.mxu1 %v10783_v26  ;;  %v2504_v7 = vld [vmem:[%s13661_s5 + $0x10] sm:$0xff]  ;;  %v10849_v10 = vld [vmem:[%s12434_s15 + $0x3fc] ss:$72 sps:$4 sm:$0xff]   ;;  %v10847_v15 = vld [vmem:[%s12434_s15 + $0x3f8] ss:$72 sps:$4 sm:$0xff]  }
 0x2a1   : > { %7847 = vmatprep.subr.bf16.mxu1 %v10787_v27  ;;  %v12628_v12 = vpack.c.bf16 %v2504_v7, %v2504_v7  ;;  %v10852_v14 = vld [vmem:[%s12434_s15 + $0x1564] ss:$72 sps:$4 sm:$0xff]   ;;  %v10850_v17 = vld [vmem:[%s12434_s15 + $0x1560] ss:$72 sps:$4 sm:$0xff]   ;;  %v10858_v18 = vld [vmem:[%s12434_s15 + $0x14d4] ss:$72 sps:$4 sm:$0xff]  }
 0x2a2   : > { %v10855_v16 = vld [vmem:[%s12434_s15 + $0x36c] ss:$72 sps:$4 sm:$0xff]   ;;  %v10853_v19 = vld [vmem:[%s12434_s15 + $0x368] ss:$72 sps:$4 sm:$0xff]   ;;  %v10861_v20 = vld [vmem:[%s12434_s15 + $0x2dc] ss:$72 sps:$4 sm:$0xff]  }
 0x2a3   : > { %7807 = vmatpush1.bf16.msra.mxu0 %v10786_v28  ;;  %v10856_v21 = vld [vmem:[%s12434_s15 + $0x14d0] ss:$72 sps:$4 sm:$0xff]   ;;  %v10864_v22 = vld [vmem:[%s12434_s15 + $0x1444] ss:$72 sps:$4 sm:$0xff]   ;;  %v10862_v24 = vld [vmem:[%s12434_s15 + $0x1440] ss:$72 sps:$4 sm:$0xff]  }
 0x2a4   : > { %7808 = vmatprep.subr.bf16.mxu0 %v10790_v29  ;;  %7848 = vmatpush1.bf16.msra.mxu1 %v10789_v30  ;;  %v10859_v13 = vld [vmem:[%s12434_s15 + $0x2d8] ss:$72 sps:$4 sm:$0xff]   ;;  %v10867_v23 = vld [vmem:[%s12434_s15 + $0x24c] ss:$72 sps:$4 sm:$0xff]   ;;  %v10865_v26 = vld [vmem:[%s12434_s15 + $0x248] ss:$72 sps:$4 sm:$0xff]  }
 0x2a5   : > { %7849 = vmatprep.subr.bf16.mxu1 %v10793_v31  ;;  %v10870_v25 = vld [vmem:[%s12434_s15 + $0x13b4] ss:$72 sps:$4 sm:$0xff]   ;;  %v10868_v28 = vld [vmem:[%s12434_s15 + $0x13b0] ss:$72 sps:$4 sm:$0xff]   ;;  %v10876_v29 = vld [vmem:[%s12434_s15 + $0x1324] ss:$72 sps:$4 sm:$0xff]  }
 0x2a6   : > { %v10873_v27 = vld [vmem:[%s12434_s15 + $0x1bc] ss:$72 sps:$4 sm:$0xff]   ;;  %v10871_v30 = vld [vmem:[%s12434_s15 + $0x1b8] ss:$72 sps:$4 sm:$0xff]   ;;  %v10879_v31 = vld [vmem:[%s12434_s15 + $0x12c] ss:$72 sps:$4 sm:$0xff]  }
 0x2a7   : > { %7809 = vmatpush1.bf16.msra.mxu0 %v10792_v32  ;;  %v10874_v32 = vld [vmem:[%s12434_s15 + $0x1320] ss:$72 sps:$4 sm:$0xff]   ;;  %v10906_v49 = vld [vmem:[%s12434_s15 + $0x1954] ss:$72 sps:$4 sm:$0xff]   ;;  %v10928_v7 = vld [vmem:[%s12434_s15 + $0x1710] ss:$72 sps:$4 sm:$0xff]  }
 0x2a8   : > { %7810 = vmatprep.subr.bf16.mxu0 %v10796_v48  ;;  %7850 = vmatpush1.bf16.msra.mxu1 %v10795_v33  ;;  %v10882_v48 = vld [vmem:[%s12434_s15 + $0x1294] ss:$72 sps:$4 sm:$0xff]   ;;  %v10877_v33 = vld [vmem:[%s12434_s15 + $0x128] ss:$72 sps:$4 sm:$0xff]   ;;  %v10895_v44 = vld [vmem:[%s12434_s15 + $0x878] ss:$72 sps:$4 sm:$0xff]  }
 0x2a9   : > { %7851 = vmatprep.subr.bf16.mxu1 %v10799_v5  ;;  %v10885_v5 = vld [vmem:[%s12434_s15 + $0x9c] ss:$72 sps:$4 sm:$0xff]   ;;  %v10925_v4 = vld [vmem:[%s12434_s15 + $0x5a8] ss:$72 sps:$4 sm:$0xff]  }
 0x2ab   : > { %7811 = vmatpush2.bf16.msra.mxu0 %v10798_v35  ;;  %v2507_v35 = vld [vmem:[%s13661_s5 + $0x28] sm:$0xff] }
 0x2ac   : > { %7812 = vmatprep.subr.bf16.mxu0 %v10802_v36  ;;  %7852 = vmatpush2.bf16.msra.mxu1 %v10801_v34  ;;  %v10880_v36 = vld [vmem:[%s12434_s15 + $0x1290] ss:$72 sps:$4 sm:$0xff]   ;;  %v12660_v34 = vpack.c.bf16 %v2507_v35, %v2507_v35 }
 0x2ad   : > { %7853 = vmatprep.subr.bf16.mxu1 %v10805_v52  ;;  %v10888_v52 = vld [vmem:[%s12434_s15 + $0x1204] ss:$72 sps:$4 sm:$0xff]   ;;  %v10964_v35 = vld [vmem:[%s12434_s15 + $0xab8] ss:$72 sps:$4 sm:$0xff]  }
 0x2af   : > { %7813 = vmatpush2.bf16.msra.mxu0 %v10804_v37  ;;  %v10883_v37 = vld [vmem:[%s12434_s15 + $0x98] ss:$72 sps:$4 sm:$0xff]  }
 0x2b0   : > { %7814 = vmatprep.subr.bf16.mxu0 %v10808_v8  ;;  %7854 = vmatpush2.bf16.msra.mxu1 %v10807_v38  ;;  %v10891_v8 = vld [vmem:[%s12434_s15 + $0xc] ss:$72 sps:$4 sm:$0xff]   ;;  %v10886_v38 = vld [vmem:[%s12434_s15 + $0x1200] ss:$72 sps:$4 sm:$0xff]  }
 0x2b1   : > { %7855 = vmatprep.subr.bf16.mxu1 %v10811_v39  ;;  %v10894_v39 = vld [vmem:[%s12434_s15 + $0x1a74] ss:$72 sps:$4 sm:$0xff]  }
 0x2b3   : > { %7815 = vmatpush2.bf16.msra.mxu0 %v10810_v40  ;;  %v10889_v40 = vld [vmem:[%s12434_s15 + $0x8] ss:$72 sps:$4 sm:$0xff]  }
 0x2b4   : > { %7816 = vmatprep.subr.bf16.mxu0 %v10814_v41  ;;  %7856 = vmatpush2.bf16.msra.mxu1 %v10813_v42  ;;  %v10897_v41 = vld [vmem:[%s12434_s15 + $0x87c] ss:$72 sps:$4 sm:$0xff]   ;;  %v10892_v42 = vld [vmem:[%s12434_s15 + $0x1a70] ss:$72 sps:$4 sm:$0xff]  }
 0x2b5   : > { %7857 = vmatprep.subr.bf16.mxu1 %v10817_v43  ;;  %v10900_v43 = vld [vmem:[%s12434_s15 + $0x19e4] ss:$72 sps:$4 sm:$0xff]  }
 0x2b7   : > { %7817 = vmatpush2.bf16.msra.mxu0 %v10816_v45  ;;  %v10903_v45 = vld [vmem:[%s12434_s15 + $0x7ec] ss:$72 sps:$4 sm:$0xff]  }
 0x2b8   : > { %7818 = vmatprep.subr.bf16.mxu0 %v10820_v47  ;;  %7858 = vmatpush2.bf16.msra.mxu1 %v10819_v50  ;;  %v10898_v47 = vld [vmem:[%s12434_s15 + $0x19e0] ss:$72 sps:$4 sm:$0xff]  }
 0x2b9   : > { %7859 = vmatprep.subr.bf16.mxu1 %v10823_v53  ;;  %v10901_v50 = vld [vmem:[%s12434_s15 + $0x7e8] ss:$72 sps:$4 sm:$0xff]   ;;  %v10909_v53 = vld [vmem:[%s12434_s15 + $0x75c] ss:$72 sps:$4 sm:$0xff]  }
 0x2bb   : > { %7819 = vmatpush2.bf16.msra.mxu0 %v10822_v54  ;;  %v10904_v54 = vld [vmem:[%s12434_s15 + $0x1950] ss:$72 sps:$4 sm:$0xff]  }
 0x2bc   : > { %7820 = vmatprep.subr.bf16.mxu0 %v10826_v55  ;;  %7860 = vmatpush2.bf16.msra.mxu1 %v10825_v56  ;;  %v10912_v55 = vld [vmem:[%s12434_s15 + $0x18c4] ss:$72 sps:$4 sm:$0xff]   ;;  %v10907_v56 = vld [vmem:[%s12434_s15 + $0x758] ss:$72 sps:$4 sm:$0xff]  }
 0x2bd   : > { %7861 = vmatprep.subr.bf16.mxu1 %v10829_v58  ;;  %v10915_v58 = vld [vmem:[%s12434_s15 + $0x6cc] ss:$72 sps:$4 sm:$0xff]  }
 0x2bf   : > { %7821 = vmatpush2.bf16.msra.mxu0 %v10828_v59  ;;  %v10910_v59 = vld [vmem:[%s12434_s15 + $0x18c0] ss:$72 sps:$4 sm:$0xff]  }
 0x2c0   : > { %7822 = vmatprep.subr.bf16.mxu0 %v10832_v60  ;;  %7862 = vmatpush2.bf16.msra.mxu1 %v10831_v62  ;;  %v10918_v60 = vld [vmem:[%s12434_s15 + $0x1834] ss:$72 sps:$4 sm:$0xff]   ;;  %v10913_v62 = vld [vmem:[%s12434_s15 + $0x6c8] ss:$72 sps:$4 sm:$0xff]  }
 0x2c1   : > { %7863 = vmatprep.subr.bf16.mxu1 %v10835_v63  ;;  %v10921_v63 = vld [vmem:[%s12434_s15 + $0x63c] ss:$72 sps:$4 sm:$0xff]  }
 0x2c3   : > { %7823 = vmatpush2.bf16.msra.mxu0 %v10834_v0  ;;  %v10916_v0 = vld [vmem:[%s12434_s15 + $0x1830] ss:$72 sps:$4 sm:$0xff]  }
 0x2c4   : > { %7824 = vmatprep.subr.bf16.mxu0 %v10838_v57  ;;  %7864 = vmatpush2.bf16.msra.mxu1 %v10837_v61  ;;  %v10924_v57 = vld [vmem:[%s12434_s15 + $0x17a4] ss:$72 sps:$4 sm:$0xff]   ;;  %v10919_v61 = vld [vmem:[%s12434_s15 + $0x638] ss:$72 sps:$4 sm:$0xff]  }
 0x2c5   : > { %7865 = vmatprep.subr.bf16.mxu1 %v10841_v2  ;;  %v10922_v2 = vld [vmem:[%s12434_s15 + $0x17a0] ss:$72 sps:$4 sm:$0xff]  }
 0x2c7   : > { %7825 = vmatpush2.bf16.msra.mxu0 %v10840_v1  ;;  %v10927_v1 = vld [vmem:[%s12434_s15 + $0x5ac] ss:$72 sps:$4 sm:$0xff]  }
 0x2c8   : > { %7876 = vmatprep.subr.bf16.mxu0 %v10846_v6  ;;  %7866 = vmatpush2.bf16.msra.mxu1 %v10843_v3  ;;  %v10930_v3 = vld [vmem:[%s12434_s15 + $0x1714] ss:$72 sps:$4 sm:$0xff]  }
 0x2c9   : > { %7917 = vmatprep.subr.bf16.mxu1 %v10849_v10  ;;  %v10933_v6 = vld [vmem:[%s12434_s15 + $0x51c] ss:$72 sps:$4 sm:$0xff]  }
 0x2ca   : > { %7827 = vmatmul.mubr.bf16.vlgmr.msra.gmra.mxu0 %v12624_v9  ;;  %v10936_v10 = vld [vmem:[%s12434_s15 + $0x1684] ss:$72 sps:$4 sm:$0xff]  }
 0x2cb   : > { %7877 = vmatpush1.bf16.msra.mxu0 %v10844_v11  ;;  %7868 = vmatmul.mubr.bf16.vlgmr.msra.gmra.mxu1 %v12628_v12  ;;  %v10931_v11 = vld [vmem:[%s12434_s15 + $0x518] ss:$72 sps:$4 sm:$0xff]  }
 0x2cc   : > { %7878 = vmatprep.subr.bf16.mxu0 %v10852_v14  ;;  %7918 = vmatpush1.bf16.msra.mxu1 %v10847_v15  ;;  %v10934_v14 = vld [vmem:[%s12434_s15 + $0x1680] ss:$72 sps:$4 sm:$0xff]   ;;  %v10939_v15 = vld [vmem:[%s12434_s15 + $0x48c] ss:$72 sps:$4 sm:$0xff]  }
 0x2cd   : > { %7949 = vmatprep.mubr.bf16.mxu1 %v12591_v46  ;;  %7919 = vmatprep.subr.bf16.mxu1 %v10855_v16  ;;  %v2506_v16 = vld [vmem:[%s13661_s5 + $0x20] sm:$0xff] }
 0x2ce   : > { %7908 = vmatprep.mubr.bf16.mxu0 %v12660_v34 }
 0x2cf   : > { %7879 = vmatpush1.bf16.msra.mxu0 %v10850_v17  ;;  %v10942_v17 = vld [vmem:[%s12434_s15 + $0xcfc] ss:$72 sps:$4 sm:$0xff]  }
 0x2d0   : > { %7880 = vmatprep.subr.bf16.mxu0 %v10858_v18  ;;  %7920 = vmatpush1.bf16.msra.mxu1 %v10853_v19  ;;  %v10937_v18 = vld [vmem:[%s12434_s15 + $0x488] ss:$72 sps:$4 sm:$0xff]   ;;  %v12704_v19 = vpack.c.bf16 %v2506_v16, %v2506_v16 }
 0x2d1   : > { %7921 = vmatprep.subr.bf16.mxu1 %v10861_v20  ;;  %v10945_v20 = vld [vmem:[%s12434_s15 + $0x15fc] ss:$72 sps:$4 sm:$0xff]   ;;  %v11021_v16 = vld [vmem:[%s12434_s15 + $0x17a8] ss:$72 sps:$4 sm:$0xff]  }
 0x2d3   : > { %7881 = vmatpush1.bf16.msra.mxu0 %v10856_v21  ;;  %v10940_v21 = vld [vmem:[%s12434_s15 + $0xcf8] ss:$72 sps:$4 sm:$0xff]  }
 0x2d4   : > { %7882 = vmatprep.subr.bf16.mxu0 %v10864_v22  ;;  %7922 = vmatpush1.bf16.msra.mxu1 %v10859_v13  ;;  %v10948_v22 = vld [vmem:[%s12434_s15 + $0xc6c] ss:$72 sps:$4 sm:$0xff]   ;;  %v10943_v13 = vld [vmem:[%s12434_s15 + $0x15f8] ss:$72 sps:$4 sm:$0xff]  }
 0x2d5   : > { %7923 = vmatprep.subr.bf16.mxu1 %v10867_v23  ;;  %v10951_v23 = vld [vmem:[%s12434_s15 + $0x156c] ss:$72 sps:$4 sm:$0xff]  }
 0x2d7   : > { %7883 = vmatpush1.bf16.msra.mxu0 %v10862_v24  ;;  %v10946_v24 = vld [vmem:[%s12434_s15 + $0xc68] ss:$72 sps:$4 sm:$0xff]  }
 0x2d8   : > { %7884 = vmatprep.subr.bf16.mxu0 %v10870_v25  ;;  %7924 = vmatpush1.bf16.msra.mxu1 %v10865_v26  ;;  %v10954_v25 = vld [vmem:[%s12434_s15 + $0xbdc] ss:$72 sps:$4 sm:$0xff]   ;;  %v10949_v26 = vld [vmem:[%s12434_s15 + $0x1568] ss:$72 sps:$4 sm:$0xff]  }
 0x2d9   : > { %7925 = vmatprep.subr.bf16.mxu1 %v10873_v27  ;;  %v10957_v27 = vld [vmem:[%s12434_s15 + $0x14dc] ss:$72 sps:$4 sm:$0xff]  }
 0x2db   : > { %7885 = vmatpush1.bf16.msra.mxu0 %v10868_v28  ;;  %v10952_v28 = vld [vmem:[%s12434_s15 + $0xbd8] ss:$72 sps:$4 sm:$0xff]  }
 0x2dc   : > { %7886 = vmatprep.subr.bf16.mxu0 %v10876_v29  ;;  %7926 = vmatpush1.bf16.msra.mxu1 %v10871_v30  ;;  %v10960_v29 = vld [vmem:[%s12434_s15 + $0xb4c] ss:$72 sps:$4 sm:$0xff]   ;;  %v10955_v30 = vld [vmem:[%s12434_s15 + $0x14d8] ss:$72 sps:$4 sm:$0xff]  }
 0x2dd   : > { %7927 = vmatprep.subr.bf16.mxu1 %v10879_v31  ;;  %v10963_v31 = vld [vmem:[%s12434_s15 + $0x144c] ss:$72 sps:$4 sm:$0xff]  }
 0x2df   : > { %7887 = vmatpush1.bf16.msra.mxu0 %v10874_v32  ;;  %v10958_v32 = vld [vmem:[%s12434_s15 + $0xb48] ss:$72 sps:$4 sm:$0xff]  }
 0x2e0   : > { %7888 = vmatprep.subr.bf16.mxu0 %v10882_v48  ;;  %7928 = vmatpush1.bf16.msra.mxu1 %v10877_v33  ;;  %v10966_v48 = vld [vmem:[%s12434_s15 + $0xabc] ss:$72 sps:$4 sm:$0xff]   ;;  %v10961_v33 = vld [vmem:[%s12434_s15 + $0x1448] ss:$72 sps:$4 sm:$0xff]  }
 0x2e1   : > { %7929 = vmatprep.subr.bf16.mxu1 %v10885_v5  ;;  %v10969_v5 = vld [vmem:[%s12434_s15 + $0x13bc] ss:$72 sps:$4 sm:$0xff]  }
 0x2e3   : > { %7889 = vmatpush1.bf16.msra.mxu0 %v10880_v36  ;;  %v10972_v36 = vld [vmem:[%s12434_s15 + $0xa2c] ss:$72 sps:$4 sm:$0xff]  }
 0x2e4   : > { %7890 = vmatprep.subr.bf16.mxu0 %v10888_v52  ;;  %7930 = vmatpush1.bf16.msra.mxu1 %v10883_v37  ;;  %v10967_v52 = vld [vmem:[%s12434_s15 + $0x13b8] ss:$72 sps:$4 sm:$0xff]   ;;  %v10975_v37 = vld [vmem:[%s12434_s15 + $0x132c] ss:$72 sps:$4 sm:$0xff]  }
 0x2e5   : > { %7931 = vmatprep.subr.bf16.mxu1 %v10891_v8  ;;  %v10970_v8 = vld [vmem:[%s12434_s15 + $0xa28] ss:$72 sps:$4 sm:$0xff]  }
 0x2e7   : > { %7891 = vmatpush1.bf16.msra.mxu0 %v10886_v38  ;;  %v10978_v38 = vld [vmem:[%s12434_s15 + $0x99c] ss:$72 sps:$4 sm:$0xff]  }
 0x2e8   : > { %7892 = vmatprep.subr.bf16.mxu0 %v10894_v39  ;;  %7932 = vmatpush1.bf16.msra.mxu1 %v10889_v40  ;;  %v10973_v39 = vld [vmem:[%s12434_s15 + $0x1328] ss:$72 sps:$4 sm:$0xff]   ;;  %v10981_v40 = vld [vmem:[%s12434_s15 + $0x129c] ss:$72 sps:$4 sm:$0xff]  }
 0x2e9   : > { %7933 = vmatprep.subr.bf16.mxu1 %v10897_v41  ;;  %v10976_v41 = vld [vmem:[%s12434_s15 + $0x998] ss:$72 sps:$4 sm:$0xff]  }
 0x2eb   : > { %7893 = vmatpush2.bf16.msra.mxu0 %v10892_v42  ;;  %v10984_v42 = vld [vmem:[%s12434_s15 + $0x90c] ss:$72 sps:$4 sm:$0xff]  }
 0x2ec   : > { %7894 = vmatprep.subr.bf16.mxu0 %v10900_v43  ;;  %7934 = vmatpush2.bf16.msra.mxu1 %v10895_v44  ;;  %v10979_v43 = vld [vmem:[%s12434_s15 + $0x1298] ss:$72 sps:$4 sm:$0xff]   ;;  %v10987_v44 = vld [vmem:[%s12434_s15 + $0x120c] ss:$72 sps:$4 sm:$0xff]  }
 0x2ed   : > { %7935 = vmatprep.subr.bf16.mxu1 %v10903_v45  ;;  %v10982_v45 = vld [vmem:[%s12434_s15 + $0x908] ss:$72 sps:$4 sm:$0xff]  }
 0x2ef   : > { %7895 = vmatpush2.bf16.msra.mxu0 %v10898_v47  ;;  %v10990_v47 = vld [vmem:[%s12434_s15 + $0x117c] ss:$72 sps:$4 sm:$0xff]  }
 0x2f0   : > { %7896 = vmatprep.subr.bf16.mxu0 %v10906_v49  ;;  %7936 = vmatpush2.bf16.msra.mxu1 %v10901_v50  ;;  %v10985_v49 = vld [vmem:[%s12434_s15 + $0x1208] ss:$72 sps:$4 sm:$0xff]   ;;  %v10993_v50 = vld [vmem:[%s12434_s15 + $0x1a7c] ss:$72 sps:$4 sm:$0xff]  }
 0x2f1   : > { %7937 = vmatprep.subr.bf16.mxu1 %v10909_v53  ;;  %v10988_v53 = vld [vmem:[%s12434_s15 + $0x1178] ss:$72 sps:$4 sm:$0xff]  }
 0x2f3   : > { %7897 = vmatpush2.bf16.msra.mxu0 %v10904_v54  ;;  %v10996_v54 = vld [vmem:[%s12434_s15 + $0x10ec] ss:$72 sps:$4 sm:$0xff]  }
 0x2f4   : > { %7898 = vmatprep.subr.bf16.mxu0 %v10912_v55  ;;  %7938 = vmatpush2.bf16.msra.mxu1 %v10907_v56  ;;  %v10991_v55 = vld [vmem:[%s12434_s15 + $0x1a78] ss:$72 sps:$4 sm:$0xff]   ;;  %v10999_v56 = vld [vmem:[%s12434_s15 + $0x19ec] ss:$72 sps:$4 sm:$0xff]  }
 0x2f5   : > { %7939 = vmatprep.subr.bf16.mxu1 %v10915_v58  ;;  %v10994_v58 = vld [vmem:[%s12434_s15 + $0x10e8] ss:$72 sps:$4 sm:$0xff]  }
 0x2f7   : > { %7899 = vmatpush2.bf16.msra.mxu0 %v10910_v59  ;;  %v11002_v59 = vld [vmem:[%s12434_s15 + $0x105c] ss:$72 sps:$4 sm:$0xff]  }
 0x2f8   : > { %7900 = vmatprep.subr.bf16.mxu0 %v10918_v60  ;;  %7940 = vmatpush2.bf16.msra.mxu1 %v10913_v62  ;;  %v10997_v60 = vld [vmem:[%s12434_s15 + $0x19e8] ss:$72 sps:$4 sm:$0xff]   ;;  %v11005_v62 = vld [vmem:[%s12434_s15 + $0x195c] ss:$72 sps:$4 sm:$0xff]  }
 0x2f9   : > { %7941 = vmatprep.subr.bf16.mxu1 %v10921_v63  ;;  %v11000_v63 = vld [vmem:[%s12434_s15 + $0x1058] ss:$72 sps:$4 sm:$0xff]  }
 0x2fb   : > { %7901 = vmatpush2.bf16.msra.mxu0 %v10916_v0  ;;  %v11008_v0 = vld [vmem:[%s12434_s15 + $0xfcc] ss:$72 sps:$4 sm:$0xff]  }
 0x2fc   : > { %7902 = vmatprep.subr.bf16.mxu0 %v10924_v57  ;;  %7942 = vmatpush2.bf16.msra.mxu1 %v10919_v61  ;;  %v11003_v57 = vld [vmem:[%s12434_s15 + $0x1958] ss:$72 sps:$4 sm:$0xff]   ;;  %v11011_v61 = vld [vmem:[%s12434_s15 + $0x18cc] ss:$72 sps:$4 sm:$0xff]  }
 0x2fd   : > { %7943 = vmatprep.subr.bf16.mxu1 %v10927_v1  ;;  %v11006_v1 = vld [vmem:[%s12434_s15 + $0xfc8] ss:$72 sps:$4 sm:$0xff]  }
 0x2ff   : > { %7903 = vmatpush2.bf16.msra.mxu0 %v10922_v2  ;;  %v11014_v2 = vld [vmem:[%s12434_s15 + $0xf3c] ss:$72 sps:$4 sm:$0xff]  }
 0x300   : > { %7904 = vmatprep.subr.bf16.mxu0 %v10930_v3  ;;  %7944 = vmatpush2.bf16.msra.mxu1 %v10925_v4  ;;  %v11009_v3 = vld [vmem:[%s12434_s15 + $0x18c8] ss:$72 sps:$4 sm:$0xff]   ;;  %v11017_v4 = vld [vmem:[%s12434_s15 + $0x183c] ss:$72 sps:$4 sm:$0xff]  }
 0x301   : > { %7945 = vmatprep.subr.bf16.mxu1 %v10933_v6  ;;  %v11012_v6 = vld [vmem:[%s12434_s15 + $0xf38] ss:$72 sps:$4 sm:$0xff]  }
 0x303   : > { %7905 = vmatpush2.bf16.msra.mxu0 %v10928_v7  ;;  %v11020_v7 = vld [vmem:[%s12434_s15 + $0xeac] ss:$72 sps:$4 sm:$0xff]  }
 0x304   : > { %7906 = vmatprep.subr.bf16.mxu0 %v10936_v10  ;;  %7946 = vmatpush2.bf16.msra.mxu1 %v10931_v11  ;;  %v11015_v10 = vld [vmem:[%s12434_s15 + $0x1838] ss:$72 sps:$4 sm:$0xff]   ;;  %v11023_v11 = vld [vmem:[%s12434_s15 + $0x17ac] ss:$72 sps:$4 sm:$0xff]  }
 0x305   : > { %7947 = vmatprep.subr.bf16.mxu1 %v10939_v15  ;;  %v11026_v15 = vld [vmem:[%s12434_s15 + $0xe1c] ss:$72 sps:$4 sm:$0xff]  }
 0x307   : > { %7907 = vmatpush2.bf16.msra.mxu0 %v10934_v14  ;;  %v11018_v14 = vld [vmem:[%s12434_s15 + $0xea8] ss:$72 sps:$4 sm:$0xff]  }
 0x308   : > { %7958 = vmatprep.subr.bf16.mxu0 %v10942_v17  ;;  %7948 = vmatpush2.bf16.msra.mxu1 %v10937_v18  ;;  %v11029_v17 = vld [vmem:[%s12434_s15 + $0x171c] ss:$72 sps:$4 sm:$0xff]   ;;  %v11024_v18 = vld [vmem:[%s12434_s15 + $0xe18] ss:$72 sps:$4 sm:$0xff]  }
 0x309   : > { %7999 = vmatprep.subr.bf16.mxu1 %v10945_v20  ;;  %v11032_v20 = vld [vmem:[%s12434_s15 + $0xd8c] ss:$72 sps:$4 sm:$0xff]  }
 0x30a   : > { %7909 = vmatmul.mubr.bf16.vlgmr.msra.gmra.mxu0 %v12704_v19 }
 0x30b   : > { %7959 = vmatpush1.bf16.msra.mxu0 %v10940_v21  ;;  %7990 = vmatprep.mubr.bf16.mxu0 %v12599_v51  ;;  %v11027_v21 = vld [vmem:[%s12434_s15 + $0x1718] ss:$72 sps:$4 sm:$0xff]  }
 0x30c   : > { %7950 = vmatmul.mubr.bf16.vlgmr.msra.gmra.mxu1 %v12624_v9  ;;  %7960 = vmatprep.subr.bf16.mxu0 %v10948_v22  ;;  %v11035_v22 = vld [vmem:[%s12434_s15 + $0x168c] ss:$72 sps:$4 sm:$0xff]  }
 0x30d   : > { %8000 = vmatpush1.bf16.msra.mxu1 %v10943_v13  ;;  %8031 = vmatprep.mubr.bf16.mxu1 %v12660_v34  ;;  %v11030_v13 = vld [vmem:[%s12434_s15 + $0xd88] ss:$72 sps:$4 sm:$0xff]  }
 0x30e   : > { %8001 = vmatprep.subr.bf16.mxu1 %v10951_v23  ;;  %v11038_v23 = vld [vmem:[%s12434_s15 + $0x404] ss:$72 sps:$4 sm:$0xff]  }
 0x30f   : > { %7961 = vmatpush1.bf16.msra.mxu0 %v10946_v24  ;;  %v11033_v24 = vld [vmem:[%s12434_s15 + $0x1688] ss:$72 sps:$4 sm:$0xff]  }
 0x310   : > { %7962 = vmatprep.subr.bf16.mxu0 %v10954_v25  ;;  %v11041_v25 = vld [vmem:[%s12434_s15 + $0xd04] ss:$72 sps:$4 sm:$0xff]  }
 0x311   : > { %8002 = vmatpush1.bf16.msra.mxu1 %v10949_v26  ;;  %v11036_v26 = vld [vmem:[%s12434_s15 + $0x400] ss:$72 sps:$4 sm:$0xff]  }
 0x312   : > { %8003 = vmatprep.subr.bf16.mxu1 %v10957_v27  ;;  %v11044_v27 = vld [vmem:[%s12434_s15 + $0x374] ss:$72 sps:$4 sm:$0xff]  }
 0x313   : > { %7963 = vmatpush1.bf16.msra.mxu0 %v10952_v28  ;;  %v11039_v28 = vld [vmem:[%s12434_s15 + $0xd00] ss:$72 sps:$4 sm:$0xff]  }
 0x314   : > { %7964 = vmatprep.subr.bf16.mxu0 %v10960_v29  ;;  %v11047_v29 = vld [vmem:[%s12434_s15 + $0xc74] ss:$72 sps:$4 sm:$0xff]  }
 0x315   : > { %8004 = vmatpush1.bf16.msra.mxu1 %v10955_v30  ;;  %v11042_v30 = vld [vmem:[%s12434_s15 + $0x370] ss:$72 sps:$4 sm:$0xff]  }
 0x316   : > { %8005 = vmatprep.subr.bf16.mxu1 %v10963_v31  ;;  %v11050_v31 = vld [vmem:[%s12434_s15 + $0x2e4] ss:$72 sps:$4 sm:$0xff]  }
 0x317   : > { %7965 = vmatpush1.bf16.msra.mxu0 %v10958_v32  ;;  %v11045_v32 = vld [vmem:[%s12434_s15 + $0xc70] ss:$72 sps:$4 sm:$0xff]  }
 0x318   : > { %7966 = vmatprep.subr.bf16.mxu0 %v10966_v48  ;;  %v11053_v48 = vld [vmem:[%s12434_s15 + $0xbe4] ss:$72 sps:$4 sm:$0xff]  }
 0x319   : > { %8006 = vmatpush1.bf16.msra.mxu1 %v10961_v33  ;;  %v11048_v33 = vld [vmem:[%s12434_s15 + $0x2e0] ss:$72 sps:$4 sm:$0xff]  }
 0x31a   : > { %8007 = vmatprep.subr.bf16.mxu1 %v10969_v5  ;;  %v11056_v5 = vld [vmem:[%s12434_s15 + $0x254] ss:$72 sps:$4 sm:$0xff]  }
 0x31b   : > { %7967 = vmatpush1.bf16.msra.mxu0 %v10964_v35  ;;  %v11051_v35 = vld [vmem:[%s12434_s15 + $0xbe0] ss:$72 sps:$4 sm:$0xff]  }
 0x31c   : > { %7968 = vmatprep.subr.bf16.mxu0 %v10972_v36  ;;  %v11059_v36 = vld [vmem:[%s12434_s15 + $0xb54] ss:$72 sps:$4 sm:$0xff]  }
 0x31d   : > { %8008 = vmatpush1.bf16.msra.mxu1 %v10967_v52  ;;  %v11054_v52 = vld [vmem:[%s12434_s15 + $0x250] ss:$72 sps:$4 sm:$0xff]  }
 0x31e   : > { %8009 = vmatprep.subr.bf16.mxu1 %v10975_v37  ;;  %v11062_v37 = vld [vmem:[%s12434_s15 + $0x1c4] ss:$72 sps:$4 sm:$0xff]  }
 0x31f   : > { %7969 = vmatpush1.bf16.msra.mxu0 %v10970_v8  ;;  %v11057_v8 = vld [vmem:[%s12434_s15 + $0xb50] ss:$72 sps:$4 sm:$0xff]  }
 0x320   : > { %7970 = vmatprep.subr.bf16.mxu0 %v10978_v38  ;;  %v11065_v38 = vld [vmem:[%s12434_s15 + $0xac4] ss:$72 sps:$4 sm:$0xff]  }
 0x321   : > { %8010 = vmatpush1.bf16.msra.mxu1 %v10973_v39  ;;  %v11060_v39 = vld [vmem:[%s12434_s15 + $0x1c0] ss:$72 sps:$4 sm:$0xff]  }
 0x322   : > { %8011 = vmatprep.subr.bf16.mxu1 %v10981_v40  ;;  %v11068_v40 = vld [vmem:[%s12434_s15 + $0x134] ss:$72 sps:$4 sm:$0xff]  }
 0x323   : > { %7971 = vmatpush1.bf16.msra.mxu0 %v10976_v41  ;;  %v11063_v41 = vld [vmem:[%s12434_s15 + $0xac0] ss:$72 sps:$4 sm:$0xff]  }
 0x324   : > { %7972 = vmatprep.subr.bf16.mxu0 %v10984_v42  ;;  %v11071_v42 = vld [vmem:[%s12434_s15 + $0xa34] ss:$72 sps:$4 sm:$0xff]  }
 0x325   : > { %8012 = vmatpush1.bf16.msra.mxu1 %v10979_v43  ;;  %v11066_v43 = vld [vmem:[%s12434_s15 + $0x130] ss:$72 sps:$4 sm:$0xff]  }
 0x326   : > { %8013 = vmatprep.subr.bf16.mxu1 %v10987_v44  ;;  %v11074_v44 = vld [vmem:[%s12434_s15 + $0xa4] ss:$72 sps:$4 sm:$0xff]  }
 0x327   : > { %7973 = vmatpush1.bf16.msra.mxu0 %v10982_v45  ;;  %v11069_v45 = vld [vmem:[%s12434_s15 + $0xa30] ss:$72 sps:$4 sm:$0xff]  }
 0x328   : > { %7974 = vmatprep.subr.bf16.mxu0 %v10990_v47  ;;  %v11077_v47 = vld [vmem:[%s12434_s15 + $0x9a4] ss:$72 sps:$4 sm:$0xff]  }
 0x329   : > { %8014 = vmatpush1.bf16.msra.mxu1 %v10985_v49  ;;  %v11072_v49 = vld [vmem:[%s12434_s15 + $0xa0] ss:$72 sps:$4 sm:$0xff]  }
 0x32a   : > { %8015 = vmatprep.subr.bf16.mxu1 %v10993_v50  ;;  %v11080_v50 = vld [vmem:[%s12434_s15 + $0x14] ss:$72 sps:$4 sm:$0xff]  }
 0x32b   : > { %7975 = vmatpush2.bf16.msra.mxu0 %v10988_v53  ;;  %v11075_v53 = vld [vmem:[%s12434_s15 + $0x9a0] ss:$72 sps:$4 sm:$0xff]  }
 0x32c   : > { %7976 = vmatprep.subr.bf16.mxu0 %v10996_v54  ;;  %v11083_v54 = vld [vmem:[%s12434_s15 + $0x914] ss:$72 sps:$4 sm:$0xff]  }
 0x32d   : > { %8016 = vmatpush2.bf16.msra.mxu1 %v10991_v55  ;;  %v11078_v55 = vld [vmem:[%s12434_s15 + $0x10] ss:$72 sps:$4 sm:$0xff]  }
 0x32e   : > { %8017 = vmatprep.subr.bf16.mxu1 %v10999_v56  ;;  %v11086_v56 = vld [vmem:[%s12434_s15 + $0x884] ss:$72 sps:$4 sm:$0xff]  }
 0x32f   : > { %7977 = vmatpush2.bf16.msra.mxu0 %v10994_v58  ;;  %v11081_v58 = vld [vmem:[%s12434_s15 + $0x910] ss:$72 sps:$4 sm:$0xff]  }
 0x330   : > { %7978 = vmatprep.subr.bf16.mxu0 %v11002_v59  ;;  %v11089_v59 = vld [vmem:[%s12434_s15 + $0x1184] ss:$72 sps:$4 sm:$0xff]  }
 0x331   : > { %8018 = vmatpush2.bf16.msra.mxu1 %v10997_v60  ;;  %v11084_v60 = vld [vmem:[%s12434_s15 + $0x880] ss:$72 sps:$4 sm:$0xff]  }
 0x332   : > { %8019 = vmatprep.subr.bf16.mxu1 %v11005_v62  ;;  %v11092_v62 = vld [vmem:[%s12434_s15 + $0x7f4] ss:$72 sps:$4 sm:$0xff]  }
 0x333   : > { %7979 = vmatpush2.bf16.msra.mxu0 %v11000_v63  ;;  %v11087_v63 = vld [vmem:[%s12434_s15 + $0x1180] ss:$72 sps:$4 sm:$0xff]  }
 0x334   : > { %7980 = vmatprep.subr.bf16.mxu0 %v11008_v0  ;;  %v11095_v0 = vld [vmem:[%s12434_s15 + $0x10f4] ss:$72 sps:$4 sm:$0xff]  }
 0x335   : > { %8020 = vmatpush2.bf16.msra.mxu1 %v11003_v57  ;;  %v11090_v57 = vld [vmem:[%s12434_s15 + $0x7f0] ss:$72 sps:$4 sm:$0xff]  }
 0x336   : > { %8021 = vmatprep.subr.bf16.mxu1 %v11011_v61  ;;  %v11098_v61 = vld [vmem:[%s12434_s15 + $0x764] ss:$72 sps:$4 sm:$0xff]  }
 0x337   : > { %7981 = vmatpush2.bf16.msra.mxu0 %v11006_v1  ;;  %v11093_v1 = vld [vmem:[%s12434_s15 + $0x10f0] ss:$72 sps:$4 sm:$0xff]  }
 0x338   : > { %7982 = vmatprep.subr.bf16.mxu0 %v11014_v2  ;;  %v11101_v2 = vld [vmem:[%s12434_s15 + $0x1064] ss:$72 sps:$4 sm:$0xff]  }
 0x339   : > { %8022 = vmatpush2.bf16.msra.mxu1 %v11009_v3  ;;  %v11096_v3 = vld [vmem:[%s12434_s15 + $0x760] ss:$72 sps:$4 sm:$0xff]  }
 0x33a   : > { %8023 = vmatprep.subr.bf16.mxu1 %v11017_v4  ;;  %v11104_v4 = vld [vmem:[%s12434_s15 + $0x6d4] ss:$72 sps:$4 sm:$0xff]  }
 0x33b   : > { %7983 = vmatpush2.bf16.msra.mxu0 %v11012_v6  ;;  %v11099_v6 = vld [vmem:[%s12434_s15 + $0x1060] ss:$72 sps:$4 sm:$0xff]  }
 0x33c   : > { %7984 = vmatprep.subr.bf16.mxu0 %v11020_v7  ;;  %v11107_v7 = vld [vmem:[%s12434_s15 + $0xfd4] ss:$72 sps:$4 sm:$0xff]  }
 0x33d   : > { %8024 = vmatpush2.bf16.msra.mxu1 %v11015_v10  ;;  %v11102_v10 = vld [vmem:[%s12434_s15 + $0x6d0] ss:$72 sps:$4 sm:$0xff]  }
 0x33e   : > { %8025 = vmatprep.subr.bf16.mxu1 %v11023_v11  ;;  %v11110_v11 = vld [vmem:[%s12434_s15 + $0x644] ss:$72 sps:$4 sm:$0xff]  }
 0x33f   : > { %7985 = vmatpush2.bf16.msra.mxu0 %v11018_v14  ;;  %v11105_v14 = vld [vmem:[%s12434_s15 + $0xfd0] ss:$72 sps:$4 sm:$0xff]  }
 0x340   : > { %7986 = vmatprep.subr.bf16.mxu0 %v11026_v15  ;;  %v11113_v15 = vld [vmem:[%s12434_s15 + $0xf44] ss:$72 sps:$4 sm:$0xff]  }
 0x341   : > { %8026 = vmatpush2.bf16.msra.mxu1 %v11021_v16  ;;  %v11108_v16 = vld [vmem:[%s12434_s15 + $0x640] ss:$72 sps:$4 sm:$0xff]  }
 0x342   : > { %8027 = vmatprep.subr.bf16.mxu1 %v11029_v17  ;;  %v11116_v17 = vld [vmem:[%s12434_s15 + $0x5b4] ss:$72 sps:$4 sm:$0xff]  }
 0x343   : > { %7987 = vmatpush2.bf16.msra.mxu0 %v11024_v18  ;;  %v11111_v18 = vld [vmem:[%s12434_s15 + $0xf40] ss:$72 sps:$4 sm:$0xff]  }
 0x344   : > { %7988 = vmatprep.subr.bf16.mxu0 %v11032_v20  ;;  %v11119_v20 = vld [vmem:[%s12434_s15 + $0xeb4] ss:$72 sps:$4 sm:$0xff]  }
 0x345   : > { %8028 = vmatpush2.bf16.msra.mxu1 %v11027_v21  ;;  %v11114_v21 = vld [vmem:[%s12434_s15 + $0x5b0] ss:$72 sps:$4 sm:$0xff]  }
 0x346   : > { %8029 = vmatprep.subr.bf16.mxu1 %v11035_v22  ;;  %v11122_v22 = vld [vmem:[%s12434_s15 + $0x524] ss:$72 sps:$4 sm:$0xff]  }
 0x347   : > { %7989 = vmatpush2.bf16.msra.mxu0 %v11030_v13  ;;  %v11117_v13 = vld [vmem:[%s12434_s15 + $0xeb0] ss:$72 sps:$4 sm:$0xff]  }
 0x348   : > { %8040 = vmatprep.subr.bf16.mxu0 %v11038_v23  ;;  %v11125_v23 = vld [vmem:[%s12434_s15 + $0xe24] ss:$72 sps:$4 sm:$0xff]  }
 0x349   : > { %8030 = vmatpush2.bf16.msra.mxu1 %v11033_v24  ;;  %v11120_v24 = vld [vmem:[%s12434_s15 + $0x520] ss:$72 sps:$4 sm:$0xff]  }
 0x34a   : > { %7991 = vmatmul.mubr.bf16.vlgmr.msra.gmra.mxu0 %v12628_v12  ;;  %8081 = vmatprep.subr.bf16.mxu1 %v11041_v25  ;;  %v11128_v25 = vld [vmem:[%s12434_s15 + $0x494] ss:$72 sps:$4 sm:$0xff]  }
 0x34b   : > { %8041 = vmatpush1.bf16.msra.mxu0 %v11036_v26  ;;  %8072 = vmatprep.mubr.bf16.mxu0 %v12591_v46  ;;  %v11123_v26 = vld [vmem:[%s12434_s15 + $0xe20] ss:$72 sps:$4 sm:$0xff]  }
 0x34c   : > { %8032 = vmatmul.mubr.bf16.vlgmr.msra.gmra.mxu1 %v12704_v19  ;;  %8042 = vmatprep.subr.bf16.mxu0 %v11044_v27  ;;  %v11131_v27 = vld [vmem:[%s12434_s15 + $0xd94] ss:$72 sps:$4 sm:$0xff]  }
 0x34d   : > { %8082 = vmatpush1.bf16.msra.mxu1 %v11039_v28  ;;  %8113 = vmatprep.mubr.bf16.mxu1 %v12599_v51  ;;  %v11126_v28 = vld [vmem:[%s12434_s15 + $0x490] ss:$72 sps:$4 sm:$0xff]  }
 0x34e   : > { %8083 = vmatprep.subr.bf16.mxu1 %v11047_v29  ;;  %v11134_v29 = vld [vmem:[%s12434_s15 + $0x1604] ss:$72 sps:$4 sm:$0xff]  }
 0x34f   : > { %8043 = vmatpush1.bf16.msra.mxu0 %v11042_v30  ;;  %v11129_v30 = vld [vmem:[%s12434_s15 + $0xd90] ss:$72 sps:$4 sm:$0xff]  }
 0x350   : > { %8044 = vmatprep.subr.bf16.mxu0 %v11050_v31  ;;  %v11137_v31 = vld [vmem:[%s12434_s15 + $0x40c] ss:$72 sps:$4 sm:$0xff]  }
 0x351   : > { %8084 = vmatpush1.bf16.msra.mxu1 %v11045_v32  ;;  %v11132_v32 = vld [vmem:[%s12434_s15 + $0x1600] ss:$72 sps:$4 sm:$0xff]  }
 0x352   : > { %8085 = vmatprep.subr.bf16.mxu1 %v11053_v48  ;;  %v11140_v48 = vld [vmem:[%s12434_s15 + $0x1574] ss:$72 sps:$4 sm:$0xff]  }
 0x353   : > { %8045 = vmatpush1.bf16.msra.mxu0 %v11048_v33  ;;  %v11135_v33 = vld [vmem:[%s12434_s15 + $0x408] ss:$72 sps:$4 sm:$0xff]  }
 0x354   : > { %8046 = vmatprep.subr.bf16.mxu0 %v11056_v5 }
 0x355   : > { %8086 = vmatpush1.bf16.msra.mxu1 %v11051_v35  ;;  %v11143_v35 = vld [vmem:[%s12434_s15 + $0x37c] ss:$72 sps:$4 sm:$0xff]  }
 0x356   : > { %8087 = vmatprep.subr.bf16.mxu1 %v11059_v36  ;;  %v11138_v36 = vld [vmem:[%s12434_s15 + $0x1570] ss:$72 sps:$4 sm:$0xff]  }
 0x357   : > { %8047 = vmatpush1.bf16.msra.mxu0 %v11054_v52 }
 0x358   : > { %8048 = vmatprep.subr.bf16.mxu0 %v11062_v37 }
 0x359   : > { %8088 = vmatpush1.bf16.msra.mxu1 %v11057_v8  ;;  %v11146_v8 = vld [vmem:[%s12434_s15 + $0x14e4] ss:$72 sps:$4 sm:$0xff]  }
 0x35a   : > { %8089 = vmatprep.subr.bf16.mxu1 %v11065_v38  ;;  %v11141_v38 = vld [vmem:[%s12434_s15 + $0x378] ss:$72 sps:$4 sm:$0xff]  }
 0x35b   : > { %8049 = vmatpush1.bf16.msra.mxu0 %v11060_v39 }
 0x35c   : > { %8050 = vmatprep.subr.bf16.mxu0 %v11068_v40 }
 0x35d   : > { %8090 = vmatpush1.bf16.msra.mxu1 %v11063_v41  ;;  %v11149_v41 = vld [vmem:[%s12434_s15 + $0x2ec] ss:$72 sps:$4 sm:$0xff]  }
 0x35e   : > { %8091 = vmatprep.subr.bf16.mxu1 %v11071_v42  ;;  %v11144_v42 = vld [vmem:[%s12434_s15 + $0x14e0] ss:$72 sps:$4 sm:$0xff]  }
 0x35f   : > { %8051 = vmatpush1.bf16.msra.mxu0 %v11066_v43 }
 0x360   : > { %8052 = vmatprep.subr.bf16.mxu0 %v11074_v44  ;;  %v11152_v44 = vld [vmem:[%s12434_s15 + $0x1454] ss:$72 sps:$4 sm:$0xff]  }
 0x361   : > { %8092 = vmatpush1.bf16.msra.mxu1 %v11069_v45 }
 0x362   : > { %8093 = vmatprep.subr.bf16.mxu1 %v11077_v47  ;;  %v11147_v47 = vld [vmem:[%s12434_s15 + $0x2e8] ss:$72 sps:$4 sm:$0xff]  }
 0x363   : > { %8053 = vmatpush1.bf16.msra.mxu0 %v11072_v49  ;;  %v11155_v49 = vld [vmem:[%s12434_s15 + $0x25c] ss:$72 sps:$4 sm:$0xff]  }
 0x364   : > { %8054 = vmatprep.subr.bf16.mxu0 %v11080_v50 }
 0x365   : > { %8094 = vmatpush1.bf16.msra.mxu1 %v11075_v53  ;;  %v11150_v53 = vld [vmem:[%s12434_s15 + $0x1450] ss:$72 sps:$4 sm:$0xff]  }
 0x366   : > { %8095 = vmatprep.subr.bf16.mxu1 %v11083_v54  ;;  %v11158_v54 = vld [vmem:[%s12434_s15 + $0x13c4] ss:$72 sps:$4 sm:$0xff]  }
 0x367   : > { %8055 = vmatpush1.bf16.msra.mxu0 %v11078_v55  ;;  %v11153_v55 = vld [vmem:[%s12434_s15 + $0x258] ss:$72 sps:$4 sm:$0xff]  }
 0x368   : > { %8056 = vmatprep.subr.bf16.mxu0 %v11086_v56  ;;  %v11161_v56 = vld [vmem:[%s12434_s15 + $0x1cc] ss:$72 sps:$4 sm:$0xff]  }
 0x369   : > { %8096 = vmatpush1.bf16.msra.mxu1 %v11081_v58  ;;  %v11156_v58 = vld [vmem:[%s12434_s15 + $0x13c0] ss:$72 sps:$4 sm:$0xff]  }
 0x36a   : > { %8097 = vmatprep.subr.bf16.mxu1 %v11089_v59  ;;  %v11164_v59 = vld [vmem:[%s12434_s15 + $0x1334] ss:$72 sps:$4 sm:$0xff]  }
 0x36b   : > { %8057 = vmatpush2.bf16.msra.mxu0 %v11084_v60  ;;  %v11159_v60 = vld [vmem:[%s12434_s15 + $0x1c8] ss:$72 sps:$4 sm:$0xff]  }
 0x36c   : > { %8058 = vmatprep.subr.bf16.mxu0 %v11092_v62  ;;  %v11167_v62 = vld [vmem:[%s12434_s15 + $0x13c] ss:$72 sps:$4 sm:$0xff]  }
 0x36d   : > { %8098 = vmatpush2.bf16.msra.mxu1 %v11087_v63  ;;  %v11162_v63 = vld [vmem:[%s12434_s15 + $0x1330] ss:$72 sps:$4 sm:$0xff]  }
 0x36e   : > { %8099 = vmatprep.subr.bf16.mxu1 %v11095_v0  ;;  %v11170_v0 = vld [vmem:[%s12434_s15 + $0x12a4] ss:$72 sps:$4 sm:$0xff]  }
 0x36f   : > { %8059 = vmatpush2.bf16.msra.mxu0 %v11090_v57  ;;  %v11165_v57 = vld [vmem:[%s12434_s15 + $0x138] ss:$72 sps:$4 sm:$0xff]  }
 0x370   : > { %8060 = vmatprep.subr.bf16.mxu0 %v11098_v61  ;;  %v11173_v61 = vld [vmem:[%s12434_s15 + $0xac] ss:$72 sps:$4 sm:$0xff]  }
 0x371   : > { %8100 = vmatpush2.bf16.msra.mxu1 %v11093_v1  ;;  %v11168_v1 = vld [vmem:[%s12434_s15 + $0x12a0] ss:$72 sps:$4 sm:$0xff]  }
 0x372   : > { %8101 = vmatprep.subr.bf16.mxu1 %v11101_v2  ;;  %v11176_v2 = vld [vmem:[%s12434_s15 + $0x1214] ss:$72 sps:$4 sm:$0xff]  }
 0x373   : > { %8061 = vmatpush2.bf16.msra.mxu0 %v11096_v3  ;;  %v11171_v3 = vld [vmem:[%s12434_s15 + $0xa8] ss:$72 sps:$4 sm:$0xff]  }
 0x374   : > { %8062 = vmatprep.subr.bf16.mxu0 %v11104_v4  ;;  %v11179_v4 = vld [vmem:[%s12434_s15 + $0x1c] ss:$72 sps:$4 sm:$0xff]  }
 0x375   : > { %8102 = vmatpush2.bf16.msra.mxu1 %v11099_v6  ;;  %v11174_v6 = vld [vmem:[%s12434_s15 + $0x1210] ss:$72 sps:$4 sm:$0xff]  }
 0x376   : > { %8103 = vmatprep.subr.bf16.mxu1 %v11107_v7  ;;  %v11182_v7 = vld [vmem:[%s12434_s15 + $0x1a84] ss:$72 sps:$4 sm:$0xff]  }
 0x377   : > { %8063 = vmatpush2.bf16.msra.mxu0 %v11102_v10  ;;  %v11177_v10 = vld [vmem:[%s12434_s15 + $0x18] ss:$72 sps:$4 sm:$0xff]  }
 0x378   : > { %8064 = vmatprep.subr.bf16.mxu0 %v11110_v11  ;;  %v11185_v11 = vld [vmem:[%s12434_s15 + $0x88c] ss:$72 sps:$4 sm:$0xff]  }
 0x379   : > { %8104 = vmatpush2.bf16.msra.mxu1 %v11105_v14  ;;  %v11180_v14 = vld [vmem:[%s12434_s15 + $0x1a80] ss:$72 sps:$4 sm:$0xff]  }
 0x37a   : > { %8105 = vmatprep.subr.bf16.mxu1 %v11113_v15  ;;  %v11188_v15 = vld [vmem:[%s12434_s15 + $0x19f4] ss:$72 sps:$4 sm:$0xff]  }
 0x37b   : > { %8065 = vmatpush2.bf16.msra.mxu0 %v11108_v16  ;;  %v11183_v16 = vld [vmem:[%s12434_s15 + $0x888] ss:$72 sps:$4 sm:$0xff]  }
 0x37c   : > { %8066 = vmatprep.subr.bf16.mxu0 %v11116_v17  ;;  %v11191_v17 = vld [vmem:[%s12434_s15 + $0x7fc] ss:$72 sps:$4 sm:$0xff]  }
 0x37d   : > { %8106 = vmatpush2.bf16.msra.mxu1 %v11111_v18  ;;  %v11186_v18 = vld [vmem:[%s12434_s15 + $0x19f0] ss:$72 sps:$4 sm:$0xff]  }
 0x37e   : > { %8107 = vmatprep.subr.bf16.mxu1 %v11119_v20  ;;  %v11194_v20 = vld [vmem:[%s12434_s15 + $0x1964] ss:$72 sps:$4 sm:$0xff]  }
 0x37f   : > { %8067 = vmatpush2.bf16.msra.mxu0 %v11114_v21  ;;  %v11189_v21 = vld [vmem:[%s12434_s15 + $0x7f8] ss:$72 sps:$4 sm:$0xff]  }
 0x380   : > { %8068 = vmatprep.subr.bf16.mxu0 %v11122_v22  ;;  %v11197_v22 = vld [vmem:[%s12434_s15 + $0x76c] ss:$72 sps:$4 sm:$0xff]  }
 0x381   : > { %8108 = vmatpush2.bf16.msra.mxu1 %v11117_v13  ;;  %v11192_v13 = vld [vmem:[%s12434_s15 + $0x1960] ss:$72 sps:$4 sm:$0xff]  }
 0x382   : > { %8109 = vmatprep.subr.bf16.mxu1 %v11125_v23  ;;  %v11200_v23 = vld [vmem:[%s12434_s15 + $0x18d4] ss:$72 sps:$4 sm:$0xff]  }
 0x383   : > { %8069 = vmatpush2.bf16.msra.mxu0 %v11120_v24  ;;  %v11195_v24 = vld [vmem:[%s12434_s15 + $0x768] ss:$72 sps:$4 sm:$0xff]  }
 0x384   : > { %8070 = vmatprep.subr.bf16.mxu0 %v11128_v25  ;;  %v11203_v25 = vld [vmem:[%s12434_s15 + $0x6dc] ss:$72 sps:$4 sm:$0xff]  }
 0x385   : > { %8110 = vmatpush2.bf16.msra.mxu1 %v11123_v26  ;;  %v11198_v26 = vld [vmem:[%s12434_s15 + $0x18d0] ss:$72 sps:$4 sm:$0xff]  }
 0x386   : > { %8111 = vmatprep.subr.bf16.mxu1 %v11131_v27  ;;  %v11206_v27 = vld [vmem:[%s12434_s15 + $0x1844] ss:$72 sps:$4 sm:$0xff]  }
 0x387   : > { %8071 = vmatpush2.bf16.msra.mxu0 %v11126_v28  ;;  %v3384_v28 = vlaneseq }
 0x388   : > { %8122 = vmatprep.subr.bf16.mxu0 %v11134_v29  ;;  %v11201_v29 = vld [vmem:[%s12434_s15 + $0x6d8] ss:$72 sps:$4 sm:$0xff]  }
 0x389   : > { %8112 = vmatpush2.bf16.msra.mxu1 %v11129_v30  ;;  %v11209_v30 = vld [vmem:[%s12434_s15 + $0x64c] ss:$72 sps:$4 sm:$0xff]  }
 0x38a   : > { %v12846_v5 = vpop.f32.mrf.mxu0  ;;  %8073 = vmatmul.mubr.bf16.vlgmr.msra.gmra.mxu0 %v12624_v9  ;;  %8163 = vmatprep.subr.bf16.mxu1 %v11137_v31  ;;  %v11204_v31 = vld [vmem:[%s12434_s15 + $0x1840] ss:$72 sps:$4 sm:$0xff]  }
 0x38b   : > { %8123 = vmatpush1.bf16.msra.mxu0 %v11132_v32  ;;  %8154 = vmatprep.mubr.bf16.mxu0 %v12660_v34  ;;  %v12854_v37 = vpop.f32.mrf.mxu1  ;;  %v11212_v32 = vld [vmem:[%s12434_s15 + $0x17b4] ss:$72 sps:$4 sm:$0xff]  }
 0x38c   : > { %v12852_v52 = vpop.f32.mrf.mxu0  ;;  %8114 = vmatmul.mubr.bf16.vlgmr.msra.gmra.mxu1 %v12628_v12  ;;  %8124 = vmatprep.subr.bf16.mxu0 %v11140_v48  ;;  %v12905_v48 = vshrl.u32 %v3384_v28, 7 }
 0x38d   : > { %8164 = vmatpush1.bf16.msra.mxu1 %v11135_v33  ;;  %8195 = vmatprep.mubr.bf16.mxu1 %v12591_v46  ;;  %v12860_v40 = vpop.f32.mrf.mxu1  ;;  %v11207_v33 = vld [vmem:[%s12434_s15 + $0x648] ss:$72 sps:$4 sm:$0xff]  }
 0x38e   : > { %v7832_v39 = vpop.f32.mrf.mxu0  ;;  %8165 = vmatprep.subr.bf16.mxu1 %v11143_v35  ;;  %v11215_v35 = vld [vmem:[%s12434_s15 + $0x5bc] ss:$72 sps:$4 sm:$0xff]  }
 0x38f   : > { %8125 = vmatpush1.bf16.msra.mxu0 %v11138_v36  ;;  %v7873_v45 = vpop.f32.mrf.mxu1  ;;  %v11210_v36 = vld [vmem:[%s12434_s15 + $0x17b0] ss:$72 sps:$4 sm:$0xff]   ;;  %v12915_v39 = vsub.s32 0, %v12905_v48 }
 0x390   : > { %v7833_v43 = vpop.f32.mrf.mxu0  ;;  %8126 = vmatprep.subr.bf16.mxu0 %v11146_v8  ;;  %v12911_v8 = vld [vmem:[%s12446_s26] sm:$0xff] }
 0x391   : > { %8166 = vmatpush1.bf16.msra.mxu1 %v11141_v38  ;;  %v7874_v50 = vpop.f32.mrf.mxu1  ;;  %v11218_v38 = vld [vmem:[%s12434_s15 + $0x1724] ss:$72 sps:$4 sm:$0xff]   ;;  %v12920_v43 = vsub.s32 1, %v12905_v48  ;;  %v11224_v45 = vld [vmem:[%s12434_s15 + $0x1694] ss:$72 sps:$4 sm:$0xff]  }
 0x392   : > { %8167 = vmatprep.subr.bf16.mxu1 %v11149_v41  ;;  %v11213_v41 = vld [vmem:[%s12434_s15 + $0x5b8] ss:$72 sps:$4 sm:$0xff]   ;;  %v11227_v50 = vld [vmem:[%s12434_s15 + $0x49c] ss:$72 sps:$4 sm:$0xff]  }
 0x393   : > { %8127 = vmatpush1.bf16.msra.mxu0 %v11144_v42  ;;  %v11221_v42 = vld [vmem:[%s12434_s15 + $0x52c] ss:$72 sps:$4 sm:$0xff]  }
 0x394   : > { %8128 = vmatprep.subr.bf16.mxu0 %v11152_v44  ;;  %v11216_v44 = vld [vmem:[%s12434_s15 + $0x1720] ss:$72 sps:$4 sm:$0xff]  }
 0x395   : > { %8168 = vmatpush1.bf16.msra.mxu1 %v11147_v47  ;;  %v3387_v47 = vrot.slane %v12911_v8, %v12915_v39 }
 0x396   : > { %8169 = vmatprep.subr.bf16.mxu1 %v11155_v49  ;;  %v11219_v49 = vld [vmem:[%s12434_s15 + $0x528] ss:$72 sps:$4 sm:$0xff]  }
 0x397   : > { %8129 = vmatpush1.bf16.msra.mxu0 %v11150_v53  ;;  %v3391_v53 = vrot.slane %v12911_v8, %v12920_v43 }
 0x398   : > { %8130 = vmatprep.subr.bf16.mxu0 %v11158_v54  ;;  %v11222_v54 = vld [vmem:[%s12434_s15 + $0x1690] ss:$72 sps:$4 sm:$0xff]  }
 0x399   : > { %8170 = vmatpush1.bf16.msra.mxu1 %v11153_v55  ;;  %v11230_v55 = vld [vmem:[%s12434_s15 + $0xd0c] ss:$72 sps:$4 sm:$0xff]  }
 0x39a   : > { %8171 = vmatprep.subr.bf16.mxu1 %v11161_v56  ;;  %v7829_v56 = vadd.f32 %v12846_v5, %v3387_v47  ;;  %v11239_v5 = vld [vmem:[%s12434_s15 + $0x157c] ss:$72 sps:$4 sm:$0xff]   ;;  %v11273_v47 = vld [vmem:[%s12434_s15 + $0x1218] ss:$72 sps:$4 sm:$0xff]  }
 0x39b   : > { %8131 = vmatpush1.bf16.msra.mxu0 %v11156_v58  ;;  %v11225_v58 = vld [vmem:[%s12434_s15 + $0x498] ss:$72 sps:$4 sm:$0xff]  }
 0x39c   : > { %8132 = vmatprep.subr.bf16.mxu0 %v11164_v59  ;;  %v11233_v59 = vld [vmem:[%s12434_s15 + $0x160c] ss:$72 sps:$4 sm:$0xff]  }
 0x39d   : > { %8172 = vmatpush1.bf16.msra.mxu1 %v11159_v60  ;;  %v7831_v60 = vadd.f32 %v12852_v52, %v3391_v53  ;;  %v11234_v52 = vld [vmem:[%s12434_s15 + $0xc78] ss:$72 sps:$4 sm:$0xff]   ;;  %v11284_v53 = vld [vmem:[%s12434_s15 + $0x10fc] ss:$72 sps:$4 sm:$0xff]  }
 0x39e   : > { %8173 = vmatprep.subr.bf16.mxu1 %v11167_v62  ;;  %v11228_v62 = vld [vmem:[%s12434_s15 + $0xd08] ss:$72 sps:$4 sm:$0xff]  }
 0x39f   : > { %8133 = vmatpush1.bf16.msra.mxu0 %v11162_v63  ;;  %v11236_v63 = vld [vmem:[%s12434_s15 + $0xc7c] ss:$72 sps:$4 sm:$0xff]  }
 0x3a0   : > { %8134 = vmatprep.subr.bf16.mxu0 %v11170_v0  ;;  %v7870_v0 = vadd.f32 %v12854_v37, %v7829_v56  ;;  %v11242_v37 = vld [vmem:[%s12434_s15 + $0xbec] ss:$72 sps:$4 sm:$0xff]   ;;  %v11282_v56 = vld [vmem:[%s12434_s15 + $0x10f8] ss:$72 sps:$4 sm:$0xff]  }
 0x3a1   : > { %8174 = vmatpush1.bf16.msra.mxu1 %v11165_v57  ;;  %v11231_v57 = vld [vmem:[%s12434_s15 + $0x1608] ss:$72 sps:$4 sm:$0xff]  }
 0x3a2   : > { %8175 = vmatprep.subr.bf16.mxu1 %v11173_v61 }
 0x3a3   : > { %8135 = vmatpush1.bf16.msra.mxu0 %v11168_v1  ;;  %v7872_v1 = vadd.f32 %v12860_v40, %v7831_v60  ;;  %v11237_v40 = vld [vmem:[%s12434_s15 + $0x1578] ss:$72 sps:$4 sm:$0xff]   ;;  %v11293_v60 = vld [vmem:[%s12434_s15 + $0x196c] ss:$72 sps:$4 sm:$0xff]  }
 0x3a4   : > { %8136 = vmatprep.subr.bf16.mxu0 %v11176_v2 }
 0x3a5   : > { %8176 = vmatpush1.bf16.msra.mxu1 %v11171_v3 }
 0x3a6   : > { %8177 = vmatprep.subr.bf16.mxu1 %v11179_v4 }
 0x3a7   : > { %8137 = vmatpush1.bf16.msra.mxu0 %v11174_v6 }
 0x3a8   : > { %8138 = vmatprep.subr.bf16.mxu0 %v11182_v7 }
 0x3a9   : > { %8178 = vmatpush1.bf16.msra.mxu1 %v11177_v10  ;;  %v11245_v10 = vld [vmem:[%s12434_s15 + $0x14ec] ss:$72 sps:$4 sm:$0xff]  }
 0x3aa   : > { %8179 = vmatprep.subr.bf16.mxu1 %v11185_v11 }
 0x3ab   : > { %8139 = vmatpush2.bf16.msra.mxu0 %v11180_v14  ;;  %v11240_v14 = vld [vmem:[%s12434_s15 + $0xbe8] ss:$72 sps:$4 sm:$0xff]  }
 0x3ac   : > { %8140 = vmatprep.subr.bf16.mxu0 %v11188_v15 }
 0x3ad   : > { %8180 = vmatpush2.bf16.msra.mxu1 %v11183_v16  ;;  %v11248_v16 = vld [vmem:[%s12434_s15 + $0xb5c] ss:$72 sps:$4 sm:$0xff]  }
 0x3ae   : > { %8181 = vmatprep.subr.bf16.mxu1 %v11191_v17 }
 0x3af   : > { %8141 = vmatpush2.bf16.msra.mxu0 %v11186_v18  ;;  %v11243_v18 = vld [vmem:[%s12434_s15 + $0x14e8] ss:$72 sps:$4 sm:$0xff]  }
 0x3b0   : > { %8142 = vmatprep.subr.bf16.mxu0 %v11194_v20  ;;  %v11251_v20 = vld [vmem:[%s12434_s15 + $0x145c] ss:$72 sps:$4 sm:$0xff]  }
 0x3b1   : > { %8182 = vmatpush2.bf16.msra.mxu1 %v11189_v21 }
 0x3b2   : > { %8183 = vmatprep.subr.bf16.mxu1 %v11197_v22  ;;  %v11246_v22 = vld [vmem:[%s12434_s15 + $0xb58] ss:$72 sps:$4 sm:$0xff]  }
 0x3b3   : > { %8143 = vmatpush2.bf16.msra.mxu0 %v11192_v13  ;;  %v11254_v13 = vld [vmem:[%s12434_s15 + $0xacc] ss:$72 sps:$4 sm:$0xff]  }
 0x3b4   : > { %8144 = vmatprep.subr.bf16.mxu0 %v11200_v23  ;;  %v11249_v23 = vld [vmem:[%s12434_s15 + $0x1458] ss:$72 sps:$4 sm:$0xff]  }
 0x3b5   : > { %8184 = vmatpush2.bf16.msra.mxu1 %v11195_v24  ;;  %v11257_v24 = vld [vmem:[%s12434_s15 + $0x13cc] ss:$72 sps:$4 sm:$0xff]  }
 0x3b6   : > { %8185 = vmatprep.subr.bf16.mxu1 %v11203_v25  ;;  %v11252_v25 = vld [vmem:[%s12434_s15 + $0xac8] ss:$72 sps:$4 sm:$0xff]  }
 0x3b7   : > { %8145 = vmatpush2.bf16.msra.mxu0 %v11198_v26  ;;  %v11260_v26 = vld [vmem:[%s12434_s15 + $0xa3c] ss:$72 sps:$4 sm:$0xff]  }
 0x3b8   : > { %8146 = vmatprep.subr.bf16.mxu0 %v11206_v27  ;;  %v11255_v27 = vld [vmem:[%s12434_s15 + $0x13c8] ss:$72 sps:$4 sm:$0xff]  }
 0x3b9   : > { %8186 = vmatpush2.bf16.msra.mxu1 %v11201_v29  ;;  %v11263_v29 = vld [vmem:[%s12434_s15 + $0x133c] ss:$72 sps:$4 sm:$0xff]  }
 0x3ba   : > { %8187 = vmatprep.subr.bf16.mxu1 %v11209_v30  ;;  %v11258_v30 = vld [vmem:[%s12434_s15 + $0xa38] ss:$72 sps:$4 sm:$0xff]  }
 0x3bb   : > { %8147 = vmatpush2.bf16.msra.mxu0 %v11204_v31 }
 0x3bc   : > { %8148 = vmatprep.subr.bf16.mxu0 %v11212_v32  ;;  %v11266_v32 = vld [vmem:[%s12434_s15 + $0x9ac] ss:$72 sps:$4 sm:$0xff]  }
 0x3bd   : > { %8188 = vmatpush2.bf16.msra.mxu1 %v11207_v33  ;;  %v11261_v33 = vld [vmem:[%s12434_s15 + $0x1338] ss:$72 sps:$4 sm:$0xff]  }
 0x3be   : > { %8189 = vmatprep.subr.bf16.mxu1 %v11215_v35  ;;  %v11269_v35 = vld [vmem:[%s12434_s15 + $0x12ac] ss:$72 sps:$4 sm:$0xff]  }
 0x3bf   : > { %8149 = vmatpush2.bf16.msra.mxu0 %v11210_v36  ;;  %v11264_v36 = vld [vmem:[%s12434_s15 + $0x9a8] ss:$72 sps:$4 sm:$0xff]  }
 0x3c0   : > { %8150 = vmatprep.subr.bf16.mxu0 %v11218_v38  ;;  %v11272_v38 = vld [vmem:[%s12434_s15 + $0x91c] ss:$72 sps:$4 sm:$0xff]  }
 0x3c1   : > { %8190 = vmatpush2.bf16.msra.mxu1 %v11213_v41  ;;  %v11267_v41 = vld [vmem:[%s12434_s15 + $0x12a8] ss:$72 sps:$4 sm:$0xff]  }
 0x3c2   : > { %8191 = vmatprep.subr.bf16.mxu1 %v11221_v42  ;;  %v11275_v42 = vld [vmem:[%s12434_s15 + $0x121c] ss:$72 sps:$4 sm:$0xff]  }
 0x3c3   : > { %8151 = vmatpush2.bf16.msra.mxu0 %v11216_v44  ;;  %v11270_v44 = vld [vmem:[%s12434_s15 + $0x918] ss:$72 sps:$4 sm:$0xff]  }
 0x3c4   : > { %8152 = vmatprep.subr.bf16.mxu0 %v11224_v45  ;;  %v11278_v45 = vld [vmem:[%s12434_s15 + $0x118c] ss:$72 sps:$4 sm:$0xff]  }
 0x3c5   : > { %8192 = vmatpush2.bf16.msra.mxu1 %v11219_v49  ;;  %v11281_v49 = vld [vmem:[%s12434_s15 + $0x1a8c] ss:$72 sps:$4 sm:$0xff]  }
 0x3c6   : > { %8193 = vmatprep.subr.bf16.mxu1 %v11227_v50  ;;  %v11276_v50 = vld [vmem:[%s12434_s15 + $0x1188] ss:$72 sps:$4 sm:$0xff]  }
 0x3c7   : > { %8153 = vmatpush2.bf16.msra.mxu0 %v11222_v54  ;;  %v11279_v54 = vld [vmem:[%s12434_s15 + $0x1a88] ss:$72 sps:$4 sm:$0xff]  }
 0x3c8   : > { %8204 = vmatprep.subr.bf16.mxu0 %v11230_v55  ;;  %v11287_v55 = vld [vmem:[%s12434_s15 + $0x19fc] ss:$72 sps:$4 sm:$0xff]  }
 0x3c9   : > { %8194 = vmatpush2.bf16.msra.mxu1 %v11225_v58  ;;  %v11290_v58 = vld [vmem:[%s12434_s15 + $0x106c] ss:$72 sps:$4 sm:$0xff]  }
 0x3ca   : > { %v7910_v61 = vpop.f32.mrf.mxu0  ;;  %8155 = vmatmul.mubr.bf16.vlgmr.msra.gmra.mxu0 %v12704_v19  ;;  %8245 = vmatprep.subr.bf16.mxu1 %v11233_v59  ;;  %v11285_v59 = vld [vmem:[%s12434_s15 + $0x19f8] ss:$72 sps:$4 sm:$0xff]  }
 0x3cb   : > { %v7911_v2 = vadd.f32 %v7910_v61, %v7870_v0  ;;  %8205 = vmatpush1.bf16.msra.mxu0 %v11228_v62  ;;  %8236 = vmatprep.mubr.bf16.mxu0 %v12599_v51  ;;  %v11288_v62 = vld [vmem:[%s12434_s15 + $0x1068] ss:$72 sps:$4 sm:$0xff]   ;;  %v11294_v61 = vld [vmem:[%s12434_s15 + $0xfd8] ss:$72 sps:$4 sm:$0xff]  }
 0x3cc   : > { %v7912_v3 = vpop.f32.mrf.mxu0  ;;  %8196 = vmatmul.mubr.bf16.vlgmr.msra.gmra.mxu1 %v12624_v9  ;;  %8206 = vmatprep.subr.bf16.mxu0 %v11236_v63  ;;  %v12947_v4 = vpop.f32.mrf.mxu1  ;;  %v11296_v63 = vld [vmem:[%s12434_s15 + $0xfdc] ss:$72 sps:$4 sm:$0xff]   ;;  %v11291_v0 = vld [vmem:[%s12434_s15 + $0x1968] ss:$72 sps:$4 sm:$0xff]  }
 0x3cd   : > { %12044 = vtanh.f32 %v7911_v2  ;;  %v7913_v6 = vadd.f32 %v7912_v3, %v7872_v1  ;;  %8246 = vmatpush1.bf16.msra.mxu1 %v11231_v57  ;;  %8277 = vmatprep.mubr.bf16.mxu1 %v12660_v34  ;;  %v11299_v57 = vld [vmem:[%s12434_s15 + $0x18dc] ss:$72 sps:$4 sm:$0xff]   ;;  %v11297_v1 = vld [vmem:[%s12434_s15 + $0x18d8] ss:$72 sps:$4 sm:$0xff]   ;;  %v11305_v2 = vld [vmem:[%s12434_s15 + $0x184c] ss:$72 sps:$4 sm:$0xff]  }
 0x3ce   : > { %v7914_v7 = vpop.f32.mrf.mxu0  ;;  %8247 = vmatprep.subr.bf16.mxu1 %v11239_v5  ;;  %v12952_v11 = vpop.f32.mrf.mxu1  ;;  %v11302_v5 = vld [vmem:[%s12434_s15 + $0xf4c] ss:$72 sps:$4 sm:$0xff]   ;;  %v11308_v3 = vld [vmem:[%s12434_s15 + $0xebc] ss:$72 sps:$4 sm:$0xff]  }
 0x3cf   : > { %12046 = vtanh.f32 %v7913_v6  ;;  %8207 = vmatpush1.bf16.msra.mxu0 %v11234_v52  ;;  %v11300_v52 = vld [vmem:[%s12434_s15 + $0xf48] ss:$72 sps:$4 sm:$0xff]   ;;  %v11311_v6 = vld [vmem:[%s12434_s15 + $0x17bc] ss:$72 sps:$4 sm:$0xff]   ;;  %v11314_v7 = vld [vmem:[%s12434_s15 + $0xe2c] ss:$72 sps:$4 sm:$0xff]  }
 0x3d0   : > { %v7915_v15 = vpop.f32.mrf.mxu0  ;;  %8208 = vmatprep.subr.bf16.mxu0 %v11242_v37  ;;  %v7955_v17 = vpop.f32.mrf.mxu1  ;;  %v11303_v37 = vld [vmem:[%s12434_s15 + $0x1848] ss:$72 sps:$4 sm:$0xff]  }
 0x3d1   : > { %8248 = vmatpush1.bf16.msra.mxu1 %v11237_v40  ;;  %v11306_v40 = vld [vmem:[%s12434_s15 + $0xeb8] ss:$72 sps:$4 sm:$0xff]   ;;  %v11312_v15 = vld [vmem:[%s12434_s15 + $0xe28] ss:$72 sps:$4 sm:$0xff]   ;;  %v11320_v17 = vld [vmem:[%s12434_s15 + $0xd9c] ss:$72 sps:$4 sm:$0xff]  }
 0x3d2   : > { %8249 = vmatprep.subr.bf16.mxu1 %v11245_v10  ;;  %v7956_v21 = vpop.f32.mrf.mxu1  ;;  %v11309_v10 = vld [vmem:[%s12434_s15 + $0x17b8] ss:$72 sps:$4 sm:$0xff]  }
 0x3d3   : > { %8209 = vmatpush1.bf16.msra.mxu0 %v11240_v14  ;;  %v11317_v14 = vld [vmem:[%s12434_s15 + $0x172c] ss:$72 sps:$4 sm:$0xff]   ;;  %v11323_v21 = vld [vmem:[%s12434_s15 + $0x169c] ss:$72 sps:$4 sm:$0xff]  }
 0x3d4   : > { %8210 = vmatprep.subr.bf16.mxu0 %v11248_v16  ;;  %v3394_v16 = vsub.s32 2, %v12905_v48 }
 0x3d5   : > { %8250 = vmatpush1.bf16.msra.mxu1 %v11243_v18  ;;  %v11315_v18 = vld [vmem:[%s12434_s15 + $0x1728] ss:$72 sps:$4 sm:$0xff]  }
 0x3d6   : > { %8251 = vmatprep.subr.bf16.mxu1 %v11251_v20  ;;  %v3398_v20 = vsub.s32 3, %v12905_v48 }
 0x3d7   : > { %8211 = vmatpush1.bf16.msra.mxu0 %v11246_v22  ;;  %v3395_v22 = vrot.slane %v12911_v8, %v3394_v16 }
 0x3d8   : > { %8212 = vmatprep.subr.bf16.mxu0 %v11254_v13  ;;  %v11318_v13 = vld [vmem:[%s12434_s15 + $0xd98] ss:$72 sps:$4 sm:$0xff]  }
 0x3d9   : > { %8252 = vmatpush1.bf16.msra.mxu1 %v11249_v23  ;;  %v11326_v23 = vld [vmem:[%s12434_s15 + $0x414] ss:$72 sps:$4 sm:$0xff]  }
 0x3da   : > { %v12045_v28 = vpop.eup %12044  ;;  %8253 = vmatprep.subr.bf16.mxu1 %v11257_v24  ;;  %v3399_v24 = vrot.slane %v12911_v8, %v3398_v20  ;;  %v11335_v8 = vld [vmem:[%s12434_s15 + $0xc84] ss:$72 sps:$4 sm:$0xff]  }
 0x3db   : > { %8919 = vst [vmem:[%s12444_s27] sm:$0xff] %v12045_v28  ;;  %8213 = vmatpush1.bf16.msra.mxu0 %v11252_v25  ;;  %v11321_v25 = vld [vmem:[%s12434_s15 + $0x1698] ss:$72 sps:$4 sm:$0xff]  }
 0x3dc   : > { %v12047_v31 = vpop.eup %12046  ;;  %8214 = vmatprep.subr.bf16.mxu0 %v11260_v26  ;;  %v11329_v26 = vld [vmem:[%s12434_s15 + $0xd14] ss:$72 sps:$4 sm:$0xff]   ;;  %v11324_v28 = vld [vmem:[%s12434_s15 + $0x410] ss:$72 sps:$4 sm:$0xff]  }
 0x3dd   : > { %8920 = vst [vmem:[%s12444_s27 + $0x8] sm:$0xff] %v12047_v31  ;;  %8254 = vmatpush1.bf16.msra.mxu1 %v11255_v27  ;;  %v7952_v27 = vadd.f32 %v12947_v4, %v3395_v22  ;;  %v11327_v31 = vld [vmem:[%s12434_s15 + $0xd10] ss:$72 sps:$4 sm:$0xff]   ;;  %v11377_v22 = vld [vmem:[%s12434_s15 + $0x1194] ss:$72 sps:$4 sm:$0xff]  }
 0x3de   : > { %8255 = vmatprep.subr.bf16.mxu1 %v11263_v29  ;;  %v11332_v29 = vld [vmem:[%s12434_s15 + $0x384] ss:$72 sps:$4 sm:$0xff]  }
 0x3df   : > { %8215 = vmatpush1.bf16.msra.mxu0 %v11258_v30  ;;  %v7954_v30 = vadd.f32 %v12952_v11, %v3399_v24  ;;  %v11338_v11 = vld [vmem:[%s12434_s15 + $0x2f4] ss:$72 sps:$4 sm:$0xff]   ;;  %v11375_v24 = vld [vmem:[%s12434_s15 + $0x1190] ss:$72 sps:$4 sm:$0xff]  }
 0x3e0   : > { %8216 = vmatprep.subr.bf16.mxu0 %v11266_v32 }
 0x3e1   : > { %8256 = vmatpush1.bf16.msra.mxu1 %v11261_v33 }
 0x3e2   : > { %8257 = vmatprep.subr.bf16.mxu1 %v11269_v35  ;;  %v11330_v35 = vld [vmem:[%s12434_s15 + $0x380] ss:$72 sps:$4 sm:$0xff]  }
 0x3e3   : > { %8217 = vmatpush1.bf16.msra.mxu0 %v11264_v36 }
 0x3e4   : > { %8218 = vmatprep.subr.bf16.mxu0 %v11272_v38 }
 0x3e5   : > { %8258 = vmatpush1.bf16.msra.mxu1 %v11267_v41 }
 0x3e6   : > { %8259 = vmatprep.subr.bf16.mxu1 %v11275_v42  ;;  %v11333_v42 = vld [vmem:[%s12434_s15 + $0xc80] ss:$72 sps:$4 sm:$0xff]  }
 0x3e7   : > { %8219 = vmatpush1.bf16.msra.mxu0 %v11270_v44 }
 0x3e8   : > { %8220 = vmatprep.subr.bf16.mxu0 %v11278_v45 }
 0x3e9   : > { %8260 = vmatpush1.bf16.msra.mxu1 %v11273_v47  ;;  %v11341_v47 = vld [vmem:[%s12434_s15 + $0xbf4] ss:$72 sps:$4 sm:$0xff]  }
 0x3ea   : > { %8261 = vmatprep.subr.bf16.mxu1 %v11281_v49 }
 0x3eb   : > { %8221 = vmatpush2.bf16.msra.mxu0 %v11276_v50  ;;  %v11336_v50 = vld [vmem:[%s12434_s15 + $0x2f0] ss:$72 sps:$4 sm:$0xff]  }
 0x3ec   : > { %8222 = vmatprep.subr.bf16.mxu0 %v11284_v53 }
 0x3ed   : > { %8262 = vmatpush2.bf16.msra.mxu1 %v11279_v54  ;;  %v11344_v54 = vld [vmem:[%s12434_s15 + $0x264] ss:$72 sps:$4 sm:$0xff]  }
 0x3ee   : > { %8263 = vmatprep.subr.bf16.mxu1 %v11287_v55 }
 0x3ef   : > { %8223 = vmatpush2.bf16.msra.mxu0 %v11282_v56  ;;  %v11339_v56 = vld [vmem:[%s12434_s15 + $0xbf0] ss:$72 sps:$4 sm:$0xff]  }
 0x3f0   : > { %8224 = vmatprep.subr.bf16.mxu0 %v11290_v58  ;;  %v11347_v58 = vld [vmem:[%s12434_s15 + $0xb64] ss:$72 sps:$4 sm:$0xff]  }
 0x3f1   : > { %8264 = vmatpush2.bf16.msra.mxu1 %v11285_v59 }
 0x3f2   : > { %8265 = vmatprep.subr.bf16.mxu1 %v11293_v60  ;;  %v11342_v60 = vld [vmem:[%s12434_s15 + $0x260] ss:$72 sps:$4 sm:$0xff]  }
 0x3f3   : > { %8225 = vmatpush2.bf16.msra.mxu0 %v11288_v62  ;;  %v11350_v62 = vld [vmem:[%s12434_s15 + $0x1d4] ss:$72 sps:$4 sm:$0xff]  }
 0x3f4   : > { %8226 = vmatprep.subr.bf16.mxu0 %v11296_v63  ;;  %v11345_v63 = vld [vmem:[%s12434_s15 + $0xb60] ss:$72 sps:$4 sm:$0xff]  }
 0x3f5   : > { %8266 = vmatpush2.bf16.msra.mxu1 %v11291_v0  ;;  %v11353_v0 = vld [vmem:[%s12434_s15 + $0xad4] ss:$72 sps:$4 sm:$0xff]  }
 0x3f6   : > { %8267 = vmatprep.subr.bf16.mxu1 %v11299_v57  ;;  %v11348_v57 = vld [vmem:[%s12434_s15 + $0x1d0] ss:$72 sps:$4 sm:$0xff]  }
 0x3f7   : > { %8227 = vmatpush2.bf16.msra.mxu0 %v11294_v61  ;;  %v11356_v61 = vld [vmem:[%s12434_s15 + $0x144] ss:$72 sps:$4 sm:$0xff]  }
 0x3f8   : > { %8228 = vmatprep.subr.bf16.mxu0 %v11302_v5  ;;  %v11351_v5 = vld [vmem:[%s12434_s15 + $0xad0] ss:$72 sps:$4 sm:$0xff]  }
 0x3f9   : > { %8268 = vmatpush2.bf16.msra.mxu1 %v11297_v1  ;;  %v11359_v1 = vld [vmem:[%s12434_s15 + $0xa44] ss:$72 sps:$4 sm:$0xff]  }
 0x3fa   : > { %8269 = vmatprep.subr.bf16.mxu1 %v11305_v2  ;;  %v11354_v2 = vld [vmem:[%s12434_s15 + $0x140] ss:$72 sps:$4 sm:$0xff]  }
 0x3fb   : > { %8229 = vmatpush2.bf16.msra.mxu0 %v11300_v52 }
 0x3fc   : > { %8230 = vmatprep.subr.bf16.mxu0 %v11308_v3  ;;  %v11362_v3 = vld [vmem:[%s12434_s15 + $0xb4] ss:$72 sps:$4 sm:$0xff]  }
 0x3fd   : > { %8270 = vmatpush2.bf16.msra.mxu1 %v11303_v37  ;;  %v11357_v37 = vld [vmem:[%s12434_s15 + $0xa40] ss:$72 sps:$4 sm:$0xff]  }
 0x3fe   : > { %8271 = vmatprep.subr.bf16.mxu1 %v11311_v6 }
 0x3ff   : > { %8231 = vmatpush2.bf16.msra.mxu0 %v11306_v40  ;;  %v11365_v40 = vld [vmem:[%s12434_s15 + $0x9b4] ss:$72 sps:$4 sm:$0xff]  }
 0x400   : > { %8232 = vmatprep.subr.bf16.mxu0 %v11314_v7  ;;  %v11360_v7 = vld [vmem:[%s12434_s15 + $0xb0] ss:$72 sps:$4 sm:$0xff]  }
 0x401   : > { %8272 = vmatpush2.bf16.msra.mxu1 %v11309_v10  ;;  %v11368_v10 = vld [vmem:[%s12434_s15 + $0x24] ss:$72 sps:$4 sm:$0xff]  }
 0x402   : > { %8273 = vmatprep.subr.bf16.mxu1 %v11317_v14  ;;  %v11363_v14 = vld [vmem:[%s12434_s15 + $0x9b0] ss:$72 sps:$4 sm:$0xff]  }
 0x403   : > { %8233 = vmatpush2.bf16.msra.mxu0 %v11312_v15  ;;  %v11371_v15 = vld [vmem:[%s12434_s15 + $0x924] ss:$72 sps:$4 sm:$0xff]  }
 0x404   : > { %8234 = vmatprep.subr.bf16.mxu0 %v11320_v17  ;;  %v11366_v17 = vld [vmem:[%s12434_s15 + $0x20] ss:$72 sps:$4 sm:$0xff]  }
 0x405   : > { %8274 = vmatpush2.bf16.msra.mxu1 %v11315_v18  ;;  %v11374_v18 = vld [vmem:[%s12434_s15 + $0x894] ss:$72 sps:$4 sm:$0xff]  }
 0x406   : > { %8275 = vmatprep.subr.bf16.mxu1 %v11323_v21  ;;  %v11369_v21 = vld [vmem:[%s12434_s15 + $0x920] ss:$72 sps:$4 sm:$0xff]  }
 0x407   : > { %8235 = vmatpush2.bf16.msra.mxu0 %v11318_v13  ;;  %v11372_v13 = vld [vmem:[%s12434_s15 + $0x890] ss:$72 sps:$4 sm:$0xff]  }
 0x408   : > { %8286 = vmatprep.subr.bf16.mxu0 %v11326_v23  ;;  %v11380_v23 = vld [vmem:[%s12434_s15 + $0x804] ss:$72 sps:$4 sm:$0xff]  }
 0x409   : > { %8276 = vmatpush2.bf16.msra.mxu1 %v11321_v25  ;;  %v11383_v25 = vld [vmem:[%s12434_s15 + $0x1104] ss:$72 sps:$4 sm:$0xff]  }
 0x40a   : > { %v7992_v32 = vpop.f32.mrf.mxu0  ;;  %8237 = vmatmul.mubr.bf16.vlgmr.msra.gmra.mxu0 %v12628_v12  ;;  %8327 = vmatprep.subr.bf16.mxu1 %v11329_v26  ;;  %v11378_v26 = vld [vmem:[%s12434_s15 + $0x800] ss:$72 sps:$4 sm:$0xff]  }
 0x40b   : > { %v7993_v33 = vadd.f32 %v7992_v32, %v7952_v27  ;;  %8287 = vmatpush1.bf16.msra.mxu0 %v11324_v28  ;;  %8318 = vmatprep.mubr.bf16.mxu0 %v12591_v46  ;;  %v11386_v27 = vld [vmem:[%s12434_s15 + $0x774] ss:$72 sps:$4 sm:$0xff]   ;;  %v11381_v28 = vld [vmem:[%s12434_s15 + $0x1100] ss:$72 sps:$4 sm:$0xff]   ;;  %v11387_v32 = vld [vmem:[%s12434_s15 + $0x1070] ss:$72 sps:$4 sm:$0xff]  }
 0x40c   : > { %v7994_v4 = vpop.f32.mrf.mxu0  ;;  %v8033_v36 = vpop.f32.mrf.mxu1  ;;  %8278 = vmatmul.mubr.bf16.vlgmr.msra.gmra.mxu1 %v12704_v19  ;;  %8288 = vmatprep.subr.bf16.mxu0 %v11332_v29  ;;  %v11389_v29 = vld [vmem:[%s12434_s15 + $0x1074] ss:$72 sps:$4 sm:$0xff]  }
 0x40d   : > { %v7995_v38 = vadd.f32 %v7994_v4, %v7954_v30  ;;  %v8034_v41 = vadd.f32 %v8033_v36, %v7993_v33  ;;  %8328 = vmatpush1.bf16.msra.mxu1 %v11327_v31  ;;  %8359 = vmatprep.mubr.bf16.mxu1 %v12599_v51  ;;  %v11384_v30 = vld [vmem:[%s12434_s15 + $0x770] ss:$72 sps:$4 sm:$0xff]   ;;  %v11392_v31 = vld [vmem:[%s12434_s15 + $0x6e4] ss:$72 sps:$4 sm:$0xff]   ;;  %v11390_v33 = vld [vmem:[%s12434_s15 + $0x6e0] ss:$72 sps:$4 sm:$0xff]  }
 0x40e   : > { %v7996_v44 = vpop.f32.mrf.mxu0  ;;  %v8035_v45 = vpop.f32.mrf.mxu1  ;;  %8329 = vmatprep.subr.bf16.mxu1 %v11335_v8  ;;  %v11395_v8 = vld [vmem:[%s12434_s15 + $0xfe4] ss:$72 sps:$4 sm:$0xff]   ;;  %v11393_v4 = vld [vmem:[%s12434_s15 + $0xfe0] ss:$72 sps:$4 sm:$0xff]   ;;  %v11401_v36 = vld [vmem:[%s12434_s15 + $0xf54] ss:$72 sps:$4 sm:$0xff]  }
 0x40f   : > { %12048 = vtanh.f32 %v8034_v41  ;;  %v8036_v49 = vadd.f32 %v8035_v45, %v7995_v38  ;;  %8289 = vmatpush1.bf16.msra.mxu0 %v11330_v35  ;;  %v11398_v35 = vld [vmem:[%s12434_s15 + $0x654] ss:$72 sps:$4 sm:$0xff]   ;;  %v11404_v38 = vld [vmem:[%s12434_s15 + $0x5c4] ss:$72 sps:$4 sm:$0xff]   ;;  %v11399_v41 = vld [vmem:[%s12434_s15 + $0xf50] ss:$72 sps:$4 sm:$0xff]  }
 0x410   : > { %v7997_v53 = vpop.f32.mrf.mxu0  ;;  %8290 = vmatprep.subr.bf16.mxu0 %v11338_v11  ;;  %v8037_v55 = vpop.f32.mrf.mxu1  ;;  %v11396_v11 = vld [vmem:[%s12434_s15 + $0x650] ss:$72 sps:$4 sm:$0xff]   ;;  %v11402_v44 = vld [vmem:[%s12434_s15 + $0x5c0] ss:$72 sps:$4 sm:$0xff]   ;;  %v11410_v45 = vld [vmem:[%s12434_s15 + $0x534] ss:$72 sps:$4 sm:$0xff]  }
 0x411   : > { %12050 = vtanh.f32 %v8036_v49  ;;  %8330 = vmatpush1.bf16.msra.mxu1 %v11333_v42  ;;  %v11407_v42 = vld [vmem:[%s12434_s15 + $0xec4] ss:$72 sps:$4 sm:$0xff]   ;;  %v11413_v49 = vld [vmem:[%s12434_s15 + $0xe34] ss:$72 sps:$4 sm:$0xff]  }
 0x412   : > { %8331 = vmatprep.subr.bf16.mxu1 %v11341_v47  ;;  %v8038_v59 = vpop.f32.mrf.mxu1  ;;  %v11405_v47 = vld [vmem:[%s12434_s15 + $0xec0] ss:$72 sps:$4 sm:$0xff]   ;;  %v11416_v53 = vld [vmem:[%s12434_s15 + $0x4a4] ss:$72 sps:$4 sm:$0xff]  }
 0x413   : > { %8291 = vmatpush1.bf16.msra.mxu0 %v11336_v50  ;;  %v11408_v50 = vld [vmem:[%s12434_s15 + $0x530] ss:$72 sps:$4 sm:$0xff]   ;;  %v11419_v55 = vld [vmem:[%s12434_s15 + $0xda4] ss:$72 sps:$4 sm:$0xff]   ;;  %v11417_v59 = vld [vmem:[%s12434_s15 + $0xda0] ss:$72 sps:$4 sm:$0xff]  }
 0x414   : > { %8292 = vmatprep.subr.bf16.mxu0 %v11344_v54  ;;  %v11411_v54 = vld [vmem:[%s12434_s15 + $0xe30] ss:$72 sps:$4 sm:$0xff]  }
 0x415   : > { %8332 = vmatpush1.bf16.msra.mxu1 %v11339_v56  ;;  %v11414_v56 = vld [vmem:[%s12434_s15 + $0x4a0] ss:$72 sps:$4 sm:$0xff]  }
 0x416   : > { %8333 = vmatprep.subr.bf16.mxu1 %v11347_v58  ;;  %v11422_v58 = vld [vmem:[%s12434_s15 + $0x1614] ss:$72 sps:$4 sm:$0xff]  }
 0x417   : > { %8293 = vmatpush1.bf16.msra.mxu0 %v11342_v60  ;;  %v11425_v60 = vld [vmem:[%s12434_s15 + $0x41c] ss:$72 sps:$4 sm:$0xff]  }
 0x418   : > { %8294 = vmatprep.subr.bf16.mxu0 %v11350_v62  ;;  %v11420_v62 = vld [vmem:[%s12434_s15 + $0x1610] ss:$72 sps:$4 sm:$0xff]  }
 0x419   : > { %8334 = vmatpush1.bf16.msra.mxu1 %v11345_v63  ;;  %v11428_v63 = vld [vmem:[%s12434_s15 + $0x1584] ss:$72 sps:$4 sm:$0xff]  }
 0x41a   : > { %8335 = vmatprep.subr.bf16.mxu1 %v11353_v0  ;;  %v11423_v0 = vld [vmem:[%s12434_s15 + $0x418] ss:$72 sps:$4 sm:$0xff]  }
 0x41b   : > { %8295 = vmatpush1.bf16.msra.mxu0 %v11348_v57 }
 0x41c   : > { %v12049_v52 = vpop.eup %12048  ;;  %8296 = vmatprep.subr.bf16.mxu0 %v11356_v61  ;;  %v11431_v61 = vld [vmem:[%s12434_s15 + $0x38c] ss:$72 sps:$4 sm:$0xff]  }
 0x41d   : > { %8921 = vst [vmem:[%s12444_s27 + $0x10] sm:$0xff] %v12049_v52  ;;  %8336 = vmatpush1.bf16.msra.mxu1 %v11351_v5  ;;  %v11426_v5 = vld [vmem:[%s12434_s15 + $0x1580] ss:$72 sps:$4 sm:$0xff]   ;;  %v11434_v52 = vld [vmem:[%s12434_s15 + $0x14f4] ss:$72 sps:$4 sm:$0xff]  }
 0x41e   : > { %v12051_v6 = vpop.eup %12050  ;;  %8337 = vmatprep.subr.bf16.mxu1 %v11359_v1 }
 0x41f   : > { %8922 = vst [vmem:[%s12444_s27 + $0x18] sm:$0xff] %v12051_v6  ;;  %8297 = vmatpush1.bf16.msra.mxu0 %v11354_v2 }
 0x420   : > { %8298 = vmatprep.subr.bf16.mxu0 %v11362_v3  ;;  %v11429_v3 = vld [vmem:[%s12434_s15 + $0x388] ss:$72 sps:$4 sm:$0xff]  }
 0x421   : > { %8338 = vmatpush1.bf16.msra.mxu1 %v11357_v37 }
 0x422   : > { %8339 = vmatprep.subr.bf16.mxu1 %v11365_v40  ;;  %v11437_v40 = vld [vmem:[%s12434_s15 + $0x2fc] ss:$72 sps:$4 sm:$0xff]  }
 0x423   : > { %8299 = vmatpush1.bf16.msra.mxu0 %v11360_v7  ;;  %v11432_v7 = vld [vmem:[%s12434_s15 + $0x14f0] ss:$72 sps:$4 sm:$0xff]  }
 0x424   : > { %8300 = vmatprep.subr.bf16.mxu0 %v11368_v10 }
 0x425   : > { %8340 = vmatpush1.bf16.msra.mxu1 %v11363_v14  ;;  %v11440_v14 = vld [vmem:[%s12434_s15 + $0x1464] ss:$72 sps:$4 sm:$0xff]  }
 0x426   : > { %8341 = vmatprep.subr.bf16.mxu1 %v11371_v15 }
 0x427   : > { %8301 = vmatpush1.bf16.msra.mxu0 %v11366_v17  ;;  %v11435_v17 = vld [vmem:[%s12434_s15 + $0x2f8] ss:$72 sps:$4 sm:$0xff]  }
 0x428   : > { %8302 = vmatprep.subr.bf16.mxu0 %v11374_v18  ;;  %v11443_v18 = vld [vmem:[%s12434_s15 + $0x26c] ss:$72 sps:$4 sm:$0xff]  }
 0x429   : > { %8342 = vmatpush1.bf16.msra.mxu1 %v11369_v21 }
 0x42a   : > { %8343 = vmatprep.subr.bf16.mxu1 %v11377_v22  ;;  %v11438_v22 = vld [vmem:[%s12434_s15 + $0x1460] ss:$72 sps:$4 sm:$0xff]  }
 0x42b   : > { %8303 = vmatpush2.bf16.msra.mxu0 %v11372_v13  ;;  %v11446_v13 = vld [vmem:[%s12434_s15 + $0x13d4] ss:$72 sps:$4 sm:$0xff]  }
 0x42c   : > { %8304 = vmatprep.subr.bf16.mxu0 %v11380_v23  ;;  %v11441_v23 = vld [vmem:[%s12434_s15 + $0x268] ss:$72 sps:$4 sm:$0xff]  }
 0x42d   : > { %8344 = vmatpush2.bf16.msra.mxu1 %v11375_v24  ;;  %v11449_v24 = vld [vmem:[%s12434_s15 + $0x1dc] ss:$72 sps:$4 sm:$0xff]  }
 0x42e   : > { %8345 = vmatprep.subr.bf16.mxu1 %v11383_v25  ;;  %v11444_v25 = vld [vmem:[%s12434_s15 + $0x13d0] ss:$72 sps:$4 sm:$0xff]  }
 0x42f   : > { %8305 = vmatpush2.bf16.msra.mxu0 %v11378_v26  ;;  %v11452_v26 = vld [vmem:[%s12434_s15 + $0x1344] ss:$72 sps:$4 sm:$0xff]  }
 0x430   : > { %8306 = vmatprep.subr.bf16.mxu0 %v11386_v27  ;;  %v11447_v27 = vld [vmem:[%s12434_s15 + $0x1d8] ss:$72 sps:$4 sm:$0xff]  }
 0x431   : > { %8346 = vmatpush2.bf16.msra.mxu1 %v11381_v28  ;;  %v11455_v28 = vld [vmem:[%s12434_s15 + $0x14c] ss:$72 sps:$4 sm:$0xff]  }
 0x432   : > { %8347 = vmatprep.subr.bf16.mxu1 %v11389_v29  ;;  %v11450_v29 = vld [vmem:[%s12434_s15 + $0x1340] ss:$72 sps:$4 sm:$0xff]  }
 0x433   : > { %8307 = vmatpush2.bf16.msra.mxu0 %v11384_v30  ;;  %v11458_v30 = vld [vmem:[%s12434_s15 + $0x12b4] ss:$72 sps:$4 sm:$0xff]  }
 0x434   : > { %8308 = vmatprep.subr.bf16.mxu0 %v11392_v31  ;;  %v11453_v31 = vld [vmem:[%s12434_s15 + $0x148] ss:$72 sps:$4 sm:$0xff]  }
 0x435   : > { %8348 = vmatpush2.bf16.msra.mxu1 %v11387_v32  ;;  %v11461_v32 = vld [vmem:[%s12434_s15 + $0xbc] ss:$72 sps:$4 sm:$0xff]  }
 0x436   : > { %8349 = vmatprep.subr.bf16.mxu1 %v11395_v8  ;;  %v11456_v8 = vld [vmem:[%s12434_s15 + $0x12b0] ss:$72 sps:$4 sm:$0xff]  }
 0x437   : > { %8309 = vmatpush2.bf16.msra.mxu0 %v11390_v33  ;;  %v11464_v33 = vld [vmem:[%s12434_s15 + $0x1224] ss:$72 sps:$4 sm:$0xff]  }
 0x438   : > { %8310 = vmatprep.subr.bf16.mxu0 %v11398_v35  ;;  %v11459_v35 = vld [vmem:[%s12434_s15 + $0xb8] ss:$72 sps:$4 sm:$0xff]  }
 0x439   : > { %8350 = vmatpush2.bf16.msra.mxu1 %v11393_v4  ;;  %v11467_v4 = vld [vmem:[%s12434_s15 + $0x2c] ss:$72 sps:$4 sm:$0xff]  }
 0x43a   : > { %8351 = vmatprep.subr.bf16.mxu1 %v11401_v36  ;;  %v11462_v36 = vld [vmem:[%s12434_s15 + $0x1220] ss:$72 sps:$4 sm:$0xff]  }
 0x43b   : > { %8311 = vmatpush2.bf16.msra.mxu0 %v11396_v11  ;;  %v11470_v11 = vld [vmem:[%s12434_s15 + $0x1a94] ss:$72 sps:$4 sm:$0xff]  }
 0x43c   : > { %8312 = vmatprep.subr.bf16.mxu0 %v11404_v38  ;;  %v11465_v38 = vld [vmem:[%s12434_s15 + $0x28] ss:$72 sps:$4 sm:$0xff]  }
 0x43d   : > { %8352 = vmatpush2.bf16.msra.mxu1 %v11399_v41  ;;  %v11473_v41 = vld [vmem:[%s12434_s15 + $0x89c] ss:$72 sps:$4 sm:$0xff]  }
 0x43e   : > { %8353 = vmatprep.subr.bf16.mxu1 %v11407_v42  ;;  %v11468_v42 = vld [vmem:[%s12434_s15 + $0x1a90] ss:$72 sps:$4 sm:$0xff]  }
 0x43f   : > { %8313 = vmatpush2.bf16.msra.mxu0 %v11402_v44  ;;  %v11476_v44 = vld [vmem:[%s12434_s15 + $0x1a04] ss:$72 sps:$4 sm:$0xff]  }
 0x440   : > { %8314 = vmatprep.subr.bf16.mxu0 %v11410_v45  ;;  %v11471_v45 = vld [vmem:[%s12434_s15 + $0x898] ss:$72 sps:$4 sm:$0xff]  }
 0x441   : > { %8354 = vmatpush2.bf16.msra.mxu1 %v11405_v47  ;;  %v11479_v47 = vld [vmem:[%s12434_s15 + $0x80c] ss:$72 sps:$4 sm:$0xff]  }
 0x442   : > { %8355 = vmatprep.subr.bf16.mxu1 %v11413_v49  ;;  %v11474_v49 = vld [vmem:[%s12434_s15 + $0x1a00] ss:$72 sps:$4 sm:$0xff]  }
 0x443   : > { %8315 = vmatpush2.bf16.msra.mxu0 %v11408_v50  ;;  %v11482_v50 = vld [vmem:[%s12434_s15 + $0x1974] ss:$72 sps:$4 sm:$0xff]  }
 0x444   : > { %8316 = vmatprep.subr.bf16.mxu0 %v11416_v53  ;;  %v11477_v53 = vld [vmem:[%s12434_s15 + $0x808] ss:$72 sps:$4 sm:$0xff]  }
 0x445   : > { %8356 = vmatpush2.bf16.msra.mxu1 %v11411_v54  ;;  %v11485_v54 = vld [vmem:[%s12434_s15 + $0x77c] ss:$72 sps:$4 sm:$0xff]  }
 0x446   : > { %8357 = vmatprep.subr.bf16.mxu1 %v11419_v55  ;;  %v11480_v55 = vld [vmem:[%s12434_s15 + $0x1970] ss:$72 sps:$4 sm:$0xff]  }
 0x447   : > { %8317 = vmatpush2.bf16.msra.mxu0 %v11414_v56  ;;  %v11488_v56 = vld [vmem:[%s12434_s15 + $0x18e4] ss:$72 sps:$4 sm:$0xff]  }
 0x448   : > { %8368 = vmatprep.subr.bf16.mxu0 %v11422_v58  ;;  %v11483_v58 = vld [vmem:[%s12434_s15 + $0x778] ss:$72 sps:$4 sm:$0xff]  }
 0x449   : > { %8358 = vmatpush2.bf16.msra.mxu1 %v11417_v59  ;;  %v11491_v59 = vld [vmem:[%s12434_s15 + $0x6ec] ss:$72 sps:$4 sm:$0xff]  }
 0x44a   : > { %v13095_v57 = vpop.f32.mrf.mxu0  ;;  %8319 = vmatmul.mubr.bf16.vlgmr.msra.gmra.mxu0 %v12624_v9  ;;  %8409 = vmatprep.subr.bf16.mxu1 %v11425_v60  ;;  %v11486_v60 = vld [vmem:[%s12434_s15 + $0x18e0] ss:$72 sps:$4 sm:$0xff]  }
 0x44b   : > { %8369 = vmatpush1.bf16.msra.mxu0 %v11420_v62  ;;  %8400 = vmatprep.mubr.bf16.mxu0 %v12660_v34  ;;  %v11494_v62 = vld [vmem:[%s12434_s15 + $0x1854] ss:$72 sps:$4 sm:$0xff]  }
 0x44c   : > { %v13101_v1 = vpop.f32.mrf.mxu0  ;;  %v13103_v2 = vpop.f32.mrf.mxu1  ;;  %8360 = vmatmul.mubr.bf16.vlgmr.msra.gmra.mxu1 %v12628_v12  ;;  %8370 = vmatprep.subr.bf16.mxu0 %v11428_v63  ;;  %v11489_v63 = vld [vmem:[%s12434_s15 + $0x6e8] ss:$72 sps:$4 sm:$0xff]  }
 0x44d   : > { %8410 = vmatpush1.bf16.msra.mxu1 %v11423_v0  ;;  %8441 = vmatprep.mubr.bf16.mxu1 %v12591_v46  ;;  %v11497_v0 = vld [vmem:[%s12434_s15 + $0x65c] ss:$72 sps:$4 sm:$0xff]  }
 0x44e   : > { %v8078_v37 = vpop.f32.mrf.mxu0  ;;  %v13109_v6 = vpop.f32.mrf.mxu1  ;;  %8411 = vmatprep.subr.bf16.mxu1 %v11431_v61  ;;  %v11492_v61 = vld [vmem:[%s12434_s15 + $0x1850] ss:$72 sps:$4 sm:$0xff]  }
 0x44f   : > { %8371 = vmatpush1.bf16.msra.mxu0 %v11426_v5  ;;  %v11500_v5 = vld [vmem:[%s12434_s15 + $0x17c4] ss:$72 sps:$4 sm:$0xff]   ;;  %v11498_v37 = vld [vmem:[%s12434_s15 + $0x17c0] ss:$72 sps:$4 sm:$0xff]  }
 0x450   : > { %v8079_v10 = vpop.f32.mrf.mxu0  ;;  %8372 = vmatprep.subr.bf16.mxu0 %v11434_v52  ;;  %v8119_v15 = vpop.f32.mrf.mxu1  ;;  %v11495_v52 = vld [vmem:[%s12434_s15 + $0x658] ss:$72 sps:$4 sm:$0xff]  }
 0x451   : > { %8412 = vmatpush1.bf16.msra.mxu1 %v11429_v3  ;;  %v11503_v3 = vld [vmem:[%s12434_s15 + $0x5cc] ss:$72 sps:$4 sm:$0xff]   ;;  %v11501_v10 = vld [vmem:[%s12434_s15 + $0x5c8] ss:$72 sps:$4 sm:$0xff]   ;;  %v3406_v15 = vsub.s32 5, %v12905_v48 }
 0x452   : > { %8413 = vmatprep.subr.bf16.mxu1 %v11437_v40  ;;  %v8120_v21 = vpop.f32.mrf.mxu1  ;;  %v11506_v40 = vld [vmem:[%s12434_s15 + $0x1734] ss:$72 sps:$4 sm:$0xff]  }
 0x453   : > { %8373 = vmatpush1.bf16.msra.mxu0 %v11432_v7  ;;  %v3402_v7 = vsub.s32 4, %v12905_v48  ;;  %v13165_v21 = vld [vmem:[%s12446_s26] sm:$0xff] }
 0x454   : > { %8374 = vmatprep.subr.bf16.mxu0 %v11440_v14  ;;  %v11509_v14 = vld [vmem:[%s12434_s15 + $0x53c] ss:$72 sps:$4 sm:$0xff]  }
 0x455   : > { %8414 = vmatpush1.bf16.msra.mxu1 %v11435_v17  ;;  %v11504_v17 = vld [vmem:[%s12434_s15 + $0x1730] ss:$72 sps:$4 sm:$0xff]  }
 0x456   : > { %8415 = vmatprep.subr.bf16.mxu1 %v11443_v18  ;;  %v11512_v18 = vld [vmem:[%s12434_s15 + $0x16a4] ss:$72 sps:$4 sm:$0xff]  }
 0x457   : > { %8375 = vmatpush1.bf16.msra.mxu0 %v11438_v22  ;;  %v3403_v22 = vrot.slane %v13165_v21, %v3402_v7 }
 0x458   : > { %8376 = vmatprep.subr.bf16.mxu0 %v11446_v13  ;;  %v11507_v13 = vld [vmem:[%s12434_s15 + $0x538] ss:$72 sps:$4 sm:$0xff]  }
 0x459   : > { %8416 = vmatpush1.bf16.msra.mxu1 %v11441_v23  ;;  %v11515_v23 = vld [vmem:[%s12434_s15 + $0x4ac] ss:$72 sps:$4 sm:$0xff]  }
 0x45a   : > { %8417 = vmatprep.subr.bf16.mxu1 %v11449_v24  ;;  %v3407_v24 = vrot.slane %v13165_v21, %v3406_v15 }
 0x45b   : > { %8377 = vmatpush1.bf16.msra.mxu0 %v11444_v25  ;;  %v11510_v25 = vld [vmem:[%s12434_s15 + $0x16a0] ss:$72 sps:$4 sm:$0xff]  }
 0x45c   : > { %8378 = vmatprep.subr.bf16.mxu0 %v11452_v26  ;;  %v11518_v26 = vld [vmem:[%s12434_s15 + $0xd1c] ss:$72 sps:$4 sm:$0xff]  }
 0x45d   : > { %8418 = vmatpush1.bf16.msra.mxu1 %v11447_v27  ;;  %v8075_v27 = vadd.f32 %v13095_v57, %v3403_v22  ;;  %v11527_v57 = vld [vmem:[%s12434_s15 + $0x158c] ss:$72 sps:$4 sm:$0xff]   ;;  %v11555_v22 = vld [vmem:[%s12434_s15 + $0x12b8] ss:$72 sps:$4 sm:$0xff]  }
 0x45e   : > { %8419 = vmatprep.subr.bf16.mxu1 %v11455_v28  ;;  %v11513_v28 = vld [vmem:[%s12434_s15 + $0x4a8] ss:$72 sps:$4 sm:$0xff]  }
 0x45f   : > { %8379 = vmatpush1.bf16.msra.mxu0 %v11450_v29  ;;  %v11521_v29 = vld [vmem:[%s12434_s15 + $0x161c] ss:$72 sps:$4 sm:$0xff]  }
 0x460   : > { %8380 = vmatprep.subr.bf16.mxu0 %v11458_v30  ;;  %v8077_v30 = vadd.f32 %v13101_v1, %v3407_v24  ;;  %v11522_v1 = vld [vmem:[%s12434_s15 + $0xc88] ss:$72 sps:$4 sm:$0xff]   ;;  %v11566_v24 = vld [vmem:[%s12434_s15 + $0x119c] ss:$72 sps:$4 sm:$0xff]  }
 0x461   : > { %8420 = vmatpush1.bf16.msra.mxu1 %v11453_v31  ;;  %v11516_v31 = vld [vmem:[%s12434_s15 + $0xd18] ss:$72 sps:$4 sm:$0xff]  }
 0x462   : > { %8421 = vmatprep.subr.bf16.mxu1 %v11461_v32  ;;  %v11524_v32 = vld [vmem:[%s12434_s15 + $0xc8c] ss:$72 sps:$4 sm:$0xff]  }
 0x463   : > { %8381 = vmatpush1.bf16.msra.mxu0 %v11456_v8  ;;  %v8116_v8 = vadd.f32 %v13103_v2, %v8075_v27  ;;  %v11530_v2 = vld [vmem:[%s12434_s15 + $0xbfc] ss:$72 sps:$4 sm:$0xff]   ;;  %v11564_v27 = vld [vmem:[%s12434_s15 + $0x1198] ss:$72 sps:$4 sm:$0xff]  }
 0x464   : > { %8382 = vmatprep.subr.bf16.mxu0 %v11464_v33  ;;  %v11519_v33 = vld [vmem:[%s12434_s15 + $0x1618] ss:$72 sps:$4 sm:$0xff]  }
 0x465   : > { %8422 = vmatpush1.bf16.msra.mxu1 %v11459_v35 }
 0x466   : > { %8423 = vmatprep.subr.bf16.mxu1 %v11467_v4  ;;  %v8118_v4 = vadd.f32 %v13109_v6, %v8077_v30  ;;  %v11525_v6 = vld [vmem:[%s12434_s15 + $0x1588] ss:$72 sps:$4 sm:$0xff]   ;;  %v11575_v30 = vld [vmem:[%s12434_s15 + $0x1a0c] ss:$72 sps:$4 sm:$0xff]  }
 0x467   : > { %8383 = vmatpush1.bf16.msra.mxu0 %v11462_v36 }
 0x468   : > { %8384 = vmatprep.subr.bf16.mxu0 %v11470_v11 }
 0x469   : > { %8424 = vmatpush1.bf16.msra.mxu1 %v11465_v38 }
 0x46a   : > { %8425 = vmatprep.subr.bf16.mxu1 %v11473_v41 }
 0x46b   : > { %8385 = vmatpush2.bf16.msra.mxu0 %v11468_v42 }
 0x46c   : > { %8386 = vmatprep.subr.bf16.mxu0 %v11476_v44  ;;  %v11533_v44 = vld [vmem:[%s12434_s15 + $0x14fc] ss:$72 sps:$4 sm:$0xff]  }
 0x46d   : > { %8426 = vmatpush2.bf16.msra.mxu1 %v11471_v45 }
 0x46e   : > { %8427 = vmatprep.subr.bf16.mxu1 %v11479_v47  ;;  %v11528_v47 = vld [vmem:[%s12434_s15 + $0xbf8] ss:$72 sps:$4 sm:$0xff]  }
 0x46f   : > { %8387 = vmatpush2.bf16.msra.mxu0 %v11474_v49 }
 0x470   : > { %8388 = vmatprep.subr.bf16.mxu0 %v11482_v50  ;;  %v11536_v50 = vld [vmem:[%s12434_s15 + $0xb6c] ss:$72 sps:$4 sm:$0xff]  }
 0x471   : > { %8428 = vmatpush2.bf16.msra.mxu1 %v11477_v53 }
 0x472   : > { %8429 = vmatprep.subr.bf16.mxu1 %v11485_v54  ;;  %v11531_v54 = vld [vmem:[%s12434_s15 + $0x14f8] ss:$72 sps:$4 sm:$0xff]  }
 0x473   : > { %8389 = vmatpush2.bf16.msra.mxu0 %v11480_v55  ;;  %v11539_v55 = vld [vmem:[%s12434_s15 + $0x146c] ss:$72 sps:$4 sm:$0xff]  }
 0x474   : > { %8390 = vmatprep.subr.bf16.mxu0 %v11488_v56 }
 0x475   : > { %8430 = vmatpush2.bf16.msra.mxu1 %v11483_v58  ;;  %v11534_v58 = vld [vmem:[%s12434_s15 + $0xb68] ss:$72 sps:$4 sm:$0xff]  }
 0x476   : > { %8431 = vmatprep.subr.bf16.mxu1 %v11491_v59  ;;  %v11542_v59 = vld [vmem:[%s12434_s15 + $0xadc] ss:$72 sps:$4 sm:$0xff]  }
 0x477   : > { %8391 = vmatpush2.bf16.msra.mxu0 %v11486_v60  ;;  %v11537_v60 = vld [vmem:[%s12434_s15 + $0x1468] ss:$72 sps:$4 sm:$0xff]  }
 0x478   : > { %8392 = vmatprep.subr.bf16.mxu0 %v11494_v62  ;;  %v11545_v62 = vld [vmem:[%s12434_s15 + $0x13dc] ss:$72 sps:$4 sm:$0xff]  }
 0x479   : > { %8432 = vmatpush2.bf16.msra.mxu1 %v11489_v63  ;;  %v11540_v63 = vld [vmem:[%s12434_s15 + $0xad8] ss:$72 sps:$4 sm:$0xff]  }
 0x47a   : > { %8433 = vmatprep.subr.bf16.mxu1 %v11497_v0  ;;  %v11548_v0 = vld [vmem:[%s12434_s15 + $0xa4c] ss:$72 sps:$4 sm:$0xff]  }
 0x47b   : > { %8393 = vmatpush2.bf16.msra.mxu0 %v11492_v61  ;;  %v11543_v61 = vld [vmem:[%s12434_s15 + $0x13d8] ss:$72 sps:$4 sm:$0xff]  }
 0x47c   : > { %8394 = vmatprep.subr.bf16.mxu0 %v11500_v5 }
 0x47d   : > { %8434 = vmatpush2.bf16.msra.mxu1 %v11495_v52  ;;  %v11551_v52 = vld [vmem:[%s12434_s15 + $0x134c] ss:$72 sps:$4 sm:$0xff]  }
 0x47e   : > { %8435 = vmatprep.subr.bf16.mxu1 %v11503_v3  ;;  %v11546_v3 = vld [vmem:[%s12434_s15 + $0xa48] ss:$72 sps:$4 sm:$0xff]  }
 0x47f   : > { %8395 = vmatpush2.bf16.msra.mxu0 %v11498_v37 }
 0x480   : > { %8396 = vmatprep.subr.bf16.mxu0 %v11506_v40  ;;  %v11554_v40 = vld [vmem:[%s12434_s15 + $0x9bc] ss:$72 sps:$4 sm:$0xff]  }
 0x481   : > { %8436 = vmatpush2.bf16.msra.mxu1 %v11501_v10  ;;  %v11549_v10 = vld [vmem:[%s12434_s15 + $0x1348] ss:$72 sps:$4 sm:$0xff]  }
 0x482   : > { %8437 = vmatprep.subr.bf16.mxu1 %v11509_v14  ;;  %v11557_v14 = vld [vmem:[%s12434_s15 + $0x12bc] ss:$72 sps:$4 sm:$0xff]  }
 0x483   : > { %8397 = vmatpush2.bf16.msra.mxu0 %v11504_v17  ;;  %v11552_v17 = vld [vmem:[%s12434_s15 + $0x9b8] ss:$72 sps:$4 sm:$0xff]  }
 0x484   : > { %8398 = vmatprep.subr.bf16.mxu0 %v11512_v18  ;;  %v11560_v18 = vld [vmem:[%s12434_s15 + $0x92c] ss:$72 sps:$4 sm:$0xff]  }
 0x485   : > { %8438 = vmatpush2.bf16.msra.mxu1 %v11507_v13  ;;  %v11563_v13 = vld [vmem:[%s12434_s15 + $0x122c] ss:$72 sps:$4 sm:$0xff]  }
 0x486   : > { %8439 = vmatprep.subr.bf16.mxu1 %v11515_v23  ;;  %v11558_v23 = vld [vmem:[%s12434_s15 + $0x928] ss:$72 sps:$4 sm:$0xff]  }
 0x487   : > { %8399 = vmatpush2.bf16.msra.mxu0 %v11510_v25  ;;  %v11561_v25 = vld [vmem:[%s12434_s15 + $0x1228] ss:$72 sps:$4 sm:$0xff]  }
 0x488   : > { %8450 = vmatprep.subr.bf16.mxu0 %v11518_v26  ;;  %v11569_v26 = vld [vmem:[%s12434_s15 + $0x1a9c] ss:$72 sps:$4 sm:$0xff]  }
 0x489   : > { %8440 = vmatpush2.bf16.msra.mxu1 %v11513_v28  ;;  %v11572_v28 = vld [vmem:[%s12434_s15 + $0x110c] ss:$72 sps:$4 sm:$0xff]  }
 0x48a   : > { %v8156_v35 = vpop.f32.mrf.mxu0  ;;  %8401 = vmatmul.mubr.bf16.vlgmr.msra.gmra.mxu0 %v12704_v19  ;;  %8491 = vmatprep.subr.bf16.mxu1 %v11521_v29  ;;  %v11567_v29 = vld [vmem:[%s12434_s15 + $0x1a98] ss:$72 sps:$4 sm:$0xff]  }
 0x48b   : > { %v8157_v36 = vadd.f32 %v8156_v35, %v8116_v8  ;;  %8451 = vmatpush1.bf16.msra.mxu0 %v11516_v31  ;;  %8482 = vmatprep.mubr.bf16.mxu0 %v12599_v51  ;;  %v11570_v31 = vld [vmem:[%s12434_s15 + $0x1108] ss:$72 sps:$4 sm:$0xff]   ;;  %v11576_v35 = vld [vmem:[%s12434_s15 + $0x1078] ss:$72 sps:$4 sm:$0xff]  }
 0x48c   : > { %v8158_v11 = vpop.f32.mrf.mxu0  ;;  %8442 = vmatmul.mubr.bf16.vlgmr.msra.gmra.mxu1 %v12624_v9  ;;  %8452 = vmatprep.subr.bf16.mxu0 %v11524_v32  ;;  %v13192_v38 = vpop.f32.mrf.mxu1  ;;  %v11578_v32 = vld [vmem:[%s12434_s15 + $0x107c] ss:$72 sps:$4 sm:$0xff]   ;;  %v11573_v8 = vld [vmem:[%s12434_s15 + $0x1a08] ss:$72 sps:$4 sm:$0xff]  }
 0x48d   : > { %12052 = vtanh.f32 %v8157_v36  ;;  %v8159_v41 = vadd.f32 %v8158_v11, %v8118_v4  ;;  %8492 = vmatpush1.bf16.msra.mxu1 %v11519_v33  ;;  %8523 = vmatprep.mubr.bf16.mxu1 %v12660_v34  ;;  %v11581_v33 = vld [vmem:[%s12434_s15 + $0x197c] ss:$72 sps:$4 sm:$0xff]   ;;  %v11579_v4 = vld [vmem:[%s12434_s15 + $0x1978] ss:$72 sps:$4 sm:$0xff]   ;;  %v11587_v36 = vld [vmem:[%s12434_s15 + $0x18ec] ss:$72 sps:$4 sm:$0xff]  }
 0x48e   : > { %v8160_v42 = vpop.f32.mrf.mxu0  ;;  %8493 = vmatprep.subr.bf16.mxu1 %v11527_v57  ;;  %v13197_v45 = vpop.f32.mrf.mxu1  ;;  %v11584_v57 = vld [vmem:[%s12434_s15 + $0xfec] ss:$72 sps:$4 sm:$0xff]   ;;  %v11590_v11 = vld [vmem:[%s12434_s15 + $0xf5c] ss:$72 sps:$4 sm:$0xff]  }
 0x48f   : > { %12054 = vtanh.f32 %v8159_v41  ;;  %8453 = vmatpush1.bf16.msra.mxu0 %v11522_v1  ;;  %v11582_v1 = vld [vmem:[%s12434_s15 + $0xfe8] ss:$72 sps:$4 sm:$0xff]   ;;  %v11593_v41 = vld [vmem:[%s12434_s15 + $0x185c] ss:$72 sps:$4 sm:$0xff]   ;;  %v11596_v42 = vld [vmem:[%s12434_s15 + $0xecc] ss:$72 sps:$4 sm:$0xff]  }
 0x490   : > { %v8161_v49 = vpop.f32.mrf.mxu0  ;;  %8454 = vmatprep.subr.bf16.mxu0 %v11530_v2  ;;  %v8201_v53 = vpop.f32.mrf.mxu1  ;;  %v11585_v2 = vld [vmem:[%s12434_s15 + $0x18e8] ss:$72 sps:$4 sm:$0xff]  }
 0x491   : > { %8494 = vmatpush1.bf16.msra.mxu1 %v11525_v6  ;;  %v11588_v6 = vld [vmem:[%s12434_s15 + $0xf58] ss:$72 sps:$4 sm:$0xff]   ;;  %v11594_v49 = vld [vmem:[%s12434_s15 + $0xec8] ss:$72 sps:$4 sm:$0xff]  }
 0x492   : > { %8495 = vmatprep.subr.bf16.mxu1 %v11533_v44  ;;  %v8202_v56 = vpop.f32.mrf.mxu1  ;;  %v11591_v44 = vld [vmem:[%s12434_s15 + $0x1858] ss:$72 sps:$4 sm:$0xff]   ;;  %v11597_v53 = vld [vmem:[%s12434_s15 + $0x17c8] ss:$72 sps:$4 sm:$0xff]  }
 0x493   : > { %8455 = vmatpush1.bf16.msra.mxu0 %v11528_v47  ;;  %v11599_v47 = vld [vmem:[%s12434_s15 + $0x17cc] ss:$72 sps:$4 sm:$0xff]   ;;  %v3410_v56 = vsub.s32 6, %v12905_v48 }
 0x494   : > { %8456 = vmatprep.subr.bf16.mxu0 %v11536_v50  ;;  %v11602_v50 = vld [vmem:[%s12434_s15 + $0xe3c] ss:$72 sps:$4 sm:$0xff]  }
 0x495   : > { %8496 = vmatpush1.bf16.msra.mxu1 %v11531_v54  ;;  %v11605_v54 = vld [vmem:[%s12434_s15 + $0x173c] ss:$72 sps:$4 sm:$0xff]  }
 0x496   : > { %8497 = vmatprep.subr.bf16.mxu1 %v11539_v55  ;;  %v11600_v55 = vld [vmem:[%s12434_s15 + $0xe38] ss:$72 sps:$4 sm:$0xff]  }
 0x497   : > { %8457 = vmatpush1.bf16.msra.mxu0 %v11534_v58  ;;  %v11608_v58 = vld [vmem:[%s12434_s15 + $0xdac] ss:$72 sps:$4 sm:$0xff]  }
 0x498   : > { %8458 = vmatprep.subr.bf16.mxu0 %v11542_v59  ;;  %v11603_v59 = vld [vmem:[%s12434_s15 + $0x1738] ss:$72 sps:$4 sm:$0xff]  }
 0x499   : > { %8498 = vmatpush1.bf16.msra.mxu1 %v11537_v60  ;;  %v3414_v60 = vsub.s32 7, %v12905_v48 }
 0x49a   : > { %v12053_v5 = vpop.eup %12052  ;;  %8499 = vmatprep.subr.bf16.mxu1 %v11545_v62  ;;  %v11611_v62 = vld [vmem:[%s12434_s15 + $0x16ac] ss:$72 sps:$4 sm:$0xff]  }
 0x49b   : > { %8923 = vst [vmem:[%s12444_s27 + $0x20] sm:$0xff] %v12053_v5  ;;  %8459 = vmatpush1.bf16.msra.mxu0 %v11540_v63  ;;  %v3411_v63 = vrot.slane %v13165_v21, %v3410_v56  ;;  %v3415_v5 = vrot.slane %v13165_v21, %v3414_v60  ;;  %v11623_v21 = vld [vmem:[%s12434_s15 + $0xc94] ss:$72 sps:$4 sm:$0xff]  }
 0x49c   : > { %v12055_v37 = vpop.eup %12054  ;;  %8460 = vmatprep.subr.bf16.mxu0 %v11548_v0  ;;  %v11606_v0 = vld [vmem:[%s12434_s15 + $0xda8] ss:$72 sps:$4 sm:$0xff]  }
 0x49d   : > { %8924 = vst [vmem:[%s12444_s27 + $0x28] sm:$0xff] %v12055_v37  ;;  %8500 = vmatpush1.bf16.msra.mxu1 %v11543_v61  ;;  %v11614_v61 = vld [vmem:[%s12434_s15 + $0x424] ss:$72 sps:$4 sm:$0xff]   ;;  %v8198_v37 = vadd.f32 %v13192_v38, %v3411_v63  ;;  %v11659_v63 = vld [vmem:[%s12434_s15 + $0x934] ss:$72 sps:$4 sm:$0xff]  }
 0x49e   : > { %8501 = vmatprep.subr.bf16.mxu1 %v11551_v52  ;;  %v11609_v52 = vld [vmem:[%s12434_s15 + $0x16a8] ss:$72 sps:$4 sm:$0xff]  }
 0x49f   : > { %8461 = vmatpush1.bf16.msra.mxu0 %v11546_v3  ;;  %v11617_v3 = vld [vmem:[%s12434_s15 + $0xd24] ss:$72 sps:$4 sm:$0xff]  }
 0x4a0   : > { %8462 = vmatprep.subr.bf16.mxu0 %v11554_v40  ;;  %v11612_v40 = vld [vmem:[%s12434_s15 + $0x420] ss:$72 sps:$4 sm:$0xff]  }
 0x4a1   : > { %8502 = vmatpush1.bf16.msra.mxu1 %v11549_v10  ;;  %v11620_v10 = vld [vmem:[%s12434_s15 + $0x394] ss:$72 sps:$4 sm:$0xff]  }
 0x4a2   : > { %8503 = vmatprep.subr.bf16.mxu1 %v11557_v14  ;;  %v8200_v14 = vadd.f32 %v13197_v45, %v3415_v5  ;;  %v11626_v45 = vld [vmem:[%s12434_s15 + $0x304] ss:$72 sps:$4 sm:$0xff]   ;;  %v11657_v5 = vld [vmem:[%s12434_s15 + $0x930] ss:$72 sps:$4 sm:$0xff]  }
 0x4a3   : > { %8463 = vmatpush1.bf16.msra.mxu0 %v11552_v17  ;;  %v11615_v17 = vld [vmem:[%s12434_s15 + $0xd20] ss:$72 sps:$4 sm:$0xff]  }
 0x4a4   : > { %8464 = vmatprep.subr.bf16.mxu0 %v11560_v18 }
 0x4a5   : > { %8504 = vmatpush1.bf16.msra.mxu1 %v11555_v22 }
 0x4a6   : > { %8505 = vmatprep.subr.bf16.mxu1 %v11563_v13  ;;  %v11618_v13 = vld [vmem:[%s12434_s15 + $0x390] ss:$72 sps:$4 sm:$0xff]  }
 0x4a7   : > { %8465 = vmatpush1.bf16.msra.mxu0 %v11558_v23 }
 0x4a8   : > { %8466 = vmatprep.subr.bf16.mxu0 %v11566_v24 }
 0x4a9   : > { %8506 = vmatpush1.bf16.msra.mxu1 %v11561_v25 }
 0x4aa   : > { %8507 = vmatprep.subr.bf16.mxu1 %v11569_v26  ;;  %v11621_v26 = vld [vmem:[%s12434_s15 + $0xc90] ss:$72 sps:$4 sm:$0xff]  }
 0x4ab   : > { %8467 = vmatpush2.bf16.msra.mxu0 %v11564_v27 }
 0x4ac   : > { %8468 = vmatprep.subr.bf16.mxu0 %v11572_v28 }
 0x4ad   : > { %8508 = vmatpush2.bf16.msra.mxu1 %v11567_v29  ;;  %v11629_v29 = vld [vmem:[%s12434_s15 + $0xc04] ss:$72 sps:$4 sm:$0xff]  }
 0x4ae   : > { %8509 = vmatprep.subr.bf16.mxu1 %v11575_v30 }
 0x4af   : > { %8469 = vmatpush2.bf16.msra.mxu0 %v11570_v31  ;;  %v11624_v31 = vld [vmem:[%s12434_s15 + $0x300] ss:$72 sps:$4 sm:$0xff]  }
 0x4b0   : > { %8470 = vmatprep.subr.bf16.mxu0 %v11578_v32 }
 0x4b1   : > { %8510 = vmatpush2.bf16.msra.mxu1 %v11573_v8  ;;  %v11632_v8 = vld [vmem:[%s12434_s15 + $0x274] ss:$72 sps:$4 sm:$0xff]  }
 0x4b2   : > { %8511 = vmatprep.subr.bf16.mxu1 %v11581_v33 }
 0x4b3   : > { %8471 = vmatpush2.bf16.msra.mxu0 %v11576_v35  ;;  %v11627_v35 = vld [vmem:[%s12434_s15 + $0xc00] ss:$72 sps:$4 sm:$0xff]  }
 0x4b4   : > { %8472 = vmatprep.subr.bf16.mxu0 %v11584_v57  ;;  %v11635_v57 = vld [vmem:[%s12434_s15 + $0xb74] ss:$72 sps:$4 sm:$0xff]  }
 0x4b5   : > { %8512 = vmatpush2.bf16.msra.mxu1 %v11579_v4 }
 0x4b6   : > { %8513 = vmatprep.subr.bf16.mxu1 %v11587_v36  ;;  %v11630_v36 = vld [vmem:[%s12434_s15 + $0x270] ss:$72 sps:$4 sm:$0xff]  }
 0x4b7   : > { %8473 = vmatpush2.bf16.msra.mxu0 %v11582_v1  ;;  %v11638_v1 = vld [vmem:[%s12434_s15 + $0x1e4] ss:$72 sps:$4 sm:$0xff]  }
 0x4b8   : > { %8474 = vmatprep.subr.bf16.mxu0 %v11590_v11  ;;  %v11633_v11 = vld [vmem:[%s12434_s15 + $0xb70] ss:$72 sps:$4 sm:$0xff]  }
 0x4b9   : > { %8514 = vmatpush2.bf16.msra.mxu1 %v11585_v2  ;;  %v11641_v2 = vld [vmem:[%s12434_s15 + $0xae4] ss:$72 sps:$4 sm:$0xff]  }
 0x4ba   : > { %8515 = vmatprep.subr.bf16.mxu1 %v11593_v41  ;;  %v11636_v41 = vld [vmem:[%s12434_s15 + $0x1e0] ss:$72 sps:$4 sm:$0xff]  }
 0x4bb   : > { %8475 = vmatpush2.bf16.msra.mxu0 %v11588_v6  ;;  %v11644_v6 = vld [vmem:[%s12434_s15 + $0x154] ss:$72 sps:$4 sm:$0xff]  }
 0x4bc   : > { %8476 = vmatprep.subr.bf16.mxu0 %v11596_v42  ;;  %v11639_v42 = vld [vmem:[%s12434_s15 + $0xae0] ss:$72 sps:$4 sm:$0xff]  }
 0x4bd   : > { %8516 = vmatpush2.bf16.msra.mxu1 %v11591_v44  ;;  %v11647_v44 = vld [vmem:[%s12434_s15 + $0xa54] ss:$72 sps:$4 sm:$0xff]  }
 0x4be   : > { %8517 = vmatprep.subr.bf16.mxu1 %v11599_v47  ;;  %v11642_v47 = vld [vmem:[%s12434_s15 + $0x150] ss:$72 sps:$4 sm:$0xff]  }
 0x4bf   : > { %8477 = vmatpush2.bf16.msra.mxu0 %v11594_v49 }
 0x4c0   : > { %8478 = vmatprep.subr.bf16.mxu0 %v11602_v50  ;;  %v11650_v50 = vld [vmem:[%s12434_s15 + $0xc4] ss:$72 sps:$4 sm:$0xff]  }
 0x4c1   : > { %8518 = vmatpush2.bf16.msra.mxu1 %v11597_v53  ;;  %v11645_v53 = vld [vmem:[%s12434_s15 + $0xa50] ss:$72 sps:$4 sm:$0xff]  }
 0x4c2   : > { %8519 = vmatprep.subr.bf16.mxu1 %v11605_v54 }
 0x4c3   : > { %8479 = vmatpush2.bf16.msra.mxu0 %v11600_v55  ;;  %v11653_v55 = vld [vmem:[%s12434_s15 + $0x9c4] ss:$72 sps:$4 sm:$0xff]  }
 0x4c4   : > { %8480 = vmatprep.subr.bf16.mxu0 %v11608_v58  ;;  %v11648_v58 = vld [vmem:[%s12434_s15 + $0xc0] ss:$72 sps:$4 sm:$0xff]  }
 0x4c5   : > { %8520 = vmatpush2.bf16.msra.mxu1 %v11603_v59  ;;  %v11656_v59 = vld [vmem:[%s12434_s15 + $0x34] ss:$72 sps:$4 sm:$0xff]  }
 0x4c6   : > { %8521 = vmatprep.subr.bf16.mxu1 %v11611_v62  ;;  %v11651_v62 = vld [vmem:[%s12434_s15 + $0x9c0] ss:$72 sps:$4 sm:$0xff]  }
 0x4c7   : > { %8481 = vmatpush2.bf16.msra.mxu0 %v11606_v0  ;;  %v11654_v0 = vld [vmem:[%s12434_s15 + $0x30] ss:$72 sps:$4 sm:$0xff]  }
 0x4c8   : > { %8532 = vmatprep.subr.bf16.mxu0 %v11614_v61  ;;  %v11662_v61 = vld [vmem:[%s12434_s15 + $0x8a4] ss:$72 sps:$4 sm:$0xff]  }
 0x4c9   : > { %8522 = vmatpush2.bf16.msra.mxu1 %v11609_v52  ;;  %v11665_v52 = vld [vmem:[%s12434_s15 + $0x11a4] ss:$72 sps:$4 sm:$0xff]  }
 0x4ca   : > { %v8238_v18 = vpop.f32.mrf.mxu0  ;;  %8483 = vmatmul.mubr.bf16.vlgmr.msra.gmra.mxu0 %v12628_v12  ;;  %8573 = vmatprep.subr.bf16.mxu1 %v11617_v3  ;;  %v11660_v3 = vld [vmem:[%s12434_s15 + $0x8a0] ss:$72 sps:$4 sm:$0xff]  }
 0x4cb   : > { %v8239_v22 = vadd.f32 %v8238_v18, %v8198_v37  ;;  %8533 = vmatpush1.bf16.msra.mxu0 %v11612_v40  ;;  %8564 = vmatprep.mubr.bf16.mxu0 %v12591_v46  ;;  %v11668_v37 = vld [vmem:[%s12434_s15 + $0x814] ss:$72 sps:$4 sm:$0xff]   ;;  %v11663_v40 = vld [vmem:[%s12434_s15 + $0x11a0] ss:$72 sps:$4 sm:$0xff]   ;;  %v11669_v18 = vld [vmem:[%s12434_s15 + $0x1110] ss:$72 sps:$4 sm:$0xff]  }
 0x4cc   : > { %v8240_v38 = vpop.f32.mrf.mxu0  ;;  %v8279_v23 = vpop.f32.mrf.mxu1  ;;  %8524 = vmatmul.mubr.bf16.vlgmr.msra.gmra.mxu1 %v12704_v19  ;;  %8534 = vmatprep.subr.bf16.mxu0 %v11620_v10  ;;  %v11671_v10 = vld [vmem:[%s12434_s15 + $0x1114] ss:$72 sps:$4 sm:$0xff]  }
 0x4cd   : > { %v8241_v24 = vadd.f32 %v8240_v38, %v8200_v14  ;;  %v8280_v25 = vadd.f32 %v8279_v23, %v8239_v22  ;;  %8574 = vmatpush1.bf16.msra.mxu1 %v11615_v17  ;;  %8605 = vmatprep.mubr.bf16.mxu1 %v12599_v51  ;;  %v11666_v14 = vld [vmem:[%s12434_s15 + $0x810] ss:$72 sps:$4 sm:$0xff]   ;;  %v11674_v17 = vld [vmem:[%s12434_s15 + $0x784] ss:$72 sps:$4 sm:$0xff]   ;;  %v11672_v22 = vld [vmem:[%s12434_s15 + $0x780] ss:$72 sps:$4 sm:$0xff]  }
 0x4ce   : > { %v8242_v27 = vpop.f32.mrf.mxu0  ;;  %v8281_v28 = vpop.f32.mrf.mxu1  ;;  %8575 = vmatprep.subr.bf16.mxu1 %v11623_v21  ;;  %v11677_v21 = vld [vmem:[%s12434_s15 + $0x1084] ss:$72 sps:$4 sm:$0xff]   ;;  %v11675_v38 = vld [vmem:[%s12434_s15 + $0x1080] ss:$72 sps:$4 sm:$0xff]   ;;  %v11683_v23 = vld [vmem:[%s12434_s15 + $0xff4] ss:$72 sps:$4 sm:$0xff]  }
 0x4cf   : > { %12056 = vtanh.f32 %v8280_v25  ;;  %v8282_v30 = vadd.f32 %v8281_v28, %v8241_v24  ;;  %8535 = vmatpush1.bf16.msra.mxu0 %v11618_v13  ;;  %v11680_v13 = vld [vmem:[%s12434_s15 + $0x6f4] ss:$72 sps:$4 sm:$0xff]   ;;  %v11686_v24 = vld [vmem:[%s12434_s15 + $0x664] ss:$72 sps:$4 sm:$0xff]   ;;  %v11681_v25 = vld [vmem:[%s12434_s15 + $0xff0] ss:$72 sps:$4 sm:$0xff]  }
 0x4d0   : > { %v8243_v32 = vpop.f32.mrf.mxu0  ;;  %8536 = vmatprep.subr.bf16.mxu0 %v11626_v45  ;;  %v8283_v33 = vpop.f32.mrf.mxu1  ;;  %v11678_v45 = vld [vmem:[%s12434_s15 + $0x6f0] ss:$72 sps:$4 sm:$0xff]   ;;  %v11684_v27 = vld [vmem:[%s12434_s15 + $0x660] ss:$72 sps:$4 sm:$0xff]   ;;  %v11692_v28 = vld [vmem:[%s12434_s15 + $0x5d4] ss:$72 sps:$4 sm:$0xff]  }
 0x4d1   : > { %12058 = vtanh.f32 %v8282_v30  ;;  %8576 = vmatpush1.bf16.msra.mxu1 %v11621_v26  ;;  %v11689_v26 = vld [vmem:[%s12434_s15 + $0xf64] ss:$72 sps:$4 sm:$0xff]   ;;  %v11695_v30 = vld [vmem:[%s12434_s15 + $0xed4] ss:$72 sps:$4 sm:$0xff]  }
 0x4d2   : > { %8577 = vmatprep.subr.bf16.mxu1 %v11629_v29  ;;  %v8284_v4 = vpop.f32.mrf.mxu1  ;;  %v11687_v29 = vld [vmem:[%s12434_s15 + $0xf60] ss:$72 sps:$4 sm:$0xff]   ;;  %v11698_v32 = vld [vmem:[%s12434_s15 + $0x544] ss:$72 sps:$4 sm:$0xff]  }
 0x4d3   : > { %8537 = vmatpush1.bf16.msra.mxu0 %v11624_v31  ;;  %v11690_v31 = vld [vmem:[%s12434_s15 + $0x5d0] ss:$72 sps:$4 sm:$0xff]   ;;  %v11701_v33 = vld [vmem:[%s12434_s15 + $0xe44] ss:$72 sps:$4 sm:$0xff]   ;;  %v11699_v4 = vld [vmem:[%s12434_s15 + $0xe40] ss:$72 sps:$4 sm:$0xff]  }
 0x4d4   : > { %8538 = vmatprep.subr.bf16.mxu0 %v11632_v8  ;;  %v11693_v8 = vld [vmem:[%s12434_s15 + $0xed0] ss:$72 sps:$4 sm:$0xff]  }
 0x4d5   : > { %8578 = vmatpush1.bf16.msra.mxu1 %v11627_v35  ;;  %v11696_v35 = vld [vmem:[%s12434_s15 + $0x540] ss:$72 sps:$4 sm:$0xff]  }
 0x4d6   : > { %8579 = vmatprep.subr.bf16.mxu1 %v11635_v57  ;;  %v11704_v57 = vld [vmem:[%s12434_s15 + $0x4b4] ss:$72 sps:$4 sm:$0xff]  }
 0x4d7   : > { %8539 = vmatpush1.bf16.msra.mxu0 %v11630_v36  ;;  %v11707_v36 = vld [vmem:[%s12434_s15 + $0xdb4] ss:$72 sps:$4 sm:$0xff]  }
 0x4d8   : > { %8540 = vmatprep.subr.bf16.mxu0 %v11638_v1  ;;  %v11702_v1 = vld [vmem:[%s12434_s15 + $0x4b0] ss:$72 sps:$4 sm:$0xff]  }
 0x4d9   : > { %8580 = vmatpush1.bf16.msra.mxu1 %v11633_v11  ;;  %v11710_v11 = vld [vmem:[%s12434_s15 + $0x1624] ss:$72 sps:$4 sm:$0xff]  }
 0x4da   : > { %8581 = vmatprep.subr.bf16.mxu1 %v11641_v2  ;;  %v11705_v2 = vld [vmem:[%s12434_s15 + $0xdb0] ss:$72 sps:$4 sm:$0xff]  }
 0x4db   : > { %8541 = vmatpush1.bf16.msra.mxu0 %v11636_v41  ;;  %v11713_v41 = vld [vmem:[%s12434_s15 + $0x42c] ss:$72 sps:$4 sm:$0xff]  }
 0x4dc   : > { %v12057_v49 = vpop.eup %12056  ;;  %8542 = vmatprep.subr.bf16.mxu0 %v11644_v6  ;;  %v11708_v6 = vld [vmem:[%s12434_s15 + $0x1620] ss:$72 sps:$4 sm:$0xff]  }
 0x4dd   : > { %8925 = vst [vmem:[%s12444_s27 + $0x30] sm:$0xff] %v12057_v49  ;;  %8582 = vmatpush1.bf16.msra.mxu1 %v11639_v42  ;;  %v11716_v42 = vld [vmem:[%s12434_s15 + $0x1594] ss:$72 sps:$4 sm:$0xff]  }
 0x4de   : > { %v12059_v54 = vpop.eup %12058  ;;  %8583 = vmatprep.subr.bf16.mxu1 %v11647_v44  ;;  %v11711_v44 = vld [vmem:[%s12434_s15 + $0x428] ss:$72 sps:$4 sm:$0xff]   ;;  %v11719_v49 = vld [vmem:[%s12434_s15 + $0x39c] ss:$72 sps:$4 sm:$0xff]  }
 0x4df   : > { %8926 = vst [vmem:[%s12444_s27 + $0x38] sm:$0xff] %v12059_v54  ;;  %8543 = vmatpush1.bf16.msra.mxu0 %v11642_v47 }
 0x4e0   : > { %8544 = vmatprep.subr.bf16.mxu0 %v11650_v50  ;;  %v11714_v50 = vld [vmem:[%s12434_s15 + $0x1590] ss:$72 sps:$4 sm:$0xff]  }
 0x4e1   : > { %8584 = vmatpush1.bf16.msra.mxu1 %v11645_v53 }
 0x4e2   : > { %8585 = vmatprep.subr.bf16.mxu1 %v11653_v55  ;;  %v11722_v55 = vld [vmem:[%s12434_s15 + $0x1504] ss:$72 sps:$4 sm:$0xff]  }
 0x4e3   : > { %8545 = vmatpush1.bf16.msra.mxu0 %v11648_v58  ;;  %v11717_v58 = vld [vmem:[%s12434_s15 + $0x398] ss:$72 sps:$4 sm:$0xff]  }
 0x4e4   : > { %8546 = vmatprep.subr.bf16.mxu0 %v11656_v59 }
 0x4e5   : > { %8586 = vmatpush1.bf16.msra.mxu1 %v11651_v62 }
 0x4e6   : > { %8587 = vmatprep.subr.bf16.mxu1 %v11659_v63  ;;  %v11725_v63 = vld [vmem:[%s12434_s15 + $0x30c] ss:$72 sps:$4 sm:$0xff]  }
 0x4e7   : > { %8547 = vmatpush1.bf16.msra.mxu0 %v11654_v0  ;;  %v11720_v0 = vld [vmem:[%s12434_s15 + $0x1500] ss:$72 sps:$4 sm:$0xff]  }
 0x4e8   : > { %8548 = vmatprep.subr.bf16.mxu0 %v11662_v61 }
 0x4e9   : > { %8588 = vmatpush1.bf16.msra.mxu1 %v11657_v5  ;;  %v11728_v5 = vld [vmem:[%s12434_s15 + $0x1474] ss:$72 sps:$4 sm:$0xff]  }
 0x4ea   : > { %8589 = vmatprep.subr.bf16.mxu1 %v11665_v52 }
 0x4eb   : > { %8549 = vmatpush2.bf16.msra.mxu0 %v11660_v3  ;;  %v11723_v3 = vld [vmem:[%s12434_s15 + $0x308] ss:$72 sps:$4 sm:$0xff]  }
 0x4ec   : > { %8550 = vmatprep.subr.bf16.mxu0 %v11668_v37  ;;  %v11731_v37 = vld [vmem:[%s12434_s15 + $0x27c] ss:$72 sps:$4 sm:$0xff]  }
 0x4ed   : > { %8590 = vmatpush2.bf16.msra.mxu1 %v11663_v40 }
 0x4ee   : > { %8591 = vmatprep.subr.bf16.mxu1 %v11671_v10  ;;  %v11726_v10 = vld [vmem:[%s12434_s15 + $0x1470] ss:$72 sps:$4 sm:$0xff]  }
 0x4ef   : > { %8551 = vmatpush2.bf16.msra.mxu0 %v11666_v14  ;;  %v11734_v14 = vld [vmem:[%s12434_s15 + $0x13e4] ss:$72 sps:$4 sm:$0xff]  }
 0x4f0   : > { %8552 = vmatprep.subr.bf16.mxu0 %v11674_v17  ;;  %v11729_v17 = vld [vmem:[%s12434_s15 + $0x278] ss:$72 sps:$4 sm:$0xff]  }
 0x4f1   : > { %8592 = vmatpush2.bf16.msra.mxu1 %v11669_v18  ;;  %v11737_v18 = vld [vmem:[%s12434_s15 + $0x1ec] ss:$72 sps:$4 sm:$0xff]  }
 0x4f2   : > { %8593 = vmatprep.subr.bf16.mxu1 %v11677_v21  ;;  %v11732_v21 = vld [vmem:[%s12434_s15 + $0x13e0] ss:$72 sps:$4 sm:$0xff]  }
 0x4f3   : > { %8553 = vmatpush2.bf16.msra.mxu0 %v11672_v22  ;;  %v11740_v22 = vld [vmem:[%s12434_s15 + $0x1354] ss:$72 sps:$4 sm:$0xff]  }
 0x4f4   : > { %8554 = vmatprep.subr.bf16.mxu0 %v11680_v13  ;;  %v11735_v13 = vld [vmem:[%s12434_s15 + $0x1e8] ss:$72 sps:$4 sm:$0xff]  }
 0x4f5   : > { %8594 = vmatpush2.bf16.msra.mxu1 %v11675_v38  ;;  %v11743_v38 = vld [vmem:[%s12434_s15 + $0x15c] ss:$72 sps:$4 sm:$0xff]  }
 0x4f6   : > { %8595 = vmatprep.subr.bf16.mxu1 %v11683_v23  ;;  %v11738_v23 = vld [vmem:[%s12434_s15 + $0x1350] ss:$72 sps:$4 sm:$0xff]  }
 0x4f7   : > { %8555 = vmatpush2.bf16.msra.mxu0 %v11678_v45  ;;  %v11746_v45 = vld [vmem:[%s12434_s15 + $0x12c4] ss:$72 sps:$4 sm:$0xff]  }
 0x4f8   : > { %8556 = vmatprep.subr.bf16.mxu0 %v11686_v24  ;;  %v11741_v24 = vld [vmem:[%s12434_s15 + $0x158] ss:$72 sps:$4 sm:$0xff]  }
 0x4f9   : > { %8596 = vmatpush2.bf16.msra.mxu1 %v11681_v25  ;;  %v11749_v25 = vld [vmem:[%s12434_s15 + $0xcc] ss:$72 sps:$4 sm:$0xff]  }
 0x4fa   : > { %8597 = vmatprep.subr.bf16.mxu1 %v11689_v26  ;;  %v11744_v26 = vld [vmem:[%s12434_s15 + $0x12c0] ss:$72 sps:$4 sm:$0xff]  }
 0x4fb   : > { %8557 = vmatpush2.bf16.msra.mxu0 %v11684_v27  ;;  %v11752_v27 = vld [vmem:[%s12434_s15 + $0x1234] ss:$72 sps:$4 sm:$0xff]  }
 0x4fc   : > { %8558 = vmatprep.subr.bf16.mxu0 %v11692_v28  ;;  %v11747_v28 = vld [vmem:[%s12434_s15 + $0xc8] ss:$72 sps:$4 sm:$0xff]  }
 0x4fd   : > { %8598 = vmatpush2.bf16.msra.mxu1 %v11687_v29  ;;  %v11755_v29 = vld [vmem:[%s12434_s15 + $0x3c] ss:$72 sps:$4 sm:$0xff]  }
 0x4fe   : > { %8599 = vmatprep.subr.bf16.mxu1 %v11695_v30  ;;  %v11750_v30 = vld [vmem:[%s12434_s15 + $0x1230] ss:$72 sps:$4 sm:$0xff]  }
 0x4ff   : > { %8559 = vmatpush2.bf16.msra.mxu0 %v11690_v31  ;;  %v11758_v31 = vld [vmem:[%s12434_s15 + $0x1aa4] ss:$72 sps:$4 sm:$0xff]  }
 0x500   : > { %8560 = vmatprep.subr.bf16.mxu0 %v11698_v32  ;;  %v11753_v32 = vld [vmem:[%s12434_s15 + $0x38] ss:$72 sps:$4 sm:$0xff]  }
 0x501   : > { %8600 = vmatpush2.bf16.msra.mxu1 %v11693_v8  ;;  %v11761_v8 = vld [vmem:[%s12434_s15 + $0x8ac] ss:$72 sps:$4 sm:$0xff]  }
 0x502   : > { %8601 = vmatprep.subr.bf16.mxu1 %v11701_v33  ;;  %v11756_v33 = vld [vmem:[%s12434_s15 + $0x1aa0] ss:$72 sps:$4 sm:$0xff]  }
 0x503   : > { %8561 = vmatpush2.bf16.msra.mxu0 %v11696_v35  ;;  %v11764_v35 = vld [vmem:[%s12434_s15 + $0x1a14] ss:$72 sps:$4 sm:$0xff]  }
 0x504   : > { %8562 = vmatprep.subr.bf16.mxu0 %v11704_v57  ;;  %v11759_v57 = vld [vmem:[%s12434_s15 + $0x8a8] ss:$72 sps:$4 sm:$0xff]  }
 0x505   : > { %8602 = vmatpush2.bf16.msra.mxu1 %v11699_v4  ;;  %v11767_v4 = vld [vmem:[%s12434_s15 + $0x81c] ss:$72 sps:$4 sm:$0xff]  }
 0x506   : > { %8603 = vmatprep.subr.bf16.mxu1 %v11707_v36  ;;  %v11762_v36 = vld [vmem:[%s12434_s15 + $0x1a10] ss:$72 sps:$4 sm:$0xff]  }
 0x507   : > { %8563 = vmatpush2.bf16.msra.mxu0 %v11702_v1  ;;  %v11770_v1 = vld [vmem:[%s12434_s15 + $0x1984] ss:$72 sps:$4 sm:$0xff]  }
 0x508   : > { %8614 = vmatprep.subr.bf16.mxu0 %v11710_v11  ;;  %v11765_v11 = vld [vmem:[%s12434_s15 + $0x818] ss:$72 sps:$4 sm:$0xff]  }
 0x509   : > { %8604 = vmatpush2.bf16.msra.mxu1 %v11705_v2  ;;  %v11773_v2 = vld [vmem:[%s12434_s15 + $0x78c] ss:$72 sps:$4 sm:$0xff]  }
 0x50a   : > { %v13340_v47 = vpop.f32.mrf.mxu0  ;;  %8565 = vmatmul.mubr.bf16.vlgmr.msra.gmra.mxu0 %v12624_v9  ;;  %8655 = vmatprep.subr.bf16.mxu1 %v11713_v41  ;;  %v11768_v41 = vld [vmem:[%s12434_s15 + $0x1980] ss:$72 sps:$4 sm:$0xff]  }
 0x50b   : > { %8615 = vmatpush1.bf16.msra.mxu0 %v11708_v6  ;;  %8646 = vmatprep.mubr.bf16.mxu0 %v12660_v34  ;;  %v11776_v6 = vld [vmem:[%s12434_s15 + $0x18f4] ss:$72 sps:$4 sm:$0xff]  }
 0x50c   : > { %v13346_v53 = vpop.f32.mrf.mxu0  ;;  %v13348_v54 = vpop.f32.mrf.mxu1  ;;  %8606 = vmatmul.mubr.bf16.vlgmr.msra.gmra.mxu1 %v12628_v12  ;;  %8616 = vmatprep.subr.bf16.mxu0 %v11716_v42  ;;  %v11771_v42 = vld [vmem:[%s12434_s15 + $0x788] ss:$72 sps:$4 sm:$0xff]  }
 0x50d   : > { %8656 = vmatpush1.bf16.msra.mxu1 %v11711_v44  ;;  %8687 = vmatprep.mubr.bf16.mxu1 %v12591_v46  ;;  %v11779_v44 = vld [vmem:[%s12434_s15 + $0x6fc] ss:$72 sps:$4 sm:$0xff]  }
 0x50e   : > { %v8324_v59 = vpop.f32.mrf.mxu0  ;;  %v13354_v62 = vpop.f32.mrf.mxu1  ;;  %8657 = vmatprep.subr.bf16.mxu1 %v11719_v49  ;;  %v11774_v49 = vld [vmem:[%s12434_s15 + $0x18f0] ss:$72 sps:$4 sm:$0xff]  }
 0x50f   : > { %8617 = vmatpush1.bf16.msra.mxu0 %v11714_v50  ;;  %v11782_v50 = vld [vmem:[%s12434_s15 + $0x1864] ss:$72 sps:$4 sm:$0xff]   ;;  %v11780_v59 = vld [vmem:[%s12434_s15 + $0x1860] ss:$72 sps:$4 sm:$0xff]  }
 0x510   : > { %v8325_v61 = vpop.f32.mrf.mxu0  ;;  %8618 = vmatprep.subr.bf16.mxu0 %v11722_v55  ;;  %v8365_v52 = vpop.f32.mrf.mxu1  ;;  %v11777_v55 = vld [vmem:[%s12434_s15 + $0x6f8] ss:$72 sps:$4 sm:$0xff]  }
 0x511   : > { %8658 = vmatpush1.bf16.msra.mxu1 %v11717_v58  ;;  %v11785_v58 = vld [vmem:[%s12434_s15 + $0x66c] ss:$72 sps:$4 sm:$0xff]   ;;  %v11791_v61 = vld [vmem:[%s12434_s15 + $0x5dc] ss:$72 sps:$4 sm:$0xff]  }
 0x512   : > { %8659 = vmatprep.subr.bf16.mxu1 %v11725_v63  ;;  %v8366_v40 = vpop.f32.mrf.mxu1  ;;  %v11788_v63 = vld [vmem:[%s12434_s15 + $0x17d4] ss:$72 sps:$4 sm:$0xff]   ;;  %v11794_v52 = vld [vmem:[%s12434_s15 + $0x1744] ss:$72 sps:$4 sm:$0xff]  }
 0x513   : > { %8619 = vmatpush1.bf16.msra.mxu0 %v11720_v0  ;;  %v11783_v0 = vld [vmem:[%s12434_s15 + $0x668] ss:$72 sps:$4 sm:$0xff]   ;;  %v11797_v40 = vld [vmem:[%s12434_s15 + $0x54c] ss:$72 sps:$4 sm:$0xff]  }
 0x514   : > { %8620 = vmatprep.subr.bf16.mxu0 %v11728_v5  ;;  %v11786_v5 = vld [vmem:[%s12434_s15 + $0x17d0] ss:$72 sps:$4 sm:$0xff]  }
 0x515   : > { %8660 = vmatpush1.bf16.msra.mxu1 %v11723_v3  ;;  %v11789_v3 = vld [vmem:[%s12434_s15 + $0x5d8] ss:$72 sps:$4 sm:$0xff]  }
 0x516   : > { %8661 = vmatprep.subr.bf16.mxu1 %v11731_v37  ;;  %v13405_v37 = vld [vmem:[%s12446_s26 + $0x8] sm:$0xff] }
 0x517   : > { %8621 = vmatpush1.bf16.msra.mxu0 %v11726_v10  ;;  %v11792_v10 = vld [vmem:[%s12434_s15 + $0x1740] ss:$72 sps:$4 sm:$0xff]  }
 0x518   : > { %8622 = vmatprep.subr.bf16.mxu0 %v11734_v14  ;;  %v11800_v14 = vld [vmem:[%s12434_s15 + $0x16b4] ss:$72 sps:$4 sm:$0xff]  }
 0x519   : > { %8662 = vmatpush1.bf16.msra.mxu1 %v11729_v17  ;;  %v3419_v17 = vrot.slane %v13405_v37, %v12915_v39 }
 0x51a   : > { %8663 = vmatprep.subr.bf16.mxu1 %v11737_v18  ;;  %v11795_v18 = vld [vmem:[%s12434_s15 + $0x548] ss:$72 sps:$4 sm:$0xff]  }
 0x51b   : > { %8623 = vmatpush1.bf16.msra.mxu0 %v11732_v21  ;;  %v11803_v21 = vld [vmem:[%s12434_s15 + $0x4bc] ss:$72 sps:$4 sm:$0xff]  }
 0x51c   : > { %8624 = vmatprep.subr.bf16.mxu0 %v11740_v22  ;;  %v3423_v22 = vrot.slane %v13405_v37, %v12920_v43 }
 0x51d   : > { %8664 = vmatpush1.bf16.msra.mxu1 %v11735_v13  ;;  %v11798_v13 = vld [vmem:[%s12434_s15 + $0x16b0] ss:$72 sps:$4 sm:$0xff]  }
 0x51e   : > { %8665 = vmatprep.subr.bf16.mxu1 %v11743_v38  ;;  %v11806_v38 = vld [vmem:[%s12434_s15 + $0xd2c] ss:$72 sps:$4 sm:$0xff]  }
 0x51f   : > { %8625 = vmatpush1.bf16.msra.mxu0 %v11738_v23  ;;  %v8321_v23 = vadd.f32 %v13340_v47, %v3419_v17  ;;  %v11815_v47 = vld [vmem:[%s12434_s15 + $0x159c] ss:$72 sps:$4 sm:$0xff]   ;;  %v11840_v17 = vld [vmem:[%s12434_s15 + $0x9c8] ss:$72 sps:$4 sm:$0xff]  }
 0x520   : > { %8626 = vmatprep.subr.bf16.mxu0 %v11746_v45  ;;  %v11801_v45 = vld [vmem:[%s12434_s15 + $0x4b8] ss:$72 sps:$4 sm:$0xff]  }
 0x521   : > { %8666 = vmatpush1.bf16.msra.mxu1 %v11741_v24  ;;  %v11809_v24 = vld [vmem:[%s12434_s15 + $0x162c] ss:$72 sps:$4 sm:$0xff]  }
 0x522   : > { %8667 = vmatprep.subr.bf16.mxu1 %v11749_v25  ;;  %v8323_v25 = vadd.f32 %v13346_v53, %v3423_v22  ;;  %v11810_v53 = vld [vmem:[%s12434_s15 + $0xc98] ss:$72 sps:$4 sm:$0xff]   ;;  %v11851_v22 = vld [vmem:[%s12434_s15 + $0x123c] ss:$72 sps:$4 sm:$0xff]  }
 0x523   : > { %8627 = vmatpush1.bf16.msra.mxu0 %v11744_v26  ;;  %v11804_v26 = vld [vmem:[%s12434_s15 + $0xd28] ss:$72 sps:$4 sm:$0xff]  }
 0x524   : > { %8628 = vmatprep.subr.bf16.mxu0 %v11752_v27  ;;  %v11812_v27 = vld [vmem:[%s12434_s15 + $0xc9c] ss:$72 sps:$4 sm:$0xff]  }
 0x525   : > { %8668 = vmatpush1.bf16.msra.mxu1 %v11747_v28  ;;  %v8362_v28 = vadd.f32 %v13348_v54, %v8321_v23  ;;  %v11818_v54 = vld [vmem:[%s12434_s15 + $0xc0c] ss:$72 sps:$4 sm:$0xff]   ;;  %v11849_v23 = vld [vmem:[%s12434_s15 + $0x1238] ss:$72 sps:$4 sm:$0xff]  }
 0x526   : > { %8669 = vmatprep.subr.bf16.mxu1 %v11755_v29  ;;  %v11807_v29 = vld [vmem:[%s12434_s15 + $0x1628] ss:$72 sps:$4 sm:$0xff]  }
 0x527   : > { %8629 = vmatpush1.bf16.msra.mxu0 %v11750_v30 }
 0x528   : > { %8630 = vmatprep.subr.bf16.mxu0 %v11758_v31  ;;  %v8364_v31 = vadd.f32 %v13354_v62, %v8323_v25  ;;  %v11813_v62 = vld [vmem:[%s12434_s15 + $0x1598] ss:$72 sps:$4 sm:$0xff]   ;;  %v11860_v25 = vld [vmem:[%s12434_s15 + $0x111c] ss:$72 sps:$4 sm:$0xff]  }
 0x529   : > { %8670 = vmatpush1.bf16.msra.mxu1 %v11753_v32 }
 0x52a   : > { %8671 = vmatprep.subr.bf16.mxu1 %v11761_v8 }
 0x52b   : > { %8631 = vmatpush2.bf16.msra.mxu0 %v11756_v33 }
 0x52c   : > { %8632 = vmatprep.subr.bf16.mxu0 %v11764_v35 }
 0x52d   : > { %8672 = vmatpush2.bf16.msra.mxu1 %v11759_v57 }
 0x52e   : > { %8673 = vmatprep.subr.bf16.mxu1 %v11767_v4  ;;  %v11821_v4 = vld [vmem:[%s12434_s15 + $0x150c] ss:$72 sps:$4 sm:$0xff]  }
 0x52f   : > { %8633 = vmatpush2.bf16.msra.mxu0 %v11762_v36 }
 0x530   : > { %8634 = vmatprep.subr.bf16.mxu0 %v11770_v1  ;;  %v11816_v1 = vld [vmem:[%s12434_s15 + $0xc08] ss:$72 sps:$4 sm:$0xff]  }
 0x531   : > { %8674 = vmatpush2.bf16.msra.mxu1 %v11765_v11 }
 0x532   : > { %8675 = vmatprep.subr.bf16.mxu1 %v11773_v2  ;;  %v11824_v2 = vld [vmem:[%s12434_s15 + $0xb7c] ss:$72 sps:$4 sm:$0xff]  }
 0x533   : > { %8635 = vmatpush2.bf16.msra.mxu0 %v11768_v41 }
 0x534   : > { %8636 = vmatprep.subr.bf16.mxu0 %v11776_v6  ;;  %v11819_v6 = vld [vmem:[%s12434_s15 + $0x1508] ss:$72 sps:$4 sm:$0xff]  }
 0x535   : > { %8676 = vmatpush2.bf16.msra.mxu1 %v11771_v42  ;;  %v11827_v42 = vld [vmem:[%s12434_s15 + $0x147c] ss:$72 sps:$4 sm:$0xff]  }
 0x536   : > { %8677 = vmatprep.subr.bf16.mxu1 %v11779_v44 }
 0x537   : > { %8637 = vmatpush2.bf16.msra.mxu0 %v11774_v49  ;;  %v11822_v49 = vld [vmem:[%s12434_s15 + $0xb78] ss:$72 sps:$4 sm:$0xff]  }
 0x538   : > { %8638 = vmatprep.subr.bf16.mxu0 %v11782_v50  ;;  %v11830_v50 = vld [vmem:[%s12434_s15 + $0xaec] ss:$72 sps:$4 sm:$0xff]  }
 0x539   : > { %8678 = vmatpush2.bf16.msra.mxu1 %v11777_v55  ;;  %v11825_v55 = vld [vmem:[%s12434_s15 + $0x1478] ss:$72 sps:$4 sm:$0xff]  }
 0x53a   : > { %8679 = vmatprep.subr.bf16.mxu1 %v11785_v58  ;;  %v11833_v58 = vld [vmem:[%s12434_s15 + $0x13ec] ss:$72 sps:$4 sm:$0xff]  }
 0x53b   : > { %8639 = vmatpush2.bf16.msra.mxu0 %v11780_v59  ;;  %v11828_v59 = vld [vmem:[%s12434_s15 + $0xae8] ss:$72 sps:$4 sm:$0xff]  }
 0x53c   : > { %8640 = vmatprep.subr.bf16.mxu0 %v11788_v63  ;;  %v11836_v63 = vld [vmem:[%s12434_s15 + $0xa5c] ss:$72 sps:$4 sm:$0xff]  }
 0x53d   : > { %8680 = vmatpush2.bf16.msra.mxu1 %v11783_v0  ;;  %v11831_v0 = vld [vmem:[%s12434_s15 + $0x13e8] ss:$72 sps:$4 sm:$0xff]  }
 0x53e   : > { %8681 = vmatprep.subr.bf16.mxu1 %v11791_v61 }
 0x53f   : > { %8641 = vmatpush2.bf16.msra.mxu0 %v11786_v5  ;;  %v11839_v5 = vld [vmem:[%s12434_s15 + $0x135c] ss:$72 sps:$4 sm:$0xff]  }
 0x540   : > { %8642 = vmatprep.subr.bf16.mxu0 %v11794_v52  ;;  %v11834_v52 = vld [vmem:[%s12434_s15 + $0xa58] ss:$72 sps:$4 sm:$0xff]  }
 0x541   : > { %8682 = vmatpush2.bf16.msra.mxu1 %v11789_v3 }
 0x542   : > { %8683 = vmatprep.subr.bf16.mxu1 %v11797_v40  ;;  %v11842_v40 = vld [vmem:[%s12434_s15 + $0x9cc] ss:$72 sps:$4 sm:$0xff]  }
 0x543   : > { %8643 = vmatpush2.bf16.msra.mxu0 %v11792_v10  ;;  %v11837_v10 = vld [vmem:[%s12434_s15 + $0x1358] ss:$72 sps:$4 sm:$0xff]  }
 0x544   : > { %8644 = vmatprep.subr.bf16.mxu0 %v11800_v14  ;;  %v11845_v14 = vld [vmem:[%s12434_s15 + $0x12cc] ss:$72 sps:$4 sm:$0xff]  }
 0x545   : > { %8684 = vmatpush2.bf16.msra.mxu1 %v11795_v18  ;;  %v11848_v18 = vld [vmem:[%s12434_s15 + $0x93c] ss:$72 sps:$4 sm:$0xff]  }
 0x546   : > { %8685 = vmatprep.subr.bf16.mxu1 %v11803_v21  ;;  %v11843_v21 = vld [vmem:[%s12434_s15 + $0x12c8] ss:$72 sps:$4 sm:$0xff]  }
 0x547   : > { %8645 = vmatpush2.bf16.msra.mxu0 %v11798_v13  ;;  %v11846_v13 = vld [vmem:[%s12434_s15 + $0x938] ss:$72 sps:$4 sm:$0xff]  }
 0x548   : > { %8696 = vmatprep.subr.bf16.mxu0 %v11806_v38  ;;  %v11854_v38 = vld [vmem:[%s12434_s15 + $0x11ac] ss:$72 sps:$4 sm:$0xff]  }
 0x549   : > { %8686 = vmatpush2.bf16.msra.mxu1 %v11801_v45  ;;  %v11857_v45 = vld [vmem:[%s12434_s15 + $0x1aac] ss:$72 sps:$4 sm:$0xff]  }
 0x54a   : > { %v8402_v30 = vpop.f32.mrf.mxu0  ;;  %8647 = vmatmul.mubr.bf16.vlgmr.msra.gmra.mxu0 %v12704_v19  ;;  %8737 = vmatprep.subr.bf16.mxu1 %v11809_v24  ;;  %v11852_v24 = vld [vmem:[%s12434_s15 + $0x11a8] ss:$72 sps:$4 sm:$0xff]  }
 0x54b   : > { %v8403_v32 = vadd.f32 %v8402_v30, %v8362_v28  ;;  %8697 = vmatpush1.bf16.msra.mxu0 %v11804_v26  ;;  %8728 = vmatprep.mubr.bf16.mxu0 %v12599_v51  ;;  %v11855_v26 = vld [vmem:[%s12434_s15 + $0x1aa8] ss:$72 sps:$4 sm:$0xff]   ;;  %v11858_v28 = vld [vmem:[%s12434_s15 + $0x1118] ss:$72 sps:$4 sm:$0xff]  }
 0x54c   : > { %v8404_v8 = vpop.f32.mrf.mxu0  ;;  %8688 = vmatmul.mubr.bf16.vlgmr.msra.gmra.mxu1 %v12624_v9  ;;  %8698 = vmatprep.subr.bf16.mxu0 %v11812_v27  ;;  %v13433_v33 = vpop.f32.mrf.mxu1  ;;  %v11863_v27 = vld [vmem:[%s12434_s15 + $0x1a1c] ss:$72 sps:$4 sm:$0xff]   ;;  %v11861_v30 = vld [vmem:[%s12434_s15 + $0x1a18] ss:$72 sps:$4 sm:$0xff]  }
 0x54d   : > { %12060 = vtanh.f32 %v8403_v32  ;;  %v8405_v35 = vadd.f32 %v8404_v8, %v8364_v31  ;;  %8738 = vmatpush1.bf16.msra.mxu1 %v11807_v29  ;;  %8769 = vmatprep.mubr.bf16.mxu1 %v12660_v34  ;;  %v11866_v29 = vld [vmem:[%s12434_s15 + $0x108c] ss:$72 sps:$4 sm:$0xff]   ;;  %v11864_v31 = vld [vmem:[%s12434_s15 + $0x1088] ss:$72 sps:$4 sm:$0xff]   ;;  %v11872_v32 = vld [vmem:[%s12434_s15 + $0xffc] ss:$72 sps:$4 sm:$0xff]  }
 0x54e   : > { %v8406_v57 = vpop.f32.mrf.mxu0  ;;  %8739 = vmatprep.subr.bf16.mxu1 %v11815_v47  ;;  %v13438_v36 = vpop.f32.mrf.mxu1  ;;  %v11869_v47 = vld [vmem:[%s12434_s15 + $0x198c] ss:$72 sps:$4 sm:$0xff]   ;;  %v11875_v8 = vld [vmem:[%s12434_s15 + $0x18fc] ss:$72 sps:$4 sm:$0xff]  }
 0x54f   : > { %12062 = vtanh.f32 %v8405_v35  ;;  %8699 = vmatpush1.bf16.msra.mxu0 %v11810_v53  ;;  %v11867_v53 = vld [vmem:[%s12434_s15 + $0x1988] ss:$72 sps:$4 sm:$0xff]   ;;  %v11878_v35 = vld [vmem:[%s12434_s15 + $0xf6c] ss:$72 sps:$4 sm:$0xff]  }
 0x550   : > { %v8407_v11 = vpop.f32.mrf.mxu0  ;;  %8700 = vmatprep.subr.bf16.mxu0 %v11818_v54  ;;  %v8447_v41 = vpop.f32.mrf.mxu1  ;;  %v11870_v54 = vld [vmem:[%s12434_s15 + $0xff8] ss:$72 sps:$4 sm:$0xff]   ;;  %v11881_v57 = vld [vmem:[%s12434_s15 + $0x186c] ss:$72 sps:$4 sm:$0xff]  }
 0x551   : > { %8740 = vmatpush1.bf16.msra.mxu1 %v11813_v62  ;;  %v11873_v62 = vld [vmem:[%s12434_s15 + $0x18f8] ss:$72 sps:$4 sm:$0xff]   ;;  %v11879_v11 = vld [vmem:[%s12434_s15 + $0x1868] ss:$72 sps:$4 sm:$0xff]  }
 0x552   : > { %8741 = vmatprep.subr.bf16.mxu1 %v11821_v4  ;;  %v8448_v44 = vpop.f32.mrf.mxu1  ;;  %v11876_v4 = vld [vmem:[%s12434_s15 + $0xf68] ss:$72 sps:$4 sm:$0xff]   ;;  %v11882_v41 = vld [vmem:[%s12434_s15 + $0xed8] ss:$72 sps:$4 sm:$0xff]  }
 0x553   : > { %8701 = vmatpush1.bf16.msra.mxu0 %v11816_v1  ;;  %v11884_v1 = vld [vmem:[%s12434_s15 + $0xedc] ss:$72 sps:$4 sm:$0xff]   ;;  %v11893_v44 = vld [vmem:[%s12434_s15 + $0x174c] ss:$72 sps:$4 sm:$0xff]  }
 0x554   : > { %8702 = vmatprep.subr.bf16.mxu0 %v11824_v2  ;;  %v11887_v2 = vld [vmem:[%s12434_s15 + $0x17dc] ss:$72 sps:$4 sm:$0xff]  }
 0x555   : > { %8742 = vmatpush1.bf16.msra.mxu1 %v11819_v6  ;;  %v11890_v6 = vld [vmem:[%s12434_s15 + $0xe4c] ss:$72 sps:$4 sm:$0xff]  }
 0x556   : > { %8743 = vmatprep.subr.bf16.mxu1 %v11827_v42  ;;  %v11885_v42 = vld [vmem:[%s12434_s15 + $0x17d8] ss:$72 sps:$4 sm:$0xff]  }
 0x557   : > { %8703 = vmatpush1.bf16.msra.mxu0 %v11822_v49  ;;  %v11888_v49 = vld [vmem:[%s12434_s15 + $0xe48] ss:$72 sps:$4 sm:$0xff]  }
 0x558   : > { %8704 = vmatprep.subr.bf16.mxu0 %v11830_v50  ;;  %v11896_v50 = vld [vmem:[%s12434_s15 + $0xdbc] ss:$72 sps:$4 sm:$0xff]  }
 0x559   : > { %8744 = vmatpush1.bf16.msra.mxu1 %v11825_v55  ;;  %v11891_v55 = vld [vmem:[%s12434_s15 + $0x1748] ss:$72 sps:$4 sm:$0xff]  }
 0x55a   : > { %v12061_v61 = vpop.eup %12060  ;;  %8745 = vmatprep.subr.bf16.mxu1 %v11833_v58  ;;  %v11899_v58 = vld [vmem:[%s12434_s15 + $0x16bc] ss:$72 sps:$4 sm:$0xff]  }
 0x55b   : > { %8927 = vst [vmem:[%s12444_s27 + $0x40] sm:$0xff] %v12061_v61  ;;  %8705 = vmatpush1.bf16.msra.mxu0 %v11828_v59  ;;  %v3427_v59 = vrot.slane %v13405_v37, %v3394_v16  ;;  %v3431_v61 = vrot.slane %v13405_v37, %v3398_v20  ;;  %v11908_v16 = vld [vmem:[%s12434_s15 + $0x3a4] ss:$72 sps:$4 sm:$0xff]  }
 0x55c   : > { %v12063_v3 = vpop.eup %12062  ;;  %8706 = vmatprep.subr.bf16.mxu0 %v11836_v63  ;;  %v11894_v63 = vld [vmem:[%s12434_s15 + $0xdb8] ss:$72 sps:$4 sm:$0xff]   ;;  %v11911_v20 = vld [vmem:[%s12434_s15 + $0xca4] ss:$72 sps:$4 sm:$0xff]  }
 0x55d   : > { %8928 = vst [vmem:[%s12444_s27 + $0x48] sm:$0xff] %v12063_v3  ;;  %8746 = vmatpush1.bf16.msra.mxu1 %v11831_v0  ;;  %v11902_v0 = vld [vmem:[%s12434_s15 + $0x434] ss:$72 sps:$4 sm:$0xff]   ;;  %v8444_v3 = vadd.f32 %v13433_v33, %v3427_v59  ;;  %v11945_v59 = vld [vmem:[%s12434_s15 + $0x940] ss:$72 sps:$4 sm:$0xff]  }
 0x55e   : > { %8747 = vmatprep.subr.bf16.mxu1 %v11839_v5  ;;  %v11897_v5 = vld [vmem:[%s12434_s15 + $0x16b8] ss:$72 sps:$4 sm:$0xff]  }
 0x55f   : > { %8707 = vmatpush1.bf16.msra.mxu0 %v11834_v52  ;;  %v11905_v52 = vld [vmem:[%s12434_s15 + $0xd34] ss:$72 sps:$4 sm:$0xff]  }
 0x560   : > { %8708 = vmatprep.subr.bf16.mxu0 %v11842_v40  ;;  %v11900_v40 = vld [vmem:[%s12434_s15 + $0x430] ss:$72 sps:$4 sm:$0xff]  }
 0x561   : > { %8748 = vmatpush1.bf16.msra.mxu1 %v11837_v10  ;;  %v8446_v10 = vadd.f32 %v13438_v36, %v3431_v61  ;;  %v11914_v36 = vld [vmem:[%s12434_s15 + $0x314] ss:$72 sps:$4 sm:$0xff]   ;;  %v11956_v61 = vld [vmem:[%s12434_s15 + $0x824] ss:$72 sps:$4 sm:$0xff]  }
 0x562   : > { %8749 = vmatprep.subr.bf16.mxu1 %v11845_v14  ;;  %v11903_v14 = vld [vmem:[%s12434_s15 + $0xd30] ss:$72 sps:$4 sm:$0xff]  }
 0x563   : > { %8709 = vmatpush1.bf16.msra.mxu0 %v11840_v17 }
 0x564   : > { %8710 = vmatprep.subr.bf16.mxu0 %v11848_v18 }
 0x565   : > { %8750 = vmatpush1.bf16.msra.mxu1 %v11843_v21  ;;  %v11906_v21 = vld [vmem:[%s12434_s15 + $0x3a0] ss:$72 sps:$4 sm:$0xff]  }
 0x566   : > { %8751 = vmatprep.subr.bf16.mxu1 %v11851_v22 }
 0x567   : > { %8711 = vmatpush1.bf16.msra.mxu0 %v11846_v13 }
 0x568   : > { %8712 = vmatprep.subr.bf16.mxu0 %v11854_v38 }
 0x569   : > { %8752 = vmatpush1.bf16.msra.mxu1 %v11849_v23  ;;  %v11909_v23 = vld [vmem:[%s12434_s15 + $0xca0] ss:$72 sps:$4 sm:$0xff]  }
 0x56a   : > { %8753 = vmatprep.subr.bf16.mxu1 %v11857_v45 }
 0x56b   : > { %8713 = vmatpush2.bf16.msra.mxu0 %v11852_v24 }
 0x56c   : > { %8714 = vmatprep.subr.bf16.mxu0 %v11860_v25 }
 0x56d   : > { %8754 = vmatpush2.bf16.msra.mxu1 %v11855_v26  ;;  %v11912_v26 = vld [vmem:[%s12434_s15 + $0x310] ss:$72 sps:$4 sm:$0xff]  }
 0x56e   : > { %8755 = vmatprep.subr.bf16.mxu1 %v11863_v27 }
 0x56f   : > { %8715 = vmatpush2.bf16.msra.mxu0 %v11858_v28  ;;  %v11920_v28 = vld [vmem:[%s12434_s15 + $0x284] ss:$72 sps:$4 sm:$0xff]  }
 0x570   : > { %8716 = vmatprep.subr.bf16.mxu0 %v11866_v29 }
 0x571   : > { %8756 = vmatpush2.bf16.msra.mxu1 %v11861_v30  ;;  %v11923_v30 = vld [vmem:[%s12434_s15 + $0xb84] ss:$72 sps:$4 sm:$0xff]  }
 0x572   : > { %8757 = vmatprep.subr.bf16.mxu1 %v11869_v47 }
 0x573   : > { %8717 = vmatpush2.bf16.msra.mxu0 %v11864_v31  ;;  %v11918_v31 = vld [vmem:[%s12434_s15 + $0x280] ss:$72 sps:$4 sm:$0xff]  }
 0x574   : > { %8718 = vmatprep.subr.bf16.mxu0 %v11872_v32  ;;  %v11926_v32 = vld [vmem:[%s12434_s15 + $0x1f4] ss:$72 sps:$4 sm:$0xff]  }
 0x575   : > { %8758 = vmatpush2.bf16.msra.mxu1 %v11867_v53  ;;  %v11921_v53 = vld [vmem:[%s12434_s15 + $0xb80] ss:$72 sps:$4 sm:$0xff]  }
 0x576   : > { %8759 = vmatprep.subr.bf16.mxu1 %v11875_v8  ;;  %v11929_v8 = vld [vmem:[%s12434_s15 + $0xaf4] ss:$72 sps:$4 sm:$0xff]  }
 0x577   : > { %8719 = vmatpush2.bf16.msra.mxu0 %v11870_v54  ;;  %v11924_v54 = vld [vmem:[%s12434_s15 + $0x1f0] ss:$72 sps:$4 sm:$0xff]  }
 0x578   : > { %8720 = vmatprep.subr.bf16.mxu0 %v11878_v35  ;;  %v11932_v35 = vld [vmem:[%s12434_s15 + $0x164] ss:$72 sps:$4 sm:$0xff]  }
 0x579   : > { %8760 = vmatpush2.bf16.msra.mxu1 %v11873_v62  ;;  %v11927_v62 = vld [vmem:[%s12434_s15 + $0xaf0] ss:$72 sps:$4 sm:$0xff]  }
 0x57a   : > { %8761 = vmatprep.subr.bf16.mxu1 %v11881_v57  ;;  %v11935_v57 = vld [vmem:[%s12434_s15 + $0xa64] ss:$72 sps:$4 sm:$0xff]  }
 0x57b   : > { %8721 = vmatpush2.bf16.msra.mxu0 %v11876_v4  ;;  %v11930_v4 = vld [vmem:[%s12434_s15 + $0x160] ss:$72 sps:$4 sm:$0xff]  }
 0x57c   : > { %8722 = vmatprep.subr.bf16.mxu0 %v11884_v1 }
 0x57d   : > { %8762 = vmatpush2.bf16.msra.mxu1 %v11879_v11  ;;  %v11938_v11 = vld [vmem:[%s12434_s15 + $0xd4] ss:$72 sps:$4 sm:$0xff]  }
 0x57e   : > { %8763 = vmatprep.subr.bf16.mxu1 %v11887_v2  ;;  %v11933_v2 = vld [vmem:[%s12434_s15 + $0xa60] ss:$72 sps:$4 sm:$0xff]  }
 0x57f   : > { %8723 = vmatpush2.bf16.msra.mxu0 %v11882_v41 }
 0x580   : > { %8724 = vmatprep.subr.bf16.mxu0 %v11890_v6  ;;  %v11941_v6 = vld [vmem:[%s12434_s15 + $0x9d4] ss:$72 sps:$4 sm:$0xff]  }
 0x581   : > { %8764 = vmatpush2.bf16.msra.mxu1 %v11885_v42  ;;  %v11936_v42 = vld [vmem:[%s12434_s15 + $0xd0] ss:$72 sps:$4 sm:$0xff]  }
 0x582   : > { %8765 = vmatprep.subr.bf16.mxu1 %v11893_v44  ;;  %v11944_v44 = vld [vmem:[%s12434_s15 + $0x44] ss:$72 sps:$4 sm:$0xff]  }
 0x583   : > { %8725 = vmatpush2.bf16.msra.mxu0 %v11888_v49  ;;  %v11939_v49 = vld [vmem:[%s12434_s15 + $0x9d0] ss:$72 sps:$4 sm:$0xff]  }
 0x584   : > { %8726 = vmatprep.subr.bf16.mxu0 %v11896_v50  ;;  %v11947_v50 = vld [vmem:[%s12434_s15 + $0x944] ss:$72 sps:$4 sm:$0xff]  }
 0x585   : > { %8766 = vmatpush2.bf16.msra.mxu1 %v11891_v55  ;;  %v11942_v55 = vld [vmem:[%s12434_s15 + $0x40] ss:$72 sps:$4 sm:$0xff]  }
 0x586   : > { %8767 = vmatprep.subr.bf16.mxu1 %v11899_v58  ;;  %v11950_v58 = vld [vmem:[%s12434_s15 + $0x8b4] ss:$72 sps:$4 sm:$0xff]  }
 0x587   : > { %8727 = vmatpush2.bf16.msra.mxu0 %v11894_v63  ;;  %v11953_v63 = vld [vmem:[%s12434_s15 + $0x11b4] ss:$72 sps:$4 sm:$0xff]  }
 0x588   : > { %8778 = vmatprep.subr.bf16.mxu0 %v11902_v0  ;;  %v11948_v0 = vld [vmem:[%s12434_s15 + $0x8b0] ss:$72 sps:$4 sm:$0xff]  }
 0x589   : > { %8768 = vmatpush2.bf16.msra.mxu1 %v11897_v5  ;;  %v11951_v5 = vld [vmem:[%s12434_s15 + $0x11b0] ss:$72 sps:$4 sm:$0xff]  }
 0x58a   : > { %v8484_v17 = vpop.f32.mrf.mxu0  ;;  %8729 = vmatmul.mubr.bf16.vlgmr.msra.gmra.mxu0 %v12628_v12  ;;  %8819 = vmatprep.subr.bf16.mxu1 %v11905_v52  ;;  %v11959_v52 = vld [vmem:[%s12434_s15 + $0x1124] ss:$72 sps:$4 sm:$0xff]  }
 0x58b   : > { %v8485_v18 = vadd.f32 %v8484_v17, %v8444_v3  ;;  %8779 = vmatpush1.bf16.msra.mxu0 %v11900_v40  ;;  %8810 = vmatprep.mubr.bf16.mxu0 %v12591_v46  ;;  %v11917_v46 = vld [vmem:[%s12434_s15 + $0xc14] ss:$72 sps:$4 sm:$0xff]   ;;  %v11954_v3 = vld [vmem:[%s12434_s15 + $0x820] ss:$72 sps:$4 sm:$0xff]   ;;  %v11968_v17 = vld [vmem:[%s12434_s15 + $0x704] ss:$72 sps:$4 sm:$0xff]  }
 0x58c   : > { %v8486_v33 = vpop.f32.mrf.mxu0  ;;  %v8525_v22 = vpop.f32.mrf.mxu1  ;;  %8770 = vmatmul.mubr.bf16.vlgmr.msra.gmra.mxu1 %v12704_v19  ;;  %8780 = vmatprep.subr.bf16.mxu0 %v11908_v16  ;;  %v11962_v40 = vld [vmem:[%s12434_s15 + $0x794] ss:$72 sps:$4 sm:$0xff]   ;;  %v11957_v16 = vld [vmem:[%s12434_s15 + $0x1120] ss:$72 sps:$4 sm:$0xff]  }
 0x58d   : > { %v8487_v13 = vadd.f32 %v8486_v33, %v8446_v10  ;;  %v8526_v38 = vadd.f32 %v8525_v22, %v8485_v18  ;;  %8820 = vmatpush1.bf16.msra.mxu1 %v11903_v14  ;;  %8851 = vmatprep.mubr.bf16.mxu1 %v12599_v51  ;;  %v11915_v51 = vld [vmem:[%s12434_s15 + $0xc10] ss:$72 sps:$4 sm:$0xff]   ;;  %v11965_v10 = vld [vmem:[%s12434_s15 + $0x1094] ss:$72 sps:$4 sm:$0xff]   ;;  %v11971_v18 = vld [vmem:[%s12434_s15 + $0x1004] ss:$72 sps:$4 sm:$0xff]  }
 0x58e   : > { %v8488_v45 = vpop.f32.mrf.mxu0  ;;  %v8527_v24 = vpop.f32.mrf.mxu1  ;;  %8821 = vmatprep.subr.bf16.mxu1 %v11911_v20  ;;  %v11960_v14 = vld [vmem:[%s12434_s15 + $0x790] ss:$72 sps:$4 sm:$0xff]   ;;  %v11974_v33 = vld [vmem:[%s12434_s15 + $0x674] ss:$72 sps:$4 sm:$0xff]   ;;  %v11969_v22 = vld [vmem:[%s12434_s15 + $0x1000] ss:$72 sps:$4 sm:$0xff]  }
 0x58f   : > { %12064 = vtanh.f32 %v8526_v38  ;;  %v8528_v25 = vadd.f32 %v8527_v24, %v8487_v13  ;;  %8781 = vmatpush1.bf16.msra.mxu0 %v11906_v21  ;;  %v11963_v20 = vld [vmem:[%s12434_s15 + $0x1090] ss:$72 sps:$4 sm:$0xff]   ;;  %v11966_v21 = vld [vmem:[%s12434_s15 + $0x700] ss:$72 sps:$4 sm:$0xff]   ;;  %v11980_v38 = vld [vmem:[%s12434_s15 + $0x5e4] ss:$72 sps:$4 sm:$0xff]  }
 0x590   : > { %v8489_v27 = vpop.f32.mrf.mxu0  ;;  %8782 = vmatprep.subr.bf16.mxu0 %v11914_v36  ;;  %v8529_v29 = vpop.f32.mrf.mxu1  ;;  %v11977_v36 = vld [vmem:[%s12434_s15 + $0xf74] ss:$72 sps:$4 sm:$0xff]   ;;  %v11972_v13 = vld [vmem:[%s12434_s15 + $0x670] ss:$72 sps:$4 sm:$0xff]   ;;  %v11983_v45 = vld [vmem:[%s12434_s15 + $0xee4] ss:$72 sps:$4 sm:$0xff]  }
 0x591   : > { %12066 = vtanh.f32 %v8528_v25  ;;  %8822 = vmatpush1.bf16.msra.mxu1 %v11909_v23  ;;  %v11975_v23 = vld [vmem:[%s12434_s15 + $0xf70] ss:$72 sps:$4 sm:$0xff]   ;;  %v11978_v24 = vld [vmem:[%s12434_s15 + $0x5e0] ss:$72 sps:$4 sm:$0xff]  }
 0x592   : > { %8823 = vmatprep.subr.bf16.mxu1 %v11917_v46  ;;  %v8530_v47 = vpop.f32.mrf.mxu1  ;;  %v11986_v46 = vld [vmem:[%s12434_s15 + $0x554] ss:$72 sps:$4 sm:$0xff]   ;;  %v11981_v25 = vld [vmem:[%s12434_s15 + $0xee0] ss:$72 sps:$4 sm:$0xff]   ;;  %v11984_v27 = vld [vmem:[%s12434_s15 + $0x550] ss:$72 sps:$4 sm:$0xff]  }
 0x593   : > { %8783 = vmatpush1.bf16.msra.mxu0 %v11912_v26  ;;  %v11989_v26 = vld [vmem:[%s12434_s15 + $0xe54] ss:$72 sps:$4 sm:$0xff]   ;;  %v11987_v29 = vld [vmem:[%s12434_s15 + $0xe50] ss:$72 sps:$4 sm:$0xff]  }
 0x594   : > { %8784 = vmatprep.subr.bf16.mxu0 %v11920_v28  ;;  %v11992_v28 = vld [vmem:[%s12434_s15 + $0x4c4] ss:$72 sps:$4 sm:$0xff]   ;;  %v11998_v47 = vld [vmem:[%s12434_s15 + $0x1634] ss:$72 sps:$4 sm:$0xff]  }
 0x595   : > { %8824 = vmatpush1.bf16.msra.mxu1 %v11915_v51  ;;  %v11995_v51 = vld [vmem:[%s12434_s15 + $0xdc4] ss:$72 sps:$4 sm:$0xff]  }
 0x596   : > { %8825 = vmatprep.subr.bf16.mxu1 %v11923_v30  ;;  %v11990_v30 = vld [vmem:[%s12434_s15 + $0x4c0] ss:$72 sps:$4 sm:$0xff]  }
 0x597   : > { %8785 = vmatpush1.bf16.msra.mxu0 %v11918_v31  ;;  %v11993_v31 = vld [vmem:[%s12434_s15 + $0xdc0] ss:$72 sps:$4 sm:$0xff]  }
 0x598   : > { %8786 = vmatprep.subr.bf16.mxu0 %v11926_v32  ;;  %v11996_v32 = vld [vmem:[%s12434_s15 + $0x1630] ss:$72 sps:$4 sm:$0xff]  }
 0x599   : > { %8826 = vmatpush1.bf16.msra.mxu1 %v11921_v53  ;;  %v12001_v53 = vld [vmem:[%s12434_s15 + $0x15a4] ss:$72 sps:$4 sm:$0xff]  }
 0x59a   : > { %8827 = vmatprep.subr.bf16.mxu1 %v11929_v8 }
 0x59b   : > { %8787 = vmatpush1.bf16.msra.mxu0 %v11924_v54  ;;  %v11999_v54 = vld [vmem:[%s12434_s15 + $0x15a0] ss:$72 sps:$4 sm:$0xff]  }
 0x59c   : > { %v12065_v1 = vpop.eup %12064  ;;  %8788 = vmatprep.subr.bf16.mxu0 %v11932_v35 }
 0x59d   : > { %8929 = vst [vmem:[%s12444_s27 + $0x50] sm:$0xff] %v12065_v1  ;;  %8828 = vmatpush1.bf16.msra.mxu1 %v11927_v62 }
 0x59e   : > { %v12067_v41 = vpop.eup %12066  ;;  %8829 = vmatprep.subr.bf16.mxu1 %v11935_v57  ;;  %v12004_v57 = vld [vmem:[%s12434_s15 + $0x1514] ss:$72 sps:$4 sm:$0xff]  }
 0x59f   : > { %8930 = vst [vmem:[%s12444_s27 + $0x58] sm:$0xff] %v12067_v41  ;;  %8789 = vmatpush1.bf16.msra.mxu0 %v11930_v4 }
 0x5a0   : > { %8790 = vmatprep.subr.bf16.mxu0 %v11938_v11 }
 0x5a1   : > { %8830 = vmatpush1.bf16.msra.mxu1 %v11933_v2 }
 0x5a2   : > { %8831 = vmatprep.subr.bf16.mxu1 %v11941_v6  ;;  %v12010_v6 = vld [vmem:[%s12434_s15 + $0x13f4] ss:$72 sps:$4 sm:$0xff]  }
 0x5a3   : > { %8791 = vmatpush1.bf16.msra.mxu0 %v11936_v42  ;;  %v12008_v42 = vld [vmem:[%s12434_s15 + $0x13f0] ss:$72 sps:$4 sm:$0xff]  }
 0x5a4   : > { %8792 = vmatprep.subr.bf16.mxu0 %v11944_v44  ;;  %v12013_v44 = vld [vmem:[%s12434_s15 + $0x1364] ss:$72 sps:$4 sm:$0xff]  }
 0x5a5   : > { %8832 = vmatpush1.bf16.msra.mxu1 %v11939_v49  ;;  %v12011_v49 = vld [vmem:[%s12434_s15 + $0x1360] ss:$72 sps:$4 sm:$0xff]  }
 0x5a6   : > { %8833 = vmatprep.subr.bf16.mxu1 %v11947_v50  ;;  %v12016_v50 = vld [vmem:[%s12434_s15 + $0x12d4] ss:$72 sps:$4 sm:$0xff]  }
 0x5a7   : > { %8793 = vmatpush1.bf16.msra.mxu0 %v11942_v55  ;;  %v12014_v55 = vld [vmem:[%s12434_s15 + $0x12d0] ss:$72 sps:$4 sm:$0xff]  }
 0x5a8   : > { %8794 = vmatprep.subr.bf16.mxu0 %v11950_v58  ;;  %v12019_v58 = vld [vmem:[%s12434_s15 + $0x1244] ss:$72 sps:$4 sm:$0xff]  }
 0x5a9   : > { %8834 = vmatpush1.bf16.msra.mxu1 %v11945_v59  ;;  %v12017_v59 = vld [vmem:[%s12434_s15 + $0x1240] ss:$72 sps:$4 sm:$0xff]  }
 0x5aa   : > { %8835 = vmatprep.subr.bf16.mxu1 %v11953_v63  ;;  %v12022_v63 = vld [vmem:[%s12434_s15 + $0x1ab4] ss:$72 sps:$4 sm:$0xff]  }
 0x5ab   : > { %8795 = vmatpush2.bf16.msra.mxu0 %v11948_v0  ;;  %v12020_v0 = vld [vmem:[%s12434_s15 + $0x1ab0] ss:$72 sps:$4 sm:$0xff]  }
 0x5ac   : > { %8796 = vmatprep.subr.bf16.mxu0 %v11956_v61  ;;  %v12025_v61 = vld [vmem:[%s12434_s15 + $0x1a24] ss:$72 sps:$4 sm:$0xff]  }
 0x5ad   : > { %8836 = vmatpush2.bf16.msra.mxu1 %v11951_v5  ;;  %v12023_v5 = vld [vmem:[%s12434_s15 + $0x1a20] ss:$72 sps:$4 sm:$0xff]  }
 0x5ae   : > { %8837 = vmatprep.subr.bf16.mxu1 %v11959_v52  ;;  %v12028_v52 = vld [vmem:[%s12434_s15 + $0x1994] ss:$72 sps:$4 sm:$0xff]  }
 0x5af   : > { %8797 = vmatpush2.bf16.msra.mxu0 %v11954_v3  ;;  %v12026_v3 = vld [vmem:[%s12434_s15 + $0x1990] ss:$72 sps:$4 sm:$0xff]  }
 0x5b0   : > { %8798 = vmatprep.subr.bf16.mxu0 %v11962_v40  ;;  %v12031_v40 = vld [vmem:[%s12434_s15 + $0x1904] ss:$72 sps:$4 sm:$0xff]  }
 0x5b1   : > { %8838 = vmatpush2.bf16.msra.mxu1 %v11957_v16  ;;  %v12029_v16 = vld [vmem:[%s12434_s15 + $0x1900] ss:$72 sps:$4 sm:$0xff]  }
 0x5b2   : > { %8839 = vmatprep.subr.bf16.mxu1 %v11965_v10  ;;  %v12034_v10 = vld [vmem:[%s12434_s15 + $0x1874] ss:$72 sps:$4 sm:$0xff]  }
 0x5b3   : > { %8799 = vmatpush2.bf16.msra.mxu0 %v11960_v14  ;;  %v12032_v14 = vld [vmem:[%s12434_s15 + $0x1870] ss:$72 sps:$4 sm:$0xff]  }
 0x5b4   : > { %8800 = vmatprep.subr.bf16.mxu0 %v11968_v17  ;;  %v12037_v17 = vld [vmem:[%s12434_s15 + $0x17e4] ss:$72 sps:$4 sm:$0xff]  }
 0x5b5   : > { %8840 = vmatpush2.bf16.msra.mxu1 %v11963_v20  ;;  %v12035_v20 = vld [vmem:[%s12434_s15 + $0x17e0] ss:$72 sps:$4 sm:$0xff]  }
 0x5b6   : > { %8841 = vmatprep.subr.bf16.mxu1 %v11971_v18  ;;  %v12040_v18 = vld [vmem:[%s12434_s15 + $0x1754] ss:$72 sps:$4 sm:$0xff]  }
 0x5b7   : > { %8801 = vmatpush2.bf16.msra.mxu0 %v11966_v21  ;;  %v12038_v21 = vld [vmem:[%s12434_s15 + $0x1750] ss:$72 sps:$4 sm:$0xff]  }
 0x5b8   : > { %8802 = vmatprep.subr.bf16.mxu0 %v11974_v33  ;;  %v12043_v33 = vld [vmem:[%s12434_s15 + $0x16c4] ss:$72 sps:$4 sm:$0xff]  }
 0x5b9   : > { %8842 = vmatpush2.bf16.msra.mxu1 %v11969_v22  ;;  %v3435_v22 = vrot.slane %v13405_v37, %v3402_v7 }
 0x5ba   : > { %8843 = vmatprep.subr.bf16.mxu1 %v11977_v36  ;;  %v3439_v36 = vrot.slane %v13405_v37, %v3406_v15 }
 0x5bb   : > { %8803 = vmatpush2.bf16.msra.mxu0 %v11972_v13  ;;  %v12041_v13 = vld [vmem:[%s12434_s15 + $0x16c0] ss:$72 sps:$4 sm:$0xff]  }
 0x5bc   : > { %8804 = vmatprep.subr.bf16.mxu0 %v11980_v38 }
 0x5bd   : > { %8844 = vmatpush2.bf16.msra.mxu1 %v11975_v23 }
 0x5be   : > { %8845 = vmatprep.subr.bf16.mxu1 %v11983_v45 }
 0x5bf   : > { %8805 = vmatpush2.bf16.msra.mxu0 %v11978_v24 }
 0x5c0   : > { %8806 = vmatprep.subr.bf16.mxu0 %v11986_v46 }
 0x5c1   : > { %8846 = vmatpush2.bf16.msra.mxu1 %v11981_v25 }
 0x5c2   : > { %8847 = vmatprep.subr.bf16.mxu1 %v11989_v26 }
 0x5c3   : > { %8807 = vmatpush2.bf16.msra.mxu0 %v11984_v27 }
 0x5c4   : > { %8808 = vmatprep.subr.bf16.mxu0 %v11992_v28 }
 0x5c5   : > { %8848 = vmatpush2.bf16.msra.mxu1 %v11987_v29 }
 0x5c6   : > { %8849 = vmatprep.subr.bf16.mxu1 %v11995_v51 }
 0x5c7   : > { %8809 = vmatpush2.bf16.msra.mxu0 %v11990_v30 }
 0x5c8   : > { %8860 = vmatprep.subr.bf16.mxu0 %v11998_v47 }
 0x5c9   : > { %8850 = vmatpush2.bf16.msra.mxu1 %v11993_v31 }
 0x5ca   : > { %v13577_v8 = vpop.f32.mrf.mxu0  ;;  %8811 = vmatmul.mubr.bf16.vlgmr.msra.gmra.mxu0 %v12624_v9  ;;  %v12002_v9 = vld [vmem:[%s12434_s15 + $0x1510] ss:$72 sps:$4 sm:$0xff]  }
 0x5cb   : > { %8861 = vmatpush1.bf16.msra.mxu0 %v11996_v32  ;;  %8892 = vmatprep.mubr.bf16.mxu0 %v12660_v34  ;;  %v12007_v34 = vld [vmem:[%s12434_s15 + $0x1484] ss:$72 sps:$4 sm:$0xff]   ;;  %v8567_v38 = vadd.f32 %v13577_v8, %v3435_v22  ;;  %v3447_v32 = vrot.slane %v13405_v37, %v3414_v60 }
 0x5cc   : > { %v13582_v35 = vpop.f32.mrf.mxu0  ;;  %v13584_v62 = vpop.f32.mrf.mxu1  ;;  %8852 = vmatmul.mubr.bf16.vlgmr.msra.gmra.mxu1 %v12628_v12  ;;  %8862 = vmatprep.subr.bf16.mxu0 %v12001_v53  ;;  %v12005_v12 = vld [vmem:[%s12434_s15 + $0x1480] ss:$72 sps:$4 sm:$0xff]  }
 0x5cd   : > { %v8569_v23 = vadd.f32 %v13582_v35, %v3439_v36  ;;  %v8608_v45 = vadd.f32 %v13584_v62, %v8567_v38 }
 0x5ce   : > { %v8570_v4 = vpop.f32.mrf.mxu0  ;;  %v13588_v1 = vpop.f32.mrf.mxu1 }
 0x5cf   : > { %8863 = vmatpush1.bf16.msra.mxu0 %v11999_v54  ;;  %v8610_v7 = vadd.f32 %v13588_v1, %v8569_v23 }
 0x5d0   : > { %v8571_v11 = vpop.f32.mrf.mxu0  ;;  %8864 = vmatprep.subr.bf16.mxu0 %v12004_v57  ;;  %v8611_v2 = vpop.f32.mrf.mxu1 }
 0x5d2   : > { %v8612_v41 = vpop.f32.mrf.mxu1 }
 0x5d3   : > { %8865 = vmatpush1.bf16.msra.mxu0 %v12002_v9 }
 0x5d4   : > { %8866 = vmatprep.subr.bf16.mxu0 %v12007_v34 }
 0x5d7   : > { %8867 = vmatpush1.bf16.msra.mxu0 %v12005_v12 }
 0x5d8   : > { %8868 = vmatprep.subr.bf16.mxu0 %v12010_v6 }
 0x5db   : > { %8869 = vmatpush1.bf16.msra.mxu0 %v12008_v42 }
 0x5dc   : > { %8870 = vmatprep.subr.bf16.mxu0 %v12013_v44 }
 0x5df   : > { %8871 = vmatpush1.bf16.msra.mxu0 %v12011_v49 }
 0x5e0   : > { %8872 = vmatprep.subr.bf16.mxu0 %v12016_v50 }
 0x5e3   : > { %8873 = vmatpush1.bf16.msra.mxu0 %v12014_v55 }
 0x5e4   : > { %8874 = vmatprep.subr.bf16.mxu0 %v12019_v58  ;;  %v3380_v58 = vld [vmem:[%s12446_s26 + $0x10] sm:$0x3] }
 0x5e7   : > { %8875 = vmatpush1.bf16.msra.mxu0 %v12017_v59  ;;  %v3451_v59 = vrot.slane %v3380_v58, %v12915_v39 }
 0x5e8   : > { %8876 = vmatprep.subr.bf16.mxu0 %v12022_v63  ;;  %v3455_v63 = vrot.slane %v3380_v58, %v12920_v43 }
 0x5eb   : > { %8877 = vmatpush2.bf16.msra.mxu0 %v12020_v0 }
 0x5ec   : > { %8878 = vmatprep.subr.bf16.mxu0 %v12025_v61 }
 0x5ef   : > { %8879 = vmatpush2.bf16.msra.mxu0 %v12023_v5 }
 0x5f0   : > { %8880 = vmatprep.subr.bf16.mxu0 %v12028_v52 }
 0x5f3   : > { %8881 = vmatpush2.bf16.msra.mxu0 %v12026_v3 }
 0x5f4   : > { %8882 = vmatprep.subr.bf16.mxu0 %v12031_v40 }
 0x5f7   : > { %8883 = vmatpush2.bf16.msra.mxu0 %v12029_v16 }
 0x5f8   : > { %8884 = vmatprep.subr.bf16.mxu0 %v12034_v10 }
 0x5fb   : > { %8885 = vmatpush2.bf16.msra.mxu0 %v12032_v14 }
 0x5fc   : > { %8886 = vmatprep.subr.bf16.mxu0 %v12037_v17 }
 0x5ff   : > { %8887 = vmatpush2.bf16.msra.mxu0 %v12035_v20 }
 0x600   : > { %8888 = vmatprep.subr.bf16.mxu0 %v12040_v18 }
 0x603   : > { %8889 = vmatpush2.bf16.msra.mxu0 %v12038_v21 }
 0x604   : > { %8890 = vmatprep.subr.bf16.mxu0 %v12043_v33 }
 0x607   : > { %8891 = vmatpush2.bf16.msra.mxu0 %v12041_v13 }
 0x60a   : > { %v8648_v24 = vpop.f32.mrf.mxu0  ;;  %8893 = vmatmul.mubr.bf16.vlgmr.msra.gmra.mxu0 %v12704_v19  ;;  %v3443_v19 = vrot.slane %v13405_v37, %v3410_v56 }
 0x60b   : > { %v8649_v46 = vadd.f32 %v8648_v24, %v8608_v45 }
 0x60c   : > { %v8650_v25 = vpop.f32.mrf.mxu0  ;;  %v8689_v15 = vpop.f32.mrf.mxu1 }
 0x60d   : > { %12068 = vtanh.f32 %v8649_v46  ;;  %v8651_v26 = vadd.f32 %v8650_v25, %v8610_v7  ;;  %v8690_v53 = vadd.f32 %v8689_v15, %v3443_v19 }
 0x60e   : > { %v8652_v27 = vpop.f32.mrf.mxu0  ;;  %v8691_v28 = vpop.f32.mrf.mxu1 }
 0x60f   : > { %12070 = vtanh.f32 %v8651_v26  ;;  %v8692_v8 = vadd.f32 %v8691_v28, %v3447_v32 }
 0x610   : > { %v8653_v29 = vpop.f32.mrf.mxu0  ;;  %v8693_v51 = vpop.f32.mrf.mxu1 }
 0x612   : > { %v8694_v30 = vpop.f32.mrf.mxu1 }
 0x61a   : > { %v12069_v47 = vpop.eup %12068 }
 0x61b   : > { %8931 = vst [vmem:[%s12444_s27 + $0x60] sm:$0xff] %v12069_v47 }
 0x61c   : > { %v12071_v31 = vpop.eup %12070 }
 0x61d   : > { %8932 = vst [vmem:[%s12444_s27 + $0x68] sm:$0xff] %v12071_v31 }
 0x64a   : > { %v8730_v54 = vpop.f32.mrf.mxu0 }
 0x64b   : > { %v8731_v35 = vadd.f32 %v8730_v54, %v8690_v53 }
 0x64c   : > { %v8732_v62 = vpop.f32.mrf.mxu0  ;;  %v8771_v57 = vpop.f32.mrf.mxu1 }
 0x64d   : > { %v8733_v4 = vadd.f32 %v8732_v62, %v8692_v8  ;;  %v8772_v1 = vadd.f32 %v8771_v57, %v8731_v35 }
 0x64e   : > { %v8734_v9 = vpop.f32.mrf.mxu0  ;;  %v8773_v11 = vpop.f32.mrf.mxu1 }
 0x64f   : > { %12072 = vtanh.f32 %v8772_v1  ;;  %v8774_v34 = vadd.f32 %v8773_v11, %v8733_v4 }
 0x650   : > { %v8735_v2 = vpop.f32.mrf.mxu0  ;;  %v8775_v56 = vpop.f32.mrf.mxu1 }
 0x651   : > { %12074 = vtanh.f32 %v8774_v34 }
 0x652   : > { %v8776_v48 = vpop.f32.mrf.mxu1 }
 0x65c   : > { %v12073_v60 = vpop.eup %12072 }
 0x65d   : > { %8933 = vst [vmem:[%s12444_s27 + $0x70] sm:$0xff] %v12073_v60 }
 0x65e   : > { %v12075_v37 = vpop.eup %12074 }
 0x65f   : > { %8934 = vst [vmem:[%s12444_s27 + $0x78] sm:$0xff] %v12075_v37 }
 0x68a   : > { %v8812_v41 = vpop.f32.mrf.mxu0 }
 0x68b   : > { %v8813_v0 = vadd.f32 %v8812_v41, %v3451_v59 }
 0x68c   : > { %v8814_v12 = vpop.f32.mrf.mxu0  ;;  %v8853_v6 = vpop.f32.mrf.mxu1 }
 0x68d   : > { %v8815_v61 = vadd.f32 %v8814_v12, %v3455_v63  ;;  %v8854_v5 = vadd.f32 %v8853_v6, %v8813_v0 }
 0x68e   : > { %v8816_v42 = vpop.f32.mrf.mxu0  ;;  %v8855_v44 = vpop.f32.mrf.mxu1 }
 0x68f   : > { %v8856_v3 = vadd.f32 %v8855_v44, %v8815_v61 }
 0x690   : > { %v8817_v49 = vpop.f32.mrf.mxu0  ;;  %v8857_v50 = vpop.f32.mrf.mxu1 }
 0x692   : > { %v8858_v55 = vpop.f32.mrf.mxu1 }
 0x6ca   : > { %v8894_v52 = vpop.f32.mrf.mxu0 }
 0x6cb   : > { %v8895_v40 = vadd.f32 %v8894_v52, %v8854_v5 }
 0x6cc   : > { %v8896_v16 = vpop.f32.mrf.mxu0 }
 0x6cd   : > { %12076 = vtanh.f32 %v8895_v40  ;;  %v8897_v10 = vadd.f32 %v8896_v16, %v8856_v3 }
 0x6ce   : > { %v8898_v14 = vpop.f32.mrf.mxu0 }
 0x6cf   : > { %12078 = vtanh.f32 %v8897_v10 }
 0x6d0   : > { %v8899_v17 = vpop.f32.mrf.mxu0 }
 0x6da   : > { %v12077_v20 = vpop.eup %12076 }
 0x6db   : > { %8935 = vst [vmem:[%s12444_s27 + $0x80] sm:$0xff] %v12077_v20 }
 0x6dc   : > { %v12079_v18 = vpop.eup %12078 }
 0x6dd   : > { %8936 = vst [vmem:[%s12444_s27 + $0x88] sm:$0xff] %v12079_v18 }
 0x6de PF: > { %s13684_s24 = sld [smem:[#allocation11_spill]]  ;;  %s13686_s21 = smov %s12223_s22 }
 0x6df   : > { %s13685_s15 = sld [smem:[#allocation12_spill]]  ;;  %s13687_s22 = smov %s12227_s23 }
 0x6e4   : > { %p16_p3 = scmp.ge.s32.totalorder %s13684_s24, 4  }
 0x6e5   : > { %s13688_s23 = smov %s13685_s15 }
 0x6e6   :  { %18 = sbr.rel (!%p16_p3) target bundleno = 3 (0x3), region = 110 }
 0x6eb   :  { %8965 = vsyncpa [#allocation3], 1 }
 0x6ec   :  { %8967 = vsyncpa [#allocation3 + $0x1], 1 }
 0x6ed   :  { %8968 = vsyncpa [#allocation5], 1 }

</bundles_post_ra>
